<compile_context>
chip_gen: v6e
topology: v6e:2x2x1
jax: 0.10.0
libtpu: 0.0.40
codegen_flags: <defaults>
</compile_context>

<pallas_src>
import jax
import jax.numpy as jnp
from jax.experimental import pallas as pl
from jax.experimental.pallas import tpu as pltpu


# ---------------------------------------------------------------------------
# Helpers
# ---------------------------------------------------------------------------
def _round_up(a, m):
    return ((a + m - 1) // m) * m


def _pick_tile(dim, unit, cap):
    """Largest divisor of `dim` that is a multiple of `unit` and <= cap.

    Falls back to the full extent if dim <= cap, dim is not a multiple of
    `unit`, or no such divisor exists (full extent is always a legal block).
    """
    if dim <= cap or dim % unit != 0:
        return dim
    d = cap - (cap % unit)
    while d >= unit:
        if dim % d == 0:
            return d
        d -= unit
    return dim


# ---------------------------------------------------------------------------
# Pallas kernels: Y = relu(X @ W + b)
#   * X blocks arrive f32 and are cast to bf16 in-kernel (activations are tiny
#     vs. weights); W is stored bf16; accumulation is f32.
#   * grid = (N tiles, M tiles)            when K fits in one chunk
#   * grid = (N tiles, M tiles, K tiles)   otherwise (K last, "arbitrary")
# ---------------------------------------------------------------------------
def _mm_bias_relu_1k_kernel(x_ref, w_ref, b_ref, o_ref):
    # Single K step: fused dot + bias + ReLU, one pass over the output block.
    o_ref[...] = jnp.maximum(
        jnp.dot(
            x_ref[...].astype(jnp.bfloat16),
            w_ref[...],
            preferred_element_type=jnp.float32,
        )
        + b_ref[...],
        0.0,
    )


def _mm_bias_relu_kernel(x_ref, w_ref, b_ref, o_ref, acc_ref):
    k = pl.program_id(2)

    @pl.when(k == 0)
    def _():
        acc_ref[...] = jnp.zeros_like(acc_ref)

    acc_ref[...] += jnp.dot(
        x_ref[...].astype(jnp.bfloat16),
        w_ref[...],
        preferred_element_type=jnp.float32,
    )

    @pl.when(k == pl.num_programs(2) - 1)
    def _():
        o_ref[...] = jnp.maximum(acc_ref[...] + b_ref[...], 0.0)


def matmul_bias_relu(x, w, b, *, tm_cap=256, tn_cap=512, tk_cap=2304):
    """x: (M, K) f32, w: (K, N) bf16, b: (N,) f32 -> relu(x @ w + b): (M, N) f32."""
    M, K = x.shape
    Kw, N = w.shape
    assert K == Kw and b.shape == (N,)

    # Pad M only to the 8-row sublane alignment, then pick tm as a divisor of
    # the padded M so no extra padded rows are DMA'd / run through the MXU.
    Mp = _round_up(M, 8)
    xp = jnp.pad(x, ((0, Mp - M), (0, 0))) if Mp != M else x
    tm = _pick_tile(Mp, 8, tm_cap)
    tn = _pick_tile(N, 128, tn_cap)   # N=1024 -> two 512-wide "parallel" tiles
    tk = _pick_tile(K, 128, tk_cap)

    n_m, n_n, n_k = Mp // tm, N // tn, K // tk

    cost = pl.CostEstimate(
        flops=2 * Mp * K * N,
        transcendentals=0,
        # f32 activations in/out, bf16 weights re-streamed once per M tile.
        bytes_accessed=4 * Mp * K + 2 * K * N * n_m + 4 * Mp * N + 4 * N,
    )
    cparams = pltpu.CompilerParams(
        dimension_semantics=(
            ("parallel", "parallel", "arbitrary") if n_k > 1
            else ("parallel", "parallel")
        ),
        vmem_limit_bytes=32 * 1024 * 1024,
    )

    if n_k == 1:
        grid_spec = pltpu.PrefetchScalarGridSpec(
            num_scalar_prefetch=0,
            grid=(n_n, n_m),
            in_specs=[
                pl.BlockSpec((tm, K), lambda n, m: (m, 0)),
                pl.BlockSpec((K, tn), lambda n, m: (0, n)),
                pl.BlockSpec((1, tn), lambda n, m: (0, n)),
            ],
            out_specs=pl.BlockSpec((tm, tn), lambda n, m: (m, n)),
        )
        kernel = _mm_bias_relu_1k_kernel
    else:
        grid_spec = pltpu.PrefetchScalarGridSpec(
            num_scalar_prefetch=0,
            grid=(n_n, n_m, n_k),
            in_specs=[
                pl.BlockSpec((tm, tk), lambda n, m, k: (m, k)),
                pl.BlockSpec((tk, tn), lambda n, m, k: (k, n)),
                pl.BlockSpec((1, tn), lambda n, m, k: (0, n)),
            ],
            out_specs=pl.BlockSpec((tm, tn), lambda n, m, k: (m, n)),
            scratch_shapes=[pltpu.VMEM((tm, tn), jnp.float32)],
        )
        kernel = _mm_bias_relu_kernel

    out = pl.pallas_call(
        kernel,
        out_shape=jax.ShapeDtypeStruct((Mp, N), jnp.float32),
        grid_spec=grid_spec,
        compiler_params=cparams,
        cost_estimate=cost,
    )(xp, w, b.reshape(1, N))
    return out[:M] if Mp != M else out


# ---------------------------------------------------------------------------
# NHWC im2col glue (static slices + concat only; heavy matmul runs in Pallas).
# ---------------------------------------------------------------------------
def im2col_nhwc(x, kh, kw):
    """x: (B, H, W, C) -> (B*Ho*Wo, kh*kw*C); K ordered (kh, kw, C)."""
    B, Hh, Ww, C = x.shape
    Ho, Wo = Hh - kh + 1, Ww - kw + 1
    cols = []
    for i in range(kh):
        for j in range(kw):
            cols.append(x[:, i:i + Ho, j:j + Wo, :])      # (B, Ho, Wo, C)
    p = jnp.concatenate(cols, axis=-1)                    # (B, Ho, Wo, kh*kw*C)
    return p.reshape(B * Ho * Wo, kh * kw * C), Ho, Wo


def conv2d_relu_nhwc(x, w_kn, b, kh, kw):
    """x: (B, H, W, Cin) NHWC; w_kn: (kh*kw*Cin [padded], Cout) bf16; b: (Cout,).
    Valid conv + ReLU. Returns NHWC (B, Ho, Wo, Cout)."""
    # TODO(synk): do the 2x2 im2col for conv2 inside the Pallas kernel (four
    # shifted dots on the resident NHWC tile) to avoid the 4x activation
    # expansion through HBM once batch grows.
    B = x.shape[0]
    patches, Ho, Wo = im2col_nhwc(x, kh, kw)              # (B*Ho*Wo, kh*kw*Cin)
    Kp = w_kn.shape[0]
    if patches.shape[1] < Kp:                             # zero-pad K (conv1: 48 -> 128)
        patches = jnp.pad(patches, ((0, 0), (0, Kp - patches.shape[1])))
    y = matmul_bias_relu(patches, w_kn, b)                # (B*Ho*Wo, Cout)
    return y.reshape(B, Ho, Wo, -1)                       # stay NHWC (no transpose)


# ---------------------------------------------------------------------------
# Parameters: init in torch layout, convert ONCE (outside jit) to kernel layout.
# ---------------------------------------------------------------------------
def init_params(key):
    ks = jax.random.split(key, 10)

    def rand(k, shape, fan_in):
        return (jax.random.normal(k, shape, jnp.float32) / jnp.sqrt(fan_in)).astype(
            jnp.float32
        )

    return {
        "conv1_w": rand(ks[0], (128, 12, 2, 2), 12 * 2 * 2),
        "conv1_b": rand(ks[1], (128,), 12 * 2 * 2),
        "conv2_w": rand(ks[2], (128, 128, 2, 2), 128 * 2 * 2),
        "conv2_b": rand(ks[3], (128,), 128 * 2 * 2),
        "fc1_w": rand(ks[4], (1024, 128 * 6 * 6), 128 * 6 * 6),  # (out, in) torch layout
        "fc1_b": rand(ks[5], (1024,), 128 * 6 * 6),
        "fc2_w": rand(ks[6], (1024, 1024), 1024),
        "fc2_b": rand(ks[7], (1024,), 1024),
        # fc4 exists in __init__ but is unused in forward (kept for parity):
        "fc4_w": rand(ks[8], (64, 1024), 1024),
        "fc4_b": rand(ks[9], (64,), 1024),
    }


def prepare_params(p):
    """One-time torch-layout -> kernel-layout conversion. Call OUTSIDE jit.

    Weights are stored bf16 (f32 accumulation happens in the kernels); biases
    stay f32.  Outputs deviate from exact f32 PyTorch semantics at bf16 level.
    """
    def conv_w_kn(w):
        # (Cout, Cin, kh, kw) -> (kh*kw*Cin, Cout), K ordered (kh, kw, Cin)
        return jnp.transpose(w, (2, 3, 1, 0)).reshape(-1, w.shape[0])

    c1 = conv_w_kn(p["conv1_w"])                          # (48, 128)
    c1 = jnp.pad(c1, ((0, 128 - c1.shape[0]), (0, 0)))    # pad K 48 -> 128 (zeros)
    c2 = conv_w_kn(p["conv2_w"])                          # (512, 128)

    # fc1: torch (1024, 4608), input features in NCHW order (C=128, H=6, W=6).
    # Internal flatten is NHWC, so permute input columns to (H, W, C) and
    # transpose to (K, N).
    fc1 = (
        p["fc1_w"].reshape(1024, 128, 6, 6)
        .transpose(2, 3, 1, 0)
        .reshape(6 * 6 * 128, 1024)
    )
    fc2 = p["fc2_w"].T                                    # (1024, 1024) = (K, N)

    bf16 = jnp.bfloat16
    return {
        "conv1_w": c1.astype(bf16), "conv1_b": p["conv1_b"],
        "conv2_w": c2.astype(bf16), "conv2_b": p["conv2_b"],
        "fc1_w": fc1.astype(bf16), "fc1_b": p["fc1_b"],
        "fc2_w": fc2.astype(bf16), "fc2_b": p["fc2_b"],
    }


# ---------------------------------------------------------------------------
# MoveModel forward
# ---------------------------------------------------------------------------
@jax.jit
def move_model_forward(kparams, x):
    # x: (B, 12, 8, 8) float32 NCHW (PyTorch interface); convert once to NHWC.
    x = jnp.transpose(x, (0, 2, 3, 1))                                     # (B, 8, 8, 12)
    x = conv2d_relu_nhwc(x, kparams["conv1_w"], kparams["conv1_b"], 2, 2)  # (B, 7, 7, 128)
    x = conv2d_relu_nhwc(x, kparams["conv2_w"], kparams["conv2_b"], 2, 2)  # (B, 6, 6, 128)
    B = x.shape[0]
    x = x.reshape(B, 6 * 6 * 128)              # NHWC flatten (fc1_w columns pre-permuted)
    # TODO(synk): cross-pallas_call prefetch (P10) of fc1_w to overlap the
    # dominant weight DMA with the conv kernels and XLA glue at small batch.
    x = matmul_bias_relu(x, kparams["fc1_w"], kparams["fc1_b"])            # (B, 1024)
    x = matmul_bias_relu(x, kparams["fc2_w"], kparams["fc2_b"])            # (B, 1024)
    return x


if __name__ == "__main__":
    key = jax.random.PRNGKey(0)
    pkey, xkey = jax.random.split(key)
    torch_params = init_params(pkey)
    kparams = prepare_params(torch_params)     # one-time layout conversion, outside jit

    B = 2
    x = jax.random.normal(xkey, (B, 12, 8, 8), jnp.float32)   # chess-board sized input

    out = move_model_forward(kparams, x)
    out = jax.block_until_ready(out)
    assert out.shape == (B, 1024), out.shape
    assert out.dtype == jnp.float32
    print("KERNEL_OK")
</pallas_src>

<mosaic_0001>
module attributes {stable_mosaic.version = 11 : i64} {
  func.func @_mm_bias_relu_1k_kernel(%arg0: i32, %arg1: i32, %arg2: memref<104x128xf32, #tpu.memory_space<vmem>>, %arg3: memref<128x128xbf16, #tpu.memory_space<vmem>>, %arg4: memref<1x128xf32, #tpu.memory_space<vmem>>, %arg5: memref<104x128xf32, #tpu.memory_space<vmem>>) attributes {dimension_semantics = [#tpu.dimension_semantics<parallel>, #tpu.dimension_semantics<parallel>], iteration_bounds = array<i64: 1, 1>, scalar_prefetch = 0 : i64, scratch_operands = 0 : i64, tpu.core_type = #tpu.core_type<tc>, window_params = [{transform_indices = @transform_0, window_bounds = array<i64: 104, 128>}, {transform_indices = @transform_1, window_bounds = array<i64: 128, 128>}, {transform_indices = @transform_2, window_bounds = array<i64: 1, 128>}, {transform_indices = @transform_3, window_bounds = array<i64: 104, 128>}]} {
    %c0 = arith.constant 0 : index
    %c0_0 = arith.constant 0 : index
    %0 = vector.load %arg2[%c0, %c0_0] : memref<104x128xf32, #tpu.memory_space<vmem>>, vector<104x128xf32>
    %1 = arith.truncf %0 : vector<104x128xf32> to vector<104x128xbf16>
    %c0_1 = arith.constant 0 : index
    %c0_2 = arith.constant 0 : index
    %2 = vector.load %arg3[%c0_1, %c0_2] : memref<128x128xbf16, #tpu.memory_space<vmem>>, vector<128x128xbf16>
    %cst = arith.constant dense<0.000000e+00> : vector<104x128xf32>
    %3 = tpu.matmul %1, %2, %cst {dimension_numbers = #tpu.dot_dimension_numbers<[1], [0], [0], [1], [0, 0, 1, 1], [], []>} : vector<104x128xbf16>, vector<128x128xbf16>, vector<104x128xf32> -> vector<104x128xf32>
    %c0_3 = arith.constant 0 : index
    %c0_4 = arith.constant 0 : index
    %4 = vector.load %arg4[%c0_3, %c0_4] : memref<1x128xf32, #tpu.memory_space<vmem>>, vector<1x128xf32>
    %5 = vector.broadcast %4 : vector<1x128xf32> to vector<104x128xf32>
    %6 = arith.addf %3, %5 : vector<104x128xf32>
    %cst_5 = arith.constant 0.000000e+00 : f32
    %7 = vector.broadcast %cst_5 : f32 to vector<104x128xf32>
    %8 = arith.maximumf %6, %7 : vector<104x128xf32>
    %c0_6 = arith.constant 0 : index
    %c0_7 = arith.constant 0 : index
    %9 = vector.load %arg5[%c0_6, %c0_7] : memref<104x128xf32, #tpu.memory_space<vmem>>, vector<104x128xf32>
    tpu.vector_store %arg5[%c0_6, %c0_7], %8 {strides = array<i32>} : memref<104x128xf32, #tpu.memory_space<vmem>>, vector<104x128xf32>,
    return
  }
  func.func @transform_0(%arg0: i32, %arg1: i32) -> (i32, i32) {
    %c0_i32 = arith.constant 0 : i32
    %c0_i32_0 = arith.constant 0 : i32
    return %arg1, %c0_i32 : i32, i32
  }
  func.func @transform_1(%arg0: i32, %arg1: i32) -> (i32, i32) {
    %c0_i32 = arith.constant 0 : i32
    %c0_i32_0 = arith.constant 0 : i32
    return %c0_i32, %arg0 : i32, i32
  }
  func.func @transform_2(%arg0: i32, %arg1: i32) -> (i32, i32) {
    %c0_i32 = arith.constant 0 : i32
    %c0_i32_0 = arith.constant 0 : i32
    return %c0_i32, %arg0 : i32, i32
  }
  func.func @transform_3(%arg0: i32, %arg1: i32) -> (i32, i32) {
    %c0_i32 = arith.constant 0 : i32
    return %arg1, %arg0 : i32, i32
  }
}

module attributes {stable_mosaic.version = 11 : i64} {
  func.func @_mm_bias_relu_1k_kernel(%arg0: i32, %arg1: i32, %arg2: memref<8x1024xf32, #tpu.memory_space<vmem>>, %arg3: memref<1024x512xbf16, #tpu.memory_space<vmem>>, %arg4: memref<1x512xf32, #tpu.memory_space<vmem>>, %arg5: memref<8x512xf32, #tpu.memory_space<vmem>>) attributes {dimension_semantics = [#tpu.dimension_semantics<parallel>, #tpu.dimension_semantics<parallel>], iteration_bounds = array<i64: 2, 1>, scalar_prefetch = 0 : i64, scratch_operands = 0 : i64, tpu.core_type = #tpu.core_type<tc>, window_params = [{transform_indices = @transform_0, window_bounds = array<i64: 8, 1024>}, {transform_indices = @transform_1, window_bounds = array<i64: 1024, 512>}, {transform_indices = @transform_2, window_bounds = array<i64: 1, 512>}, {transform_indices = @transform_3, window_bounds = array<i64: 8, 512>}]} {
    %c0 = arith.constant 0 : index
    %c0_0 = arith.constant 0 : index
    %0 = vector.load %arg2[%c0, %c0_0] : memref<8x1024xf32, #tpu.memory_space<vmem>>, vector<8x1024xf32>
    %1 = arith.truncf %0 : vector<8x1024xf32> to vector<8x1024xbf16>
    %c0_1 = arith.constant 0 : index
    %c0_2 = arith.constant 0 : index
    %2 = vector.load %arg3[%c0_1, %c0_2] : memref<1024x512xbf16, #tpu.memory_space<vmem>>, vector<1024x512xbf16>
    %cst = arith.constant dense<0.000000e+00> : vector<8x512xf32>
    %3 = tpu.matmul %1, %2, %cst {dimension_numbers = #tpu.dot_dimension_numbers<[1], [0], [0], [1], [0, 0, 1, 1], [], []>} : vector<8x1024xbf16>, vector<1024x512xbf16>, vector<8x512xf32> -> vector<8x512xf32>
    %c0_3 = arith.constant 0 : index
    %c0_4 = arith.constant 0 : index
    %4 = vector.load %arg4[%c0_3, %c0_4] : memref<1x512xf32, #tpu.memory_space<vmem>>, vector<1x512xf32>
    %5 = vector.broadcast %4 : vector<1x512xf32> to vector<8x512xf32>
    %6 = arith.addf %3, %5 : vector<8x512xf32>
    %cst_5 = arith.constant 0.000000e+00 : f32
    %7 = vector.broadcast %cst_5 : f32 to vector<8x512xf32>
    %8 = arith.maximumf %6, %7 : vector<8x512xf32>
    %c0_6 = arith.constant 0 : index
    %c0_7 = arith.constant 0 : index
    %9 = vector.load %arg5[%c0_6, %c0_7] : memref<8x512xf32, #tpu.memory_space<vmem>>, vector<8x512xf32>
    tpu.vector_store %arg5[%c0_6, %c0_7], %8 {strides = array<i32>} : memref<8x512xf32, #tpu.memory_space<vmem>>, vector<8x512xf32>,
    return
  }
  func.func @transform_0(%arg0: i32, %arg1: i32) -> (i32, i32) {
    %c0_i32 = arith.constant 0 : i32
    %c0_i32_0 = arith.constant 0 : i32
    return %arg1, %c0_i32 : i32, i32
  }
  func.func @transform_1(%arg0: i32, %arg1: i32) -> (i32, i32) {
    %c0_i32 = arith.constant 0 : i32
    %c0_i32_0 = arith.constant 0 : i32
    return %c0_i32, %arg0 : i32, i32
  }
  func.func @transform_2(%arg0: i32, %arg1: i32) -> (i32, i32) {
    %c0_i32 = arith.constant 0 : i32
    %c0_i32_0 = arith.constant 0 : i32
    return %c0_i32, %arg0 : i32, i32
  }
  func.func @transform_3(%arg0: i32, %arg1: i32) -> (i32, i32) {
    %c0_i32 = arith.constant 0 : i32
    return %arg1, %arg0 : i32, i32
  }
}

module attributes {stable_mosaic.version = 11 : i64} {
  func.func @_mm_bias_relu_1k_kernel(%arg0: i32, %arg1: i32, %arg2: memref<72x512xf32, #tpu.memory_space<vmem>>, %arg3: memref<512x128xbf16, #tpu.memory_space<vmem>>, %arg4: memref<1x128xf32, #tpu.memory_space<vmem>>, %arg5: memref<72x128xf32, #tpu.memory_space<vmem>>) attributes {dimension_semantics = [#tpu.dimension_semantics<parallel>, #tpu.dimension_semantics<parallel>], iteration_bounds = array<i64: 1, 1>, scalar_prefetch = 0 : i64, scratch_operands = 0 : i64, tpu.core_type = #tpu.core_type<tc>, window_params = [{transform_indices = @transform_0, window_bounds = array<i64: 72, 512>}, {transform_indices = @transform_1, window_bounds = array<i64: 512, 128>}, {transform_indices = @transform_2, window_bounds = array<i64: 1, 128>}, {transform_indices = @transform_3, window_bounds = array<i64: 72, 128>}]} {
    %c0 = arith.constant 0 : index
    %c0_0 = arith.constant 0 : index
    %0 = vector.load %arg2[%c0, %c0_0] : memref<72x512xf32, #tpu.memory_space<vmem>>, vector<72x512xf32>
    %1 = arith.truncf %0 : vector<72x512xf32> to vector<72x512xbf16>
    %c0_1 = arith.constant 0 : index
    %c0_2 = arith.constant 0 : index
    %2 = vector.load %arg3[%c0_1, %c0_2] : memref<512x128xbf16, #tpu.memory_space<vmem>>, vector<512x128xbf16>
    %cst = arith.constant dense<0.000000e+00> : vector<72x128xf32>
    %3 = tpu.matmul %1, %2, %cst {dimension_numbers = #tpu.dot_dimension_numbers<[1], [0], [0], [1], [0, 0, 1, 1], [], []>} : vector<72x512xbf16>, vector<512x128xbf16>, vector<72x128xf32> -> vector<72x128xf32>
    %c0_3 = arith.constant 0 : index
    %c0_4 = arith.constant 0 : index
    %4 = vector.load %arg4[%c0_3, %c0_4] : memref<1x128xf32, #tpu.memory_space<vmem>>, vector<1x128xf32>
    %5 = vector.broadcast %4 : vector<1x128xf32> to vector<72x128xf32>
    %6 = arith.addf %3, %5 : vector<72x128xf32>
    %cst_5 = arith.constant 0.000000e+00 : f32
    %7 = vector.broadcast %cst_5 : f32 to vector<72x128xf32>
    %8 = arith.maximumf %6, %7 : vector<72x128xf32>
    %c0_6 = arith.constant 0 : index
    %c0_7 = arith.constant 0 : index
    %9 = vector.load %arg5[%c0_6, %c0_7] : memref<72x128xf32, #tpu.memory_space<vmem>>, vector<72x128xf32>
    tpu.vector_store %arg5[%c0_6, %c0_7], %8 {strides = array<i32>} : memref<72x128xf32, #tpu.memory_space<vmem>>, vector<72x128xf32>,
    return
  }
  func.func @transform_0(%arg0: i32, %arg1: i32) -> (i32, i32) {
    %c0_i32 = arith.constant 0 : i32
    %c0_i32_0 = arith.constant 0 : i32
    return %arg1, %c0_i32 : i32, i32
  }
  func.func @transform_1(%arg0: i32, %arg1: i32) -> (i32, i32) {
    %c0_i32 = arith.constant 0 : i32
    %c0_i32_0 = arith.constant 0 : i32
    return %c0_i32, %arg0 : i32, i32
  }
  func.func @transform_2(%arg0: i32, %arg1: i32) -> (i32, i32) {
    %c0_i32 = arith.constant 0 : i32
    %c0_i32_0 = arith.constant 0 : i32
    return %c0_i32, %arg0 : i32, i32
  }
  func.func @transform_3(%arg0: i32, %arg1: i32) -> (i32, i32) {
    %c0_i32 = arith.constant 0 : i32
    return %arg1, %arg0 : i32, i32
  }
}

module attributes {stable_mosaic.version = 11 : i64} {
  func.func @_mm_bias_relu_kernel(%arg0: i32, %arg1: i32, %arg2: i32, %arg3: memref<8x2304xf32, #tpu.memory_space<vmem>>, %arg4: memref<2304x512xbf16, #tpu.memory_space<vmem>>, %arg5: memref<1x512xf32, #tpu.memory_space<vmem>>, %arg6: memref<8x512xf32, #tpu.memory_space<vmem>>, %arg7: memref<8x512xf32, #tpu.memory_space<vmem>>) attributes {dimension_semantics = [#tpu.dimension_semantics<parallel>, #tpu.dimension_semantics<parallel>, #tpu.dimension_semantics<arbitrary>], iteration_bounds = array<i64: 2, 1, 2>, scalar_prefetch = 0 : i64, scratch_operands = 1 : i64, tpu.core_type = #tpu.core_type<tc>, window_params = [{transform_indices = @transform_0, window_bounds = array<i64: 8, 2304>}, {transform_indices = @transform_1, window_bounds = array<i64: 2304, 512>}, {transform_indices = @transform_2, window_bounds = array<i64: 1, 512>}, {transform_indices = @transform_3, window_bounds = array<i64: 8, 512>}]} {
    %c0_i32 = arith.constant 0 : i32
    %0 = arith.cmpi eq, %arg2, %c0_i32 : i32
    %1 = arith.extui %0 : i1 to i32
    %c0_i32_0 = arith.constant 0 : i32
    %2 = arith.cmpi ne, %1, %c0_i32_0 : i32
    scf.if %2 {
      %cst_9 = arith.constant 0.000000e+00 : f32
      %13 = vector.broadcast %cst_9 : f32 to vector<8x512xf32>
      %c0_10 = arith.constant 0 : index
      %c0_11 = arith.constant 0 : index
      %14 = vector.load %arg7[%c0_10, %c0_11] : memref<8x512xf32, #tpu.memory_space<vmem>>, vector<8x512xf32>
      tpu.vector_store %arg7[%c0_10, %c0_11], %13 {strides = array<i32>} : memref<8x512xf32, #tpu.memory_space<vmem>>, vector<8x512xf32>,
    } else {
    }
    %c0 = arith.constant 0 : index
    %c0_1 = arith.constant 0 : index
    %3 = vector.load %arg7[%c0, %c0_1] : memref<8x512xf32, #tpu.memory_space<vmem>>, vector<8x512xf32>
    %c0_2 = arith.constant 0 : index
    %c0_3 = arith.constant 0 : index
    %4 = vector.load %arg3[%c0_2, %c0_3] : memref<8x2304xf32, #tpu.memory_space<vmem>>, vector<8x2304xf32>
    %5 = arith.truncf %4 : vector<8x2304xf32> to vector<8x2304xbf16>
    %c0_4 = arith.constant 0 : index
    %c0_5 = arith.constant 0 : index
    %6 = vector.load %arg4[%c0_4, %c0_5] : memref<2304x512xbf16, #tpu.memory_space<vmem>>, vector<2304x512xbf16>
    %cst = arith.constant dense<0.000000e+00> : vector<8x512xf32>
    %7 = tpu.matmul %5, %6, %cst {dimension_numbers = #tpu.dot_dimension_numbers<[1], [0], [0], [1], [0, 0, 1, 1], [], []>} : vector<8x2304xbf16>, vector<2304x512xbf16>, vector<8x512xf32> -> vector<8x512xf32>
    %8 = arith.addf %3, %7 : vector<8x512xf32>
    %c0_6 = arith.constant 0 : index
    %c0_7 = arith.constant 0 : index
    %9 = vector.load %arg7[%c0_6, %c0_7] : memref<8x512xf32, #tpu.memory_space<vmem>>, vector<8x512xf32>
    tpu.vector_store %arg7[%c0_6, %c0_7], %8 {strides = array<i32>} : memref<8x512xf32, #tpu.memory_space<vmem>>, vector<8x512xf32>,
    %c1_i32 = arith.constant 1 : i32
    %10 = arith.cmpi eq, %arg2, %c1_i32 : i32
    %11 = arith.extui %10 : i1 to i32
    %c0_i32_8 = arith.constant 0 : i32
    %12 = arith.cmpi ne, %11, %c0_i32_8 : i32
    scf.if %12 {
      %c0_9 = arith.constant 0 : index
      %c0_10 = arith.constant 0 : index
      %13 = vector.load %arg7[%c0_9, %c0_10] : memref<8x512xf32, #tpu.memory_space<vmem>>, vector<8x512xf32>
      %c0_11 = arith.constant 0 : index
      %c0_12 = arith.constant 0 : index
      %14 = vector.load %arg5[%c0_11, %c0_12] : memref<1x512xf32, #tpu.memory_space<vmem>>, vector<1x512xf32>
      %15 = vector.broadcast %14 : vector<1x512xf32> to vector<8x512xf32>
      %16 = arith.addf %13, %15 : vector<8x512xf32>
      %cst_13 = arith.constant 0.000000e+00 : f32
      %17 = vector.broadcast %cst_13 : f32 to vector<8x512xf32>
      %18 = arith.maximumf %16, %17 : vector<8x512xf32>
      %c0_14 = arith.constant 0 : index
      %c0_15 = arith.constant 0 : index
      %19 = vector.load %arg6[%c0_14, %c0_15] : memref<8x512xf32, #tpu.memory_space<vmem>>, vector<8x512xf32>
      tpu.vector_store %arg6[%c0_14, %c0_15], %18 {strides = array<i32>} : memref<8x512xf32, #tpu.memory_space<vmem>>, vector<8x512xf32>,
    } else {
    }
    return
  }
  func.func @transform_0(%arg0: i32, %arg1: i32, %arg2: i32) -> (i32, i32) {
    %c0_i32 = arith.constant 0 : i32
    return %arg1, %arg2 : i32, i32
  }
  func.func @transform_1(%arg0: i32, %arg1: i32, %arg2: i32) -> (i32, i32) {
    %c0_i32 = arith.constant 0 : i32
    return %arg2, %arg0 : i32, i32
  }
  func.func @transform_2(%arg0: i32, %arg1: i32, %arg2: i32) -> (i32, i32) {
    %c0_i32 = arith.constant 0 : i32
    %c0_i32_0 = arith.constant 0 : i32
    return %c0_i32, %arg0 : i32, i32
  }
  func.func @transform_3(%arg0: i32, %arg1: i32, %arg2: i32) -> (i32, i32) {
    %c0_i32 = arith.constant 0 : i32
    return %arg1, %arg0 : i32, i32
  }
}

</mosaic_0001>

<bundles_post_ra>
// kernel: move_model_forward.4
= control target key start
LH: loop header
LB: loop body
LE: loop exit
PB: predicated region body
PF: predicated region fallthrough
CT: control target
= control target key end

     0   :  { %8 = vsyncpa [#allocation3], 0  ;;  %s549_s0 = inlined_call_operand.vmem [shape: f32[104,128], index: 0, kind: input, shape index: {}]   ;;  %s550_s1 = inlined_call_operand.hbm [shape: bf16[128,128], index: 1, kind: input, shape index: {}]   ;;  %s551_s2 = inlined_call_operand.hbm [shape: f32[1,128], index: 2, kind: input, shape index: {}]   ;;  %s552_s3 = inlined_call_operand.vmem [shape: f32[104,128], index: 3, kind: output, shape index: {}]  }
   0x1   :  { %9 = vsyncpa [#allocation5], 0  ;;  %s394_s12 = smov [#allocation2]  }
   0x2   :  { %s17_s13 = sshll.u32 %s394_s12, 4  ;;  %s18_s13 = int_to_ptr.vmem [resolvable:$true] %s17_s13 }
   0x3   :  { %s358_s14 = scalar_lea.vmem %s18_s13, 1024  ;;  %p363_p1 = scmp.lt.s32.totalorder %s18_s13, %s18_s13 }
   0x4   :  { %p359_p0 = scmp.ne.s32.totalorder %s18_s13, %s358_s14  ;;  %p364_p2 = scmp.lt.s32.totalorder %s358_s14, %s358_s14 }
   0x6   :  { %p365_p3 = por %p364_p2, %p363_p1 }
   0x8   :  { %p366_p4 = pnand %p365_p3, %p359_p0 }
   0xa   :  { %369 = shalt.err (!%p366_p4)
}
   0xb   :  { %s395_s15 = smov 64   ;;  %s396_s16 = smov 4  }
   0xc   :  { %23 = dma.hbm_to_vmem [thread:$0]  %s550_s1, 1024, %s18_s13, [#allocation3], %s395_s15, %s395_s15, %s396_s16  }
   0xd   :  { %s397_s19 = smov [#allocation4]  }
   0xe   :  { %s30_s20 = sshll.u32 %s397_s19, 4  ;;  %s31_s20 = int_to_ptr.vmem [resolvable:$true] %s30_s20 }
   0xf   :  { %s378_s21 = scalar_lea.vmem %s31_s20, 16  ;;  %s382_s22 = scalar_lea.vmem %s31_s20, 32 }
  0x10   :  { %p379_p5 = scmp.ne.s32.totalorder %s31_s20, %s378_s21  ;;  %p383_p6 = scmp.lt.s32.totalorder %s31_s20, %s31_s20 }
  0x11   :  { %p384_p7 = scmp.lt.s32.totalorder %s382_s22, %s378_s21 }
  0x13   :  { %p385_p8 = por %p384_p7, %p383_p6 }
  0x15   :  { %p386_p9 = pnand %p385_p8, %p379_p5 }
  0x17   :  { %389 = shalt.err (!%p386_p9)
}
  0x18   :  { %33 = dma.hbm_to_vmem [thread:$0]  %s551_s2, 16, %s31_s20, [#allocation5]  }
  0x19   :  { %390 = dma.done.wait [#allocation3], 1024  }
  0x1a   :  { %391 = vsyncadd [#allocation3], 4294966272 }
  0x1b   :  { %392 = dma.done.wait [#allocation5], 16  }
  0x1c   :  { %393 = vsyncadd [#allocation5], 4294967280  ;;  %v398_v0 = vmov 0.0   ;;  %vm399_vm0 = vmmov 0   ;;  %v342_v1 = vld [vmem:[#allocation2 + $0x38] sm:$0xff]   ;;  %v343_v2 = vld [vmem:[#allocation2 + $0x30] sm:$0xff]  }
  0x1d   :  { %276 = vmatprep.subr.bf16.mxu0 %v398_v0  ;;  %320 = vmatprep.subr.bf16.mxu1 %v398_v0  ;;  %v344_v3 = vld [vmem:[#allocation2 + $0x28] sm:$0xff]   ;;  %v345_v4 = vld [vmem:[#allocation2 + $0x20] sm:$0xff]   ;;  %v346_v5 = vld [vmem:[#allocation2 + $0x18] sm:$0xff]  }
  0x1e   :  { %292 = vmatprep.mubr.msk.bf16.mxu0 %vm399_vm0, %v398_v0  ;;  %308 = vmatprep.mubr.msk.bf16.mxu1 %vm399_vm0, %v398_v0  ;;  %v347_v6 = vld [vmem:[#allocation2 + $0x10] sm:$0xff]   ;;  %v348_v7 = vld [vmem:[#allocation2 + $0x8] sm:$0xff]   ;;  %v349_v8 = vld [vmem:[#allocation2] sm:$0xff]  }
  0x1f   :  { %277 = vmatpush3.bf16.msra.mxu0 %v342_v1  ;;  %328 = vmatpush3.bf16.msra.mxu1 %v342_v1  ;;  %v41_v9 = vld [vmem:[%s549_s0] sm:$0xff]  ;;  %v42_v10 = vld [vmem:[%s549_s0 + $0x8] sm:$0xff]  ;;  %v43_v15 = vld [vmem:[%s549_s0 + $0x10] sm:$0xff] }
  0x20   :  { %278 = vmatprep.subr.bf16.mxu0 %v398_v0  ;;  %321 = vmatprep.subr.bf16.mxu1 %v398_v0  ;;  %v49_v11 = vld [vmem:[%s549_s0 + $0x40] sm:$0xff]  ;;  %v50_v12 = vld [vmem:[%s549_s0 + $0x48] sm:$0xff]  ;;  %v54_v13 = vpack.c.bf16 %v42_v10, %v41_v9  ;;  %v44_v16 = vld [vmem:[%s549_s0 + $0x18] sm:$0xff] }
  0x21   :  { %v58_v14 = vpack.c.bf16 %v50_v12, %v49_v11  ;;  %v51_v17 = vld [vmem:[%s549_s0 + $0x50] sm:$0xff]  ;;  %v52_v18 = vld [vmem:[%s549_s0 + $0x58] sm:$0xff]  ;;  %v55_v19 = vpack.c.bf16 %v44_v16, %v43_v15  ;;  %v45_v21 = vld [vmem:[%s549_s0 + $0x20] sm:$0xff] }
  0x22   :  { %v59_v20 = vpack.c.bf16 %v52_v18, %v51_v17  ;;  %v46_v22 = vld [vmem:[%s549_s0 + $0x28] sm:$0xff]  ;;  %v53_v23 = vld [vmem:[%s549_s0 + $0x60] sm:$0xff]  ;;  %v47_v26 = vld [vmem:[%s549_s0 + $0x30] sm:$0xff] }
  0x23   :  { %279 = vmatpush3.bf16.msra.mxu0 %v343_v2  ;;  %329 = vmatpush3.bf16.msra.mxu1 %v343_v2  ;;  %v56_v24 = vpack.c.bf16 %v46_v22, %v45_v21  ;;  %v60_v25 = vpack.c.bf16 %v53_v23, %v53_v23  ;;  %v48_v27 = vld [vmem:[%s549_s0 + $0x38] sm:$0xff]  ;;  %v495_v29 = vld [vmem:[#allocation4] ss:$0 sm:$0xff] }
  0x24   :  { %280 = vmatprep.subr.bf16.mxu0 %v398_v0  ;;  %322 = vmatprep.subr.bf16.mxu1 %v398_v0  ;;  %v57_v28 = vpack.c.bf16 %v48_v27, %v47_v26 }
  0x27   :  { %281 = vmatpush3.bf16.msra.mxu0 %v344_v3  ;;  %330 = vmatpush3.bf16.msra.mxu1 %v344_v3 }
  0x28   :  { %282 = vmatprep.subr.bf16.mxu0 %v398_v0  ;;  %323 = vmatprep.subr.bf16.mxu1 %v398_v0 }
  0x2b   :  { %283 = vmatpush3.bf16.msra.mxu0 %v345_v4  ;;  %331 = vmatpush3.bf16.msra.mxu1 %v345_v4 }
  0x2c   :  { %284 = vmatprep.subr.bf16.mxu0 %v398_v0  ;;  %324 = vmatprep.subr.bf16.mxu1 %v398_v0 }
  0x2f   :  { %285 = vmatpush3.bf16.msra.mxu0 %v346_v5  ;;  %332 = vmatpush3.bf16.msra.mxu1 %v346_v5 }
  0x30   :  { %286 = vmatprep.subr.bf16.mxu0 %v398_v0  ;;  %325 = vmatprep.subr.bf16.mxu1 %v398_v0 }
  0x33   :  { %287 = vmatpush3.bf16.msra.mxu0 %v347_v6  ;;  %333 = vmatpush3.bf16.msra.mxu1 %v347_v6 }
  0x34   :  { %288 = vmatprep.subr.bf16.mxu0 %v398_v0  ;;  %326 = vmatprep.subr.bf16.mxu1 %v398_v0 }
  0x37   :  { %289 = vmatpush3.bf16.msra.mxu0 %v348_v7  ;;  %334 = vmatpush3.bf16.msra.mxu1 %v348_v7 }
  0x38   :  { %290 = vmatprep.subr.bf16.mxu0 %v398_v0  ;;  %327 = vmatprep.subr.bf16.mxu1 %v398_v0 }
  0x3b   :  { %291 = vmatpush3.bf16.msra.mxu0 %v349_v8  ;;  %335 = vmatpush3.bf16.msra.mxu1 %v349_v8 }
  0x3e   :  { %293 = vmatmul.mubr.bf16.vlgmr.msra.gmra.mxu0 %v54_v13  ;;  %309 = vmatmul.mubr.bf16.vlgmr.msra.gmra.mxu1 %v58_v14 }
  0x3f   :  { %296 = vmatprep.mubr.msk.bf16.mxu0 %vm399_vm0, %v398_v0  ;;  %312 = vmatprep.mubr.msk.bf16.mxu1 %vm399_vm0, %v398_v0 }
  0x46   :  { %297 = vmatmul.mubr.bf16.gmra.mxu0 %v55_v19  ;;  %313 = vmatmul.mubr.bf16.gmra.mxu1 %v59_v20 }
  0x47   :  { %300 = vmatprep.mubr.msk.bf16.mxu0 %vm399_vm0, %v398_v0  ;;  %316 = vmatprep.mubr.msk.bf16.mxu1 %vm399_vm0, %v398_v0 }
  0x4e   :  { %301 = vmatmul.mubr.bf16.gmra.mxu0 %v56_v24  ;;  %317 = vmatmul.mubr.bf16.gmra.mxu1 %v60_v25 }
  0x4f   :  { %304 = vmatprep.mubr.msk.bf16.mxu0 %vm399_vm0, %v398_v0 }
  0x56   :  { %305 = vmatmul.mubr.bf16.gmra.mxu0 %v57_v28 }
  0xfe   :  { %v166_v30 = vpop.f32.mrf.mxu0  ;;  %v198_v31 = vpop.f32.mrf.mxu1 }
  0xff   :  { %v167_v32 = vadd.f32 %v495_v29, %v166_v30  ;;  %v199_v33 = vadd.f32 %v495_v29, %v198_v31 }
 0x100   :  { %v294_v34 = vpop.f32.mrf.mxu0  ;;  %v310_v35 = vpop.f32.mrf.mxu1 }
 0x101   :  { %v220_v36 = vmax.f32 %v167_v32, 0.0  ;;  %v228_v37 = vmax.f32 %v199_v33, 0.0 }
 0x102   :  { %v169_v38 = vpop.f32.mrf.mxu0  ;;  %v201_v39 = vpop.f32.mrf.mxu1 }
 0x103   :  { %233 = vst [vmem:[%s552_s3] sm:$0xff] %v220_v36  ;;  %v170_v40 = vadd.f32 %v495_v29, %v169_v38  ;;  %241 = vst [vmem:[%s552_s3 + $0x40] sm:$0xff] %v228_v37  ;;  %v202_v41 = vadd.f32 %v495_v29, %v201_v39 }
 0x104   :  { %v295_v42 = vpop.f32.mrf.mxu0  ;;  %v311_v43 = vpop.f32.mrf.mxu1 }
 0x105   :  { %v221_v44 = vmax.f32 %v170_v40, 0.0  ;;  %v229_v45 = vmax.f32 %v202_v41, 0.0 }
 0x106   :  { %v174_v46 = vpop.f32.mrf.mxu0  ;;  %v206_v47 = vpop.f32.mrf.mxu1 }
 0x107   :  { %234 = vst [vmem:[%s552_s3 + $0x8] sm:$0xff] %v221_v44  ;;  %v175_v48 = vadd.f32 %v495_v29, %v174_v46  ;;  %242 = vst [vmem:[%s552_s3 + $0x48] sm:$0xff] %v229_v45  ;;  %v207_v49 = vadd.f32 %v495_v29, %v206_v47 }
 0x108   :  { %v298_v50 = vpop.f32.mrf.mxu0  ;;  %v314_v51 = vpop.f32.mrf.mxu1 }
 0x109   :  { %v222_v52 = vmax.f32 %v175_v48, 0.0  ;;  %v230_v53 = vmax.f32 %v207_v49, 0.0 }
 0x10a   :  { %v177_v54 = vpop.f32.mrf.mxu0  ;;  %v209_v55 = vpop.f32.mrf.mxu1 }
 0x10b   :  { %235 = vst [vmem:[%s552_s3 + $0x10] sm:$0xff] %v222_v52  ;;  %v178_v56 = vadd.f32 %v495_v29, %v177_v54  ;;  %243 = vst [vmem:[%s552_s3 + $0x50] sm:$0xff] %v230_v53  ;;  %v210_v57 = vadd.f32 %v495_v29, %v209_v55 }
 0x10c   :  { %v299_v58 = vpop.f32.mrf.mxu0  ;;  %v315_v59 = vpop.f32.mrf.mxu1 }
 0x10d   :  { %v223_v60 = vmax.f32 %v178_v56, 0.0  ;;  %v231_v61 = vmax.f32 %v210_v57, 0.0 }
 0x10e   :  { %v182_v62 = vpop.f32.mrf.mxu0  ;;  %v214_v63 = vpop.f32.mrf.mxu1 }
 0x10f   :  { %236 = vst [vmem:[%s552_s3 + $0x18] sm:$0xff] %v223_v60  ;;  %v183_v0 = vadd.f32 %v495_v29, %v182_v62  ;;  %244 = vst [vmem:[%s552_s3 + $0x58] sm:$0xff] %v231_v61  ;;  %v215_v1 = vadd.f32 %v495_v29, %v214_v63 }
 0x110   :  { %v302_v2 = vpop.f32.mrf.mxu0  ;;  %v318_v3 = vpop.f32.mrf.mxu1 }
 0x111   :  { %v224_v4 = vmax.f32 %v183_v0, 0.0  ;;  %v232_v5 = vmax.f32 %v215_v1, 0.0 }
 0x112   :  { %v185_v6 = vpop.f32.mrf.mxu0  ;;  %v217_v7 = vpop.f32.mrf.mxu1 }
 0x113   :  { %237 = vst [vmem:[%s552_s3 + $0x20] sm:$0xff] %v224_v4  ;;  %v186_v8 = vadd.f32 %v495_v29, %v185_v6  ;;  %245 = vst [vmem:[%s552_s3 + $0x60] sm:$0xff] %v232_v5 }
 0x114   :  { %v303_v9 = vpop.f32.mrf.mxu0  ;;  %v319_v10 = vpop.f32.mrf.mxu1 }
 0x115   :  { %v225_v11 = vmax.f32 %v186_v8, 0.0 }
 0x116   :  { %v190_v12 = vpop.f32.mrf.mxu0 }
 0x117   :  { %238 = vst [vmem:[%s552_s3 + $0x28] sm:$0xff] %v225_v11  ;;  %v191_v13 = vadd.f32 %v495_v29, %v190_v12 }
 0x118   :  { %v306_v14 = vpop.f32.mrf.mxu0 }
 0x119   :  { %v226_v15 = vmax.f32 %v191_v13, 0.0 }
 0x11a   :  { %v193_v16 = vpop.f32.mrf.mxu0 }
 0x11b   :  { %239 = vst [vmem:[%s552_s3 + $0x30] sm:$0xff] %v226_v15  ;;  %v194_v17 = vadd.f32 %v495_v29, %v193_v16 }
 0x11c   :  { %v307_v18 = vpop.f32.mrf.mxu0 }
 0x11d   :  { %v227_v19 = vmax.f32 %v194_v17, 0.0 }
 0x11f   :  { %240 = vst [vmem:[%s552_s3 + $0x38] sm:$0xff] %v227_v19 }
 0x120   :  { %250 = vsyncpa [#allocation3], 1 }
 0x121   :  { %251 = vsyncpa [#allocation5], 1 }

// kernel: move_model_forward.5
= control target key start
LH: loop header
LB: loop body
LE: loop exit
PB: predicated region body
PF: predicated region fallthrough
CT: control target
= control target key end

     0   :  { %8 = vsyncpa [#allocation3], 0  ;;  %s909_s0 = inlined_call_operand.vmem [shape: f32[72,512], index: 0, kind: input, shape index: {}]   ;;  %s910_s1 = inlined_call_operand.hbm [shape: bf16[512,128], index: 1, kind: input, shape index: {}]   ;;  %s911_s2 = inlined_call_operand.hbm [shape: f32[1,128], index: 2, kind: input, shape index: {}]   ;;  %s912_s3 = inlined_call_operand.vmem [shape: f32[72,128], index: 3, kind: output, shape index: {}]  }
   0x1   :  { %9 = vsyncpa [#allocation5], 0  ;;  %s733_s12 = smov [#allocation2]  }
   0x2   :  { %s17_s13 = sshll.u32 %s733_s12, 4  ;;  %s18_s13 = int_to_ptr.vmem [resolvable:$true] %s17_s13 }
   0x3   :  { %s697_s14 = scalar_lea.vmem %s18_s13, 4096  ;;  %p702_p1 = scmp.lt.s32.totalorder %s18_s13, %s18_s13 }
   0x4   :  { %p698_p0 = scmp.ne.s32.totalorder %s18_s13, %s697_s14  ;;  %p703_p2 = scmp.lt.s32.totalorder %s697_s14, %s697_s14 }
   0x6   :  { %p704_p3 = por %p703_p2, %p702_p1 }
   0x8   :  { %p705_p4 = pnand %p704_p3, %p698_p0 }
   0xa   :  { %708 = shalt.err (!%p705_p4)
}
   0xb   :  { %s734_s15 = smov 64   ;;  %s735_s16 = smov 4  }
   0xc   :  { %23 = dma.hbm_to_vmem [thread:$0]  %s910_s1, 4096, %s18_s13, [#allocation3], %s734_s15, %s734_s15, %s735_s16  }
   0xd   :  { %s736_s19 = smov [#allocation4]  }
   0xe   :  { %s30_s20 = sshll.u32 %s736_s19, 4  ;;  %s31_s20 = int_to_ptr.vmem [resolvable:$true] %s30_s20 }
   0xf   :  { %s717_s21 = scalar_lea.vmem %s31_s20, 16  ;;  %s721_s22 = scalar_lea.vmem %s31_s20, 32 }
  0x10   :  { %p718_p5 = scmp.ne.s32.totalorder %s31_s20, %s717_s21  ;;  %p722_p6 = scmp.lt.s32.totalorder %s31_s20, %s31_s20 }
  0x11   :  { %p723_p7 = scmp.lt.s32.totalorder %s721_s22, %s717_s21 }
  0x13   :  { %p724_p8 = por %p723_p7, %p722_p6 }
  0x15   :  { %p725_p9 = pnand %p724_p8, %p718_p5 }
  0x17   :  { %728 = shalt.err (!%p725_p9)
}
  0x18   :  { %33 = dma.hbm_to_vmem [thread:$0]  %s911_s2, 16, %s31_s20, [#allocation5]  }
  0x19   :  { %729 = dma.done.wait [#allocation3], 4096  }
  0x1a   :  { %730 = vsyncadd [#allocation3], 4294963200 }
  0x1b   :  { %731 = dma.done.wait [#allocation5], 16  }
  0x1c   :  { %732 = vsyncadd [#allocation5], 4294967280  ;;  %v657_v0 = vld [vmem:[#allocation2 + $0x78] sm:$0xff]   ;;  %v661_v4 = vld [vmem:[#allocation2 + $0x70] sm:$0xff]  }
  0x1d   :  { %v658_v1 = vld [vmem:[#allocation2 + $0xf8] sm:$0xff]   ;;  %561 = vmatprep.subr.bf16.mxu0 %v657_v0  ;;  %v662_v5 = vld [vmem:[#allocation2 + $0xf0] sm:$0xff]   ;;  %v665_v8 = vld [vmem:[#allocation2 + $0x68] sm:$0xff]  }
  0x1e   :  { %v659_v2 = vld [vmem:[#allocation2 + $0x38] sm:$0xff]   ;;  %607 = vmatprep.subr.bf16.mxu1 %v658_v1  ;;  %v663_v6 = vld [vmem:[#allocation2 + $0x30] sm:$0xff]   ;;  %v666_v9 = vld [vmem:[#allocation2 + $0xe8] sm:$0xff]  }
  0x1f   :  { %v660_v3 = vld [vmem:[#allocation2 + $0xb8] sm:$0xff]   ;;  %562 = vmatpush3.bf16.msra.mxu0 %v659_v2  ;;  %v664_v7 = vld [vmem:[#allocation2 + $0xb0] sm:$0xff]   ;;  %v667_v10 = vld [vmem:[#allocation2 + $0x28] sm:$0xff]  }
  0x20   :  { %608 = vmatpush3.bf16.msra.mxu1 %v660_v3  ;;  %563 = vmatprep.subr.bf16.mxu0 %v661_v4  ;;  %v668_v11 = vld [vmem:[#allocation2 + $0xa8] sm:$0xff]   ;;  %v669_v12 = vld [vmem:[#allocation2 + $0x60] sm:$0xff]   ;;  %v673_v16 = vld [vmem:[#allocation2 + $0x58] sm:$0xff]  }
  0x21   :  { %609 = vmatprep.subr.bf16.mxu1 %v662_v5  ;;  %v670_v13 = vld [vmem:[#allocation2 + $0xe0] sm:$0xff]   ;;  %v674_v17 = vld [vmem:[#allocation2 + $0xd8] sm:$0xff]   ;;  %v677_v20 = vld [vmem:[#allocation2 + $0x50] sm:$0xff]  }
  0x22   :  { %v671_v14 = vld [vmem:[#allocation2 + $0x20] sm:$0xff]   ;;  %v675_v18 = vld [vmem:[#allocation2 + $0x18] sm:$0xff]   ;;  %v678_v21 = vld [vmem:[#allocation2 + $0xd0] sm:$0xff]  }
  0x23   :  { %564 = vmatpush3.bf16.msra.mxu0 %v663_v6  ;;  %v672_v15 = vld [vmem:[#allocation2 + $0xa0] sm:$0xff]   ;;  %v676_v19 = vld [vmem:[#allocation2 + $0x98] sm:$0xff]   ;;  %v679_v22 = vld [vmem:[#allocation2 + $0x10] sm:$0xff]  }
  0x24   :  { %610 = vmatpush3.bf16.msra.mxu1 %v664_v7  ;;  %565 = vmatprep.subr.bf16.mxu0 %v665_v8  ;;  %v680_v23 = vld [vmem:[#allocation2 + $0x90] sm:$0xff]   ;;  %v681_v24 = vld [vmem:[#allocation2 + $0x48] sm:$0xff]   ;;  %v685_v28 = vld [vmem:[#allocation2 + $0x40] sm:$0xff]  }
  0x25   :  { %611 = vmatprep.subr.bf16.mxu1 %v666_v9  ;;  %v682_v25 = vld [vmem:[#allocation2 + $0xc8] sm:$0xff]   ;;  %v686_v29 = vld [vmem:[#allocation2 + $0xc0] sm:$0xff]   ;;  %v44_v34 = vld [vmem:[%s909_s0 + $0x18] sm:$0xff] }
  0x26   :  { %v683_v26 = vld [vmem:[#allocation2 + $0x8] sm:$0xff]   ;;  %v687_v30 = vld [vmem:[#allocation2] sm:$0xff]   ;;  %v48_v36 = vld [vmem:[%s909_s0 + $0x38] sm:$0xff] }
  0x27   :  { %566 = vmatpush3.bf16.msra.mxu0 %v667_v10  ;;  %v684_v27 = vld [vmem:[#allocation2 + $0x88] sm:$0xff]   ;;  %v688_v31 = vld [vmem:[#allocation2 + $0x80] sm:$0xff]   ;;  %v80_v39 = vpack.c.bf16 %v48_v36, %v44_v34  ;;  %v43_v41 = vld [vmem:[%s909_s0 + $0x10] sm:$0xff] }
  0x28   :  { %612 = vmatpush3.bf16.msra.mxu1 %v668_v11  ;;  %567 = vmatprep.subr.bf16.mxu0 %v669_v12  ;;  %v42_v32 = vld [vmem:[%s909_s0 + $0x8] sm:$0xff]  ;;  %v41_v37 = vld [vmem:[%s909_s0] sm:$0xff]  ;;  %v47_v42 = vld [vmem:[%s909_s0 + $0x30] sm:$0xff] }
  0x29   :  { %613 = vmatprep.subr.bf16.mxu1 %v670_v13  ;;  %v46_v33 = vld [vmem:[%s909_s0 + $0x28] sm:$0xff]  ;;  %v45_v38 = vld [vmem:[%s909_s0 + $0x20] sm:$0xff]  ;;  %v79_v44 = vpack.c.bf16 %v47_v42, %v43_v41  ;;  %v52_v46 = vld [vmem:[%s909_s0 + $0x58] sm:$0xff]  ;;  %464 = vmatprep.mubr.bf16.mxu1 %v80_v39 }
  0x2a   :  { %v78_v35 = vpack.c.bf16 %v46_v33, %v42_v32  ;;  %v77_v40 = vpack.c.bf16 %v45_v38, %v41_v37  ;;  %v50_v43 = vld [vmem:[%s909_s0 + $0x48] sm:$0xff]  ;;  %v56_v47 = vld [vmem:[%s909_s0 + $0x78] sm:$0xff]  ;;  %v49_v50 = vld [vmem:[%s909_s0 + $0x40] sm:$0xff] }
  0x2b   :  { %568 = vmatpush3.bf16.msra.mxu0 %v671_v14  ;;  %v54_v45 = vld [vmem:[%s909_s0 + $0x68] sm:$0xff]  ;;  %v84_v49 = vpack.c.bf16 %v56_v47, %v52_v46  ;;  %v53_v51 = vld [vmem:[%s909_s0 + $0x60] sm:$0xff]  ;;  %v51_v52 = vld [vmem:[%s909_s0 + $0x50] sm:$0xff] }
  0x2c   :  { %614 = vmatpush3.bf16.msra.mxu1 %v672_v15  ;;  %569 = vmatprep.subr.bf16.mxu0 %v673_v16  ;;  %v82_v48 = vpack.c.bf16 %v54_v45, %v50_v43  ;;  %v55_v53 = vld [vmem:[%s909_s0 + $0x70] sm:$0xff]  ;;  %v58_v54 = vld [vmem:[%s909_s0 + $0x88] sm:$0xff]  ;;  %v60_v56 = vld [vmem:[%s909_s0 + $0x98] sm:$0xff]  ;;  %v81_v58 = vpack.c.bf16 %v53_v51, %v49_v50 }
  0x2d   :  { %615 = vmatprep.subr.bf16.mxu1 %v674_v17  ;;  %392 = vmatprep.mubr.bf16.mxu0 %v78_v35  ;;  %v62_v55 = vld [vmem:[%s909_s0 + $0xa8] sm:$0xff]  ;;  %v64_v57 = vld [vmem:[%s909_s0 + $0xb8] sm:$0xff]  ;;  %v83_v59 = vpack.c.bf16 %v55_v53, %v51_v52  ;;  %v57_v62 = vld [vmem:[%s909_s0 + $0x80] sm:$0xff] }
  0x2e   :  { %v86_v60 = vpack.c.bf16 %v62_v55, %v58_v54  ;;  %v88_v61 = vpack.c.bf16 %v64_v57, %v60_v56  ;;  %v61_v63 = vld [vmem:[%s909_s0 + $0xa0] sm:$0xff]  ;;  %v59_v0 = vld [vmem:[%s909_s0 + $0x90] sm:$0xff]  ;;  %v66_v2 = vld [vmem:[%s909_s0 + $0xc8] sm:$0xff] }
  0x2f   :  { %570 = vmatpush3.bf16.msra.mxu0 %v675_v18  ;;  %v63_v1 = vld [vmem:[%s909_s0 + $0xb0] sm:$0xff]  ;;  %v70_v3 = vld [vmem:[%s909_s0 + $0xe8] sm:$0xff]  ;;  %v68_v4 = vld [vmem:[%s909_s0 + $0xd8] sm:$0xff]  ;;  %v85_v6 = vpack.c.bf16 %v61_v63, %v57_v62 }
  0x30   :  { %616 = vmatpush3.bf16.msra.mxu1 %v676_v19  ;;  %571 = vmatprep.subr.bf16.mxu0 %v677_v20  ;;  %v72_v5 = vld [vmem:[%s909_s0 + $0xf8] sm:$0xff]  ;;  %v87_v7 = vpack.c.bf16 %v63_v1, %v59_v0  ;;  %v90_v8 = vpack.c.bf16 %v70_v3, %v66_v2  ;;  %v65_v10 = vld [vmem:[%s909_s0 + $0xc0] sm:$0xff]  ;;  %v67_v12 = vld [vmem:[%s909_s0 + $0xd0] sm:$0xff] }
  0x31   :  { %617 = vmatprep.subr.bf16.mxu1 %v678_v21  ;;  %v92_v9 = vpack.c.bf16 %v72_v5, %v68_v4  ;;  %v69_v11 = vld [vmem:[%s909_s0 + $0xe0] sm:$0xff]  ;;  %v71_v13 = vld [vmem:[%s909_s0 + $0xf0] sm:$0xff]  ;;  %v74_v14 = vld [vmem:[%s909_s0 + $0x108] sm:$0xff] }
  0x32   :  { %v76_v15 = vld [vmem:[%s909_s0 + $0x118] sm:$0xff]  ;;  %v89_v16 = vpack.c.bf16 %v69_v11, %v65_v10  ;;  %v91_v17 = vpack.c.bf16 %v71_v13, %v67_v12  ;;  %v94_v18 = vpack.c.bf16 %v74_v14, %v74_v14  ;;  %v73_v20 = vld [vmem:[%s909_s0 + $0x100] sm:$0xff]  ;;  %v75_v21 = vld [vmem:[%s909_s0 + $0x110] sm:$0xff] }
  0x33   :  { %572 = vmatpush3.bf16.msra.mxu0 %v679_v22  ;;  %v96_v19 = vpack.c.bf16 %v76_v15, %v76_v15  ;;  %v93_v22 = vpack.c.bf16 %v73_v20, %v73_v20 }
  0x34   :  { %618 = vmatpush3.bf16.msra.mxu1 %v680_v23  ;;  %573 = vmatprep.subr.bf16.mxu0 %v681_v24  ;;  %v95_v23 = vpack.c.bf16 %v75_v21, %v75_v21 }
  0x35   :  { %619 = vmatprep.subr.bf16.mxu1 %v682_v25 }
  0x37   :  { %574 = vmatpush3.bf16.msra.mxu0 %v683_v26  ;;  %v871_v26 = vld [vmem:[#allocation4] ss:$0 sm:$0xff] }
  0x38   :  { %620 = vmatpush3.bf16.msra.mxu1 %v684_v27  ;;  %575 = vmatprep.subr.bf16.mxu0 %v685_v28 }
  0x39   :  { %621 = vmatprep.subr.bf16.mxu1 %v686_v29 }
  0x3b   :  { %576 = vmatpush3.bf16.msra.mxu0 %v687_v30 }
  0x3c   :  { %622 = vmatpush3.bf16.msra.mxu1 %v688_v31 }
  0x3e   :  { %393 = vmatmul.mubr.bf16.vlgmr.msra.gmra.mxu0 %v77_v40 }
  0x3f   :  { %465 = vmatmul.mubr.bf16.vlgmr.msra.gmra.mxu1 %v79_v44  ;;  %400 = vmatprep.mubr.bf16.mxu0 %v82_v48 }
  0x40   :  { %472 = vmatprep.mubr.bf16.mxu1 %v84_v49 }
  0x46   :  { %401 = vmatmul.mubr.bf16.gmra.mxu0 %v81_v58 }
  0x47   :  { %473 = vmatmul.mubr.bf16.gmra.mxu1 %v83_v59  ;;  %408 = vmatprep.mubr.bf16.mxu0 %v86_v60 }
  0x48   :  { %480 = vmatprep.mubr.bf16.mxu1 %v88_v61 }
  0x4e   :  { %409 = vmatmul.mubr.bf16.gmra.mxu0 %v85_v6 }
  0x4f   :  { %481 = vmatmul.mubr.bf16.gmra.mxu1 %v87_v7  ;;  %416 = vmatprep.mubr.bf16.mxu0 %v90_v8 }
  0x50   :  { %488 = vmatprep.mubr.bf16.mxu1 %v92_v9 }
  0x56   :  { %417 = vmatmul.mubr.bf16.gmra.mxu0 %v89_v16 }
  0x57   :  { %489 = vmatmul.mubr.bf16.gmra.mxu1 %v91_v17  ;;  %424 = vmatprep.mubr.bf16.mxu0 %v94_v18 }
  0x58   :  { %496 = vmatprep.mubr.bf16.mxu1 %v96_v19 }
  0x5e   :  { %425 = vmatmul.mubr.bf16.gmra.mxu0 %v93_v22 }
  0x5f   :  { %497 = vmatmul.mubr.bf16.gmra.mxu1 %v95_v23 }
  0xfe   :  { %v577_v24 = vpop.f32.mrf.mxu0 }
  0xff   :  { %v623_v25 = vpop.f32.mrf.mxu1 }
 0x100   :  { %v578_v27 = vpop.f32.mrf.mxu0 }
 0x101   :  { %v579_v28 = vadd.f32 %v578_v27, %v577_v24  ;;  %v624_v29 = vpop.f32.mrf.mxu1 }
 0x102   :  { %v580_v30 = vpop.f32.mrf.mxu0  ;;  %v625_v32 = vadd.f32 %v624_v29, %v623_v25 }
 0x103   :  { %v395_v31 = vadd.f32 %v579_v28, %v871_v26  ;;  %v626_v33 = vpop.f32.mrf.mxu1 }
 0x104   :  { %v581_v34 = vpop.f32.mrf.mxu0 }
 0x105   :  { %v467_v35 = vadd.f32 %v625_v32, %v395_v31  ;;  %v582_v36 = vadd.f32 %v581_v34, %v580_v30  ;;  %v627_v37 = vpop.f32.mrf.mxu1 }
 0x106   :  { %v583_v38 = vpop.f32.mrf.mxu0  ;;  %v628_v41 = vadd.f32 %v627_v37, %v626_v33 }
 0x107   :  { %v504_v39 = vmax.f32 %v467_v35, 0.0  ;;  %v398_v40 = vadd.f32 %v582_v36, %v871_v26  ;;  %v629_v42 = vpop.f32.mrf.mxu1 }
 0x108   :  { %v584_v43 = vpop.f32.mrf.mxu0 }
 0x109   :  { %513 = vst [vmem:[%s912_s3] sm:$0xff] %v504_v39  ;;  %v470_v44 = vadd.f32 %v628_v41, %v398_v40  ;;  %v585_v45 = vadd.f32 %v584_v43, %v583_v38  ;;  %v630_v46 = vpop.f32.mrf.mxu1 }
 0x10a   :  { %v586_v47 = vpop.f32.mrf.mxu0  ;;  %v631_v50 = vadd.f32 %v630_v46, %v629_v42 }
 0x10b   :  { %v505_v48 = vmax.f32 %v470_v44, 0.0  ;;  %v403_v49 = vadd.f32 %v585_v45, %v871_v26  ;;  %v632_v51 = vpop.f32.mrf.mxu1 }
 0x10c   :  { %v587_v52 = vpop.f32.mrf.mxu0 }
 0x10d   :  { %514 = vst [vmem:[%s912_s3 + $0x8] sm:$0xff] %v505_v48  ;;  %v475_v53 = vadd.f32 %v631_v50, %v403_v49  ;;  %v588_v54 = vadd.f32 %v587_v52, %v586_v47  ;;  %v633_v55 = vpop.f32.mrf.mxu1 }
 0x10e   :  { %v589_v56 = vpop.f32.mrf.mxu0  ;;  %v634_v59 = vadd.f32 %v633_v55, %v632_v51 }
 0x10f   :  { %v506_v57 = vmax.f32 %v475_v53, 0.0  ;;  %v406_v58 = vadd.f32 %v588_v54, %v871_v26  ;;  %v635_v60 = vpop.f32.mrf.mxu1 }
 0x110   :  { %v590_v61 = vpop.f32.mrf.mxu0 }
 0x111   :  { %515 = vst [vmem:[%s912_s3 + $0x10] sm:$0xff] %v506_v57  ;;  %v478_v62 = vadd.f32 %v634_v59, %v406_v58  ;;  %v591_v63 = vadd.f32 %v590_v61, %v589_v56  ;;  %v636_v0 = vpop.f32.mrf.mxu1 }
 0x112   :  { %v592_v1 = vpop.f32.mrf.mxu0  ;;  %v637_v4 = vadd.f32 %v636_v0, %v635_v60 }
 0x113   :  { %v507_v2 = vmax.f32 %v478_v62, 0.0  ;;  %v411_v3 = vadd.f32 %v591_v63, %v871_v26  ;;  %v638_v5 = vpop.f32.mrf.mxu1 }
 0x114   :  { %v593_v6 = vpop.f32.mrf.mxu0 }
 0x115   :  { %516 = vst [vmem:[%s912_s3 + $0x18] sm:$0xff] %v507_v2  ;;  %v483_v7 = vadd.f32 %v637_v4, %v411_v3  ;;  %v594_v8 = vadd.f32 %v593_v6, %v592_v1  ;;  %v639_v9 = vpop.f32.mrf.mxu1 }
 0x116   :  { %v595_v10 = vpop.f32.mrf.mxu0  ;;  %v640_v13 = vadd.f32 %v639_v9, %v638_v5 }
 0x117   :  { %v508_v11 = vmax.f32 %v483_v7, 0.0  ;;  %v414_v12 = vadd.f32 %v594_v8, %v871_v26  ;;  %v641_v14 = vpop.f32.mrf.mxu1 }
 0x118   :  { %v596_v15 = vpop.f32.mrf.mxu0 }
 0x119   :  { %517 = vst [vmem:[%s912_s3 + $0x20] sm:$0xff] %v508_v11  ;;  %v486_v16 = vadd.f32 %v640_v13, %v414_v12  ;;  %v597_v17 = vadd.f32 %v596_v15, %v595_v10  ;;  %v642_v18 = vpop.f32.mrf.mxu1 }
 0x11a   :  { %v598_v19 = vpop.f32.mrf.mxu0  ;;  %v643_v22 = vadd.f32 %v642_v18, %v641_v14 }
 0x11b   :  { %v509_v20 = vmax.f32 %v486_v16, 0.0  ;;  %v419_v21 = vadd.f32 %v597_v17, %v871_v26  ;;  %v644_v23 = vpop.f32.mrf.mxu1 }
 0x11c   :  { %v599_v24 = vpop.f32.mrf.mxu0 }
 0x11d   :  { %518 = vst [vmem:[%s912_s3 + $0x28] sm:$0xff] %v509_v20  ;;  %v491_v25 = vadd.f32 %v643_v22, %v419_v21  ;;  %v600_v27 = vadd.f32 %v599_v24, %v598_v19  ;;  %v645_v28 = vpop.f32.mrf.mxu1 }
 0x11e   :  { %v601_v29 = vpop.f32.mrf.mxu0  ;;  %v646_v32 = vadd.f32 %v645_v28, %v644_v23 }
 0x11f   :  { %v510_v30 = vmax.f32 %v491_v25, 0.0  ;;  %v422_v31 = vadd.f32 %v600_v27, %v871_v26  ;;  %v647_v33 = vpop.f32.mrf.mxu1 }
 0x120   :  { %v602_v34 = vpop.f32.mrf.mxu0 }
 0x121   :  { %519 = vst [vmem:[%s912_s3 + $0x30] sm:$0xff] %v510_v30  ;;  %v494_v35 = vadd.f32 %v646_v32, %v422_v31  ;;  %v603_v36 = vadd.f32 %v602_v34, %v601_v29  ;;  %v648_v37 = vpop.f32.mrf.mxu1 }
 0x122   :  { %v604_v38 = vpop.f32.mrf.mxu0  ;;  %v649_v41 = vadd.f32 %v648_v37, %v647_v33 }
 0x123   :  { %v511_v39 = vmax.f32 %v494_v35, 0.0  ;;  %v427_v40 = vadd.f32 %v603_v36, %v871_v26  ;;  %v650_v42 = vpop.f32.mrf.mxu1 }
 0x124   :  { %v605_v43 = vpop.f32.mrf.mxu0 }
 0x125   :  { %520 = vst [vmem:[%s912_s3 + $0x38] sm:$0xff] %v511_v39  ;;  %v499_v44 = vadd.f32 %v649_v41, %v427_v40  ;;  %v651_v45 = vpop.f32.mrf.mxu1 }
 0x127   :  { %v512_v46 = vmax.f32 %v499_v44, 0.0 }
 0x129   :  { %521 = vst [vmem:[%s912_s3 + $0x40] sm:$0xff] %v512_v46 }
 0x12a   :  { %526 = vsyncpa [#allocation3], 1 }
 0x12b   :  { %527 = vsyncpa [#allocation5], 1 }

// kernel: move_model_forward.7
= control target key start
LH: loop header
LB: loop body
LE: loop exit
PB: predicated region body
PF: predicated region fallthrough
CT: control target
= control target key end

     0   :  { %s3541_s12 = smov 0   ;;  %s3543_s13 = smov 0   ;;  %s4445_s0 = inlined_call_operand.vmem [shape: f32[8,1024], index: 0, kind: input, shape index: {}]   ;;  %s4446_s1 = inlined_call_operand.vmem [shape: bf16[1024,1024], index: 1, kind: input, shape index: {}]   ;;  %s4447_s2 = inlined_call_operand.vmem [shape: f32[1,1024], index: 2, kind: input, shape index: {}]   ;;  %s4448_s3 = inlined_call_operand.vmem [shape: f32[8,1024], index: 3, kind: output, shape index: {}]  }
   0x1   :  { %s3545_s14 = smov 0   ;;  %s3547_s15 = smov 0  }
   0x2   :  { %s3549_s16 = smov 0  }
   0x3 LB: > { %s25_s17 = sadd.s32 1, %s3515_s15  ;;  %p65_p1 = scmp.ne.s32.totalorder %s3507_s13, %s3503_s12  ;;  %s3519_s16 = sphi %s3549_s16, %s13_s16   ;;  %s3515_s15 = sphi %s3547_s15, %s4452_s15   ;;  %s3511_s14 = sphi %s3545_s14, %s4451_s14   ;;  %s3507_s13 = sphi %s3543_s13, %s4450_s13   ;;  %s3503_s12 = sphi %s3541_s12, %s4449_s12  }
   0x4   : > { %p27_p0 = scmp.ge.s32.totalorder %s25_s17, 2  ;;  %p66_p2 = scmp.eq.s32.totalorder %s3519_s16, 0 }
   0x5   : > { %s58_s19 = sadd.s32 1, %s3507_s13  ;;  %p2789_p5 = scmp.ge.s32.totalorder %s3519_s16, 2 }
   0x6   : > { %s4454_s17 = smov (%p27_p0, %s25_s17), 0  ;;  %p67_p3 = por %p66_p2, %p65_p1 }
   0x7   : > { %s55_s18 = ssub.s32 %s3515_s15, %s4454_s17  ;;  %153 = sbr.rel (%p2789_p5) target bundleno = 144 (0x90), region = 20 }
   0x8   : > { %p56_p4 = scmp.eq.s32.totalorder %s55_s18, 0 }
   0xa   : > { %s3576_s20 = scalar_select %p56_p4, %s3507_s13, %s58_s19  }
   0xc   : > { %156 = sbr.rel (!%p67_p3) target bundleno = 144 (0x90), region = 24  ;;  %s158_s21 = sand.u32 (%p67_p3), 1, %s3507_s13  }
   0xd   : > { %s3056_s22 = sshll.u32 (%p67_p3), %s3515_s15, 4  ;;  %s2790_s23 = sshll.u32 (%p67_p3), %s158_s21, 11 }
   0xe   : > { %s3584_s26 = scalar_lea.vmem (%p67_p3), %s4446_s1, %s3056_s22  ;;  %s3589_s27 = scalar_lea.vmem (%p67_p3), [#allocation2], %s2790_s23 }
   0xf   : > { %v176_v0 = vld [vmem:[%s3584_s26] sm:$0xff] (%p67_p3)  ;;  %v178_v1 = vld [vmem:[%s3584_s26 + $0x8] sm:$0xff] (%p67_p3) }
  0x10   : > { %v180_v2 = vld [vmem:[%s3584_s26 + $0x20] sm:$0xff] (%p67_p3)  ;;  %177 = vst [vmem:[%s3589_s27] sm:$0xff] (%p67_p3), %v176_v0  ;;  %179 = vst [vmem:[%s3589_s27 + $0x8] sm:$0xff] (%p67_p3), %v178_v1  ;;  %v182_v3 = vld [vmem:[%s3584_s26 + $0x28] sm:$0xff] (%p67_p3) }
  0x11   : > { %181 = vst [vmem:[%s3589_s27 + $0x10] sm:$0xff] %v180_v2  ;;  %v184_v4 = vld [vmem:[%s3584_s26 + $0x40] sm:$0xff]  ;;  %v186_v5 = vld [vmem:[%s3584_s26 + $0x48] sm:$0xff]  ;;  %183 = vst [vmem:[%s3589_s27 + $0x18] sm:$0xff] %v182_v3 }
  0x12   : > { %185 = vst [vmem:[%s3589_s27 + $0x20] sm:$0xff] %v184_v4  ;;  %187 = vst [vmem:[%s3589_s27 + $0x28] sm:$0xff] %v186_v5  ;;  %v188_v6 = vld [vmem:[%s3584_s26 + $0x60] sm:$0xff]  ;;  %v190_v7 = vld [vmem:[%s3584_s26 + $0x68] sm:$0xff] }
  0x13   : > { %v192_v8 = vld [vmem:[%s3584_s26 + $0x80] sm:$0xff]  ;;  %189 = vst [vmem:[%s3589_s27 + $0x30] sm:$0xff] %v188_v6  ;;  %191 = vst [vmem:[%s3589_s27 + $0x38] sm:$0xff] %v190_v7  ;;  %v194_v9 = vld [vmem:[%s3584_s26 + $0x88] sm:$0xff] }
  0x14   : > { %193 = vst [vmem:[%s3589_s27 + $0x40] sm:$0xff] %v192_v8  ;;  %v196_v10 = vld [vmem:[%s3584_s26 + $0xa0] sm:$0xff]  ;;  %v198_v11 = vld [vmem:[%s3584_s26 + $0xa8] sm:$0xff]  ;;  %195 = vst [vmem:[%s3589_s27 + $0x48] sm:$0xff] %v194_v9 }
  0x15   : > { %197 = vst [vmem:[%s3589_s27 + $0x50] sm:$0xff] %v196_v10  ;;  %199 = vst [vmem:[%s3589_s27 + $0x58] sm:$0xff] %v198_v11  ;;  %v200_v12 = vld [vmem:[%s3584_s26 + $0xc0] sm:$0xff]  ;;  %v202_v13 = vld [vmem:[%s3584_s26 + $0xc8] sm:$0xff] }
  0x16   : > { %v204_v14 = vld [vmem:[%s3584_s26 + $0xe0] sm:$0xff]  ;;  %201 = vst [vmem:[%s3589_s27 + $0x60] sm:$0xff] %v200_v12  ;;  %203 = vst [vmem:[%s3589_s27 + $0x68] sm:$0xff] %v202_v13  ;;  %v206_v15 = vld [vmem:[%s3584_s26 + $0xe8] sm:$0xff] }
  0x17   : > { %205 = vst [vmem:[%s3589_s27 + $0x70] sm:$0xff] %v204_v14  ;;  %v208_v16 = vld [vmem:[%s3584_s26 + $0x100] sm:$0xff]  ;;  %v210_v17 = vld [vmem:[%s3584_s26 + $0x108] sm:$0xff]  ;;  %207 = vst [vmem:[%s3589_s27 + $0x78] sm:$0xff] %v206_v15 }
  0x18   : > { %209 = vst [vmem:[%s3589_s27 + $0x80] sm:$0xff] %v208_v16  ;;  %211 = vst [vmem:[%s3589_s27 + $0x88] sm:$0xff] %v210_v17  ;;  %v212_v18 = vld [vmem:[%s3584_s26 + $0x120] sm:$0xff]  ;;  %v214_v19 = vld [vmem:[%s3584_s26 + $0x128] sm:$0xff] }
  0x19   : > { %v216_v20 = vld [vmem:[%s3584_s26 + $0x140] sm:$0xff]  ;;  %213 = vst [vmem:[%s3589_s27 + $0x90] sm:$0xff] %v212_v18  ;;  %215 = vst [vmem:[%s3589_s27 + $0x98] sm:$0xff] %v214_v19  ;;  %v218_v21 = vld [vmem:[%s3584_s26 + $0x148] sm:$0xff] }
  0x1a   : > { %217 = vst [vmem:[%s3589_s27 + $0xa0] sm:$0xff] %v216_v20  ;;  %v220_v22 = vld [vmem:[%s3584_s26 + $0x160] sm:$0xff]  ;;  %v222_v23 = vld [vmem:[%s3584_s26 + $0x168] sm:$0xff]  ;;  %219 = vst [vmem:[%s3589_s27 + $0xa8] sm:$0xff] %v218_v21 }
  0x1b   : > { %221 = vst [vmem:[%s3589_s27 + $0xb0] sm:$0xff] %v220_v22  ;;  %223 = vst [vmem:[%s3589_s27 + $0xb8] sm:$0xff] %v222_v23  ;;  %v224_v24 = vld [vmem:[%s3584_s26 + $0x180] sm:$0xff]  ;;  %v226_v25 = vld [vmem:[%s3584_s26 + $0x188] sm:$0xff] }
  0x1c   : > { %v228_v26 = vld [vmem:[%s3584_s26 + $0x1a0] sm:$0xff]  ;;  %225 = vst [vmem:[%s3589_s27 + $0xc0] sm:$0xff] %v224_v24  ;;  %227 = vst [vmem:[%s3589_s27 + $0xc8] sm:$0xff] %v226_v25  ;;  %v230_v27 = vld [vmem:[%s3584_s26 + $0x1a8] sm:$0xff] }
  0x1d   : > { %229 = vst [vmem:[%s3589_s27 + $0xd0] sm:$0xff] %v228_v26  ;;  %v232_v28 = vld [vmem:[%s3584_s26 + $0x1c0] sm:$0xff]  ;;  %v234_v29 = vld [vmem:[%s3584_s26 + $0x1c8] sm:$0xff]  ;;  %231 = vst [vmem:[%s3589_s27 + $0xd8] sm:$0xff] %v230_v27 }
  0x1e   : > { %233 = vst [vmem:[%s3589_s27 + $0xe0] sm:$0xff] %v232_v28  ;;  %235 = vst [vmem:[%s3589_s27 + $0xe8] sm:$0xff] %v234_v29  ;;  %v236_v30 = vld [vmem:[%s3584_s26 + $0x1e0] sm:$0xff]  ;;  %v238_v31 = vld [vmem:[%s3584_s26 + $0x1e8] sm:$0xff] }
  0x1f   : > { %v240_v32 = vld [vmem:[%s3584_s26 + $0x200] sm:$0xff]  ;;  %237 = vst [vmem:[%s3589_s27 + $0xf0] sm:$0xff] %v236_v30  ;;  %239 = vst [vmem:[%s3589_s27 + $0xf8] sm:$0xff] %v238_v31  ;;  %v242_v33 = vld [vmem:[%s3584_s26 + $0x208] sm:$0xff] }
  0x20   : > { %241 = vst [vmem:[%s3589_s27 + $0x100] sm:$0xff] %v240_v32  ;;  %v244_v34 = vld [vmem:[%s3584_s26 + $0x220] sm:$0xff]  ;;  %v246_v35 = vld [vmem:[%s3584_s26 + $0x228] sm:$0xff]  ;;  %243 = vst [vmem:[%s3589_s27 + $0x108] sm:$0xff] %v242_v33 }
  0x21   : > { %245 = vst [vmem:[%s3589_s27 + $0x110] sm:$0xff] %v244_v34  ;;  %247 = vst [vmem:[%s3589_s27 + $0x118] sm:$0xff] %v246_v35  ;;  %v248_v36 = vld [vmem:[%s3584_s26 + $0x240] sm:$0xff]  ;;  %v250_v37 = vld [vmem:[%s3584_s26 + $0x248] sm:$0xff] }
  0x22   : > { %v252_v38 = vld [vmem:[%s3584_s26 + $0x260] sm:$0xff]  ;;  %249 = vst [vmem:[%s3589_s27 + $0x120] sm:$0xff] %v248_v36  ;;  %251 = vst [vmem:[%s3589_s27 + $0x128] sm:$0xff] %v250_v37  ;;  %v254_v39 = vld [vmem:[%s3584_s26 + $0x268] sm:$0xff] }
  0x23   : > { %253 = vst [vmem:[%s3589_s27 + $0x130] sm:$0xff] %v252_v38  ;;  %v256_v40 = vld [vmem:[%s3584_s26 + $0x280] sm:$0xff]  ;;  %v258_v41 = vld [vmem:[%s3584_s26 + $0x288] sm:$0xff]  ;;  %255 = vst [vmem:[%s3589_s27 + $0x138] sm:$0xff] %v254_v39 }
  0x24   : > { %257 = vst [vmem:[%s3589_s27 + $0x140] sm:$0xff] %v256_v40  ;;  %259 = vst [vmem:[%s3589_s27 + $0x148] sm:$0xff] %v258_v41  ;;  %v260_v42 = vld [vmem:[%s3584_s26 + $0x2a0] sm:$0xff]  ;;  %v262_v43 = vld [vmem:[%s3584_s26 + $0x2a8] sm:$0xff] }
  0x25   : > { %v264_v44 = vld [vmem:[%s3584_s26 + $0x2c0] sm:$0xff]  ;;  %261 = vst [vmem:[%s3589_s27 + $0x150] sm:$0xff] %v260_v42  ;;  %263 = vst [vmem:[%s3589_s27 + $0x158] sm:$0xff] %v262_v43  ;;  %v266_v45 = vld [vmem:[%s3584_s26 + $0x2c8] sm:$0xff] }
  0x26   : > { %265 = vst [vmem:[%s3589_s27 + $0x160] sm:$0xff] %v264_v44  ;;  %v268_v46 = vld [vmem:[%s3584_s26 + $0x2e0] sm:$0xff]  ;;  %v270_v47 = vld [vmem:[%s3584_s26 + $0x2e8] sm:$0xff]  ;;  %267 = vst [vmem:[%s3589_s27 + $0x168] sm:$0xff] %v266_v45 }
  0x27   : > { %269 = vst [vmem:[%s3589_s27 + $0x170] sm:$0xff] %v268_v46  ;;  %271 = vst [vmem:[%s3589_s27 + $0x178] sm:$0xff] %v270_v47  ;;  %v272_v48 = vld [vmem:[%s3584_s26 + $0x300] sm:$0xff]  ;;  %v274_v49 = vld [vmem:[%s3584_s26 + $0x308] sm:$0xff] }
  0x28   : > { %v276_v50 = vld [vmem:[%s3584_s26 + $0x320] sm:$0xff]  ;;  %273 = vst [vmem:[%s3589_s27 + $0x180] sm:$0xff] %v272_v48  ;;  %275 = vst [vmem:[%s3589_s27 + $0x188] sm:$0xff] %v274_v49  ;;  %v278_v51 = vld [vmem:[%s3584_s26 + $0x328] sm:$0xff] }
  0x29   : > { %277 = vst [vmem:[%s3589_s27 + $0x190] sm:$0xff] %v276_v50  ;;  %v280_v52 = vld [vmem:[%s3584_s26 + $0x340] sm:$0xff]  ;;  %v282_v53 = vld [vmem:[%s3584_s26 + $0x348] sm:$0xff]  ;;  %279 = vst [vmem:[%s3589_s27 + $0x198] sm:$0xff] %v278_v51 }
  0x2a   : > { %281 = vst [vmem:[%s3589_s27 + $0x1a0] sm:$0xff] %v280_v52  ;;  %283 = vst [vmem:[%s3589_s27 + $0x1a8] sm:$0xff] %v282_v53  ;;  %v284_v54 = vld [vmem:[%s3584_s26 + $0x360] sm:$0xff]  ;;  %v286_v55 = vld [vmem:[%s3584_s26 + $0x368] sm:$0xff] }
  0x2b   : > { %v288_v56 = vld [vmem:[%s3584_s26 + $0x380] sm:$0xff]  ;;  %285 = vst [vmem:[%s3589_s27 + $0x1b0] sm:$0xff] %v284_v54  ;;  %287 = vst [vmem:[%s3589_s27 + $0x1b8] sm:$0xff] %v286_v55  ;;  %v290_v57 = vld [vmem:[%s3584_s26 + $0x388] sm:$0xff] }
  0x2c   : > { %289 = vst [vmem:[%s3589_s27 + $0x1c0] sm:$0xff] %v288_v56  ;;  %v292_v58 = vld [vmem:[%s3584_s26 + $0x3a0] sm:$0xff]  ;;  %v294_v59 = vld [vmem:[%s3584_s26 + $0x3a8] sm:$0xff]  ;;  %291 = vst [vmem:[%s3589_s27 + $0x1c8] sm:$0xff] %v290_v57 }
  0x2d   : > { %293 = vst [vmem:[%s3589_s27 + $0x1d0] sm:$0xff] %v292_v58  ;;  %295 = vst [vmem:[%s3589_s27 + $0x1d8] sm:$0xff] %v294_v59  ;;  %v296_v60 = vld [vmem:[%s3584_s26 + $0x3c0] sm:$0xff]  ;;  %v298_v61 = vld [vmem:[%s3584_s26 + $0x3c8] sm:$0xff] }
  0x2e   : > { %v300_v62 = vld [vmem:[%s3584_s26 + $0x3e0] sm:$0xff]  ;;  %297 = vst [vmem:[%s3589_s27 + $0x1e0] sm:$0xff] %v296_v60  ;;  %299 = vst [vmem:[%s3589_s27 + $0x1e8] sm:$0xff] %v298_v61  ;;  %v302_v63 = vld [vmem:[%s3584_s26 + $0x3e8] sm:$0xff] }
  0x2f   : > { %301 = vst [vmem:[%s3589_s27 + $0x1f0] sm:$0xff] %v300_v62  ;;  %v304_v0 = vld [vmem:[%s3584_s26 + $0x400] sm:$0xff]  ;;  %v306_v1 = vld [vmem:[%s3584_s26 + $0x408] sm:$0xff]  ;;  %303 = vst [vmem:[%s3589_s27 + $0x1f8] sm:$0xff] %v302_v63 }
  0x30   : > { %305 = vst [vmem:[%s3589_s27 + $0x200] sm:$0xff] %v304_v0  ;;  %307 = vst [vmem:[%s3589_s27 + $0x208] sm:$0xff] %v306_v1  ;;  %v308_v2 = vld [vmem:[%s3584_s26 + $0x420] sm:$0xff]  ;;  %v310_v3 = vld [vmem:[%s3584_s26 + $0x428] sm:$0xff] }
  0x31   : > { %v312_v4 = vld [vmem:[%s3584_s26 + $0x440] sm:$0xff]  ;;  %309 = vst [vmem:[%s3589_s27 + $0x210] sm:$0xff] %v308_v2  ;;  %311 = vst [vmem:[%s3589_s27 + $0x218] sm:$0xff] %v310_v3  ;;  %v314_v5 = vld [vmem:[%s3584_s26 + $0x448] sm:$0xff] }
  0x32   : > { %313 = vst [vmem:[%s3589_s27 + $0x220] sm:$0xff] %v312_v4  ;;  %v316_v6 = vld [vmem:[%s3584_s26 + $0x460] sm:$0xff]  ;;  %v318_v7 = vld [vmem:[%s3584_s26 + $0x468] sm:$0xff]  ;;  %315 = vst [vmem:[%s3589_s27 + $0x228] sm:$0xff] %v314_v5 }
  0x33   : > { %317 = vst [vmem:[%s3589_s27 + $0x230] sm:$0xff] %v316_v6  ;;  %319 = vst [vmem:[%s3589_s27 + $0x238] sm:$0xff] %v318_v7  ;;  %v320_v8 = vld [vmem:[%s3584_s26 + $0x480] sm:$0xff]  ;;  %v322_v9 = vld [vmem:[%s3584_s26 + $0x488] sm:$0xff] }
  0x34   : > { %v324_v10 = vld [vmem:[%s3584_s26 + $0x4a0] sm:$0xff]  ;;  %321 = vst [vmem:[%s3589_s27 + $0x240] sm:$0xff] %v320_v8  ;;  %323 = vst [vmem:[%s3589_s27 + $0x248] sm:$0xff] %v322_v9  ;;  %v326_v11 = vld [vmem:[%s3584_s26 + $0x4a8] sm:$0xff] }
  0x35   : > { %325 = vst [vmem:[%s3589_s27 + $0x250] sm:$0xff] %v324_v10  ;;  %v328_v12 = vld [vmem:[%s3584_s26 + $0x4c0] sm:$0xff]  ;;  %v330_v13 = vld [vmem:[%s3584_s26 + $0x4c8] sm:$0xff]  ;;  %327 = vst [vmem:[%s3589_s27 + $0x258] sm:$0xff] %v326_v11 }
  0x36   : > { %329 = vst [vmem:[%s3589_s27 + $0x260] sm:$0xff] %v328_v12  ;;  %331 = vst [vmem:[%s3589_s27 + $0x268] sm:$0xff] %v330_v13  ;;  %v332_v14 = vld [vmem:[%s3584_s26 + $0x4e0] sm:$0xff]  ;;  %v334_v15 = vld [vmem:[%s3584_s26 + $0x4e8] sm:$0xff] }
  0x37   : > { %v336_v16 = vld [vmem:[%s3584_s26 + $0x500] sm:$0xff]  ;;  %333 = vst [vmem:[%s3589_s27 + $0x270] sm:$0xff] %v332_v14  ;;  %335 = vst [vmem:[%s3589_s27 + $0x278] sm:$0xff] %v334_v15  ;;  %v338_v17 = vld [vmem:[%s3584_s26 + $0x508] sm:$0xff] }
  0x38   : > { %337 = vst [vmem:[%s3589_s27 + $0x280] sm:$0xff] %v336_v16  ;;  %v340_v18 = vld [vmem:[%s3584_s26 + $0x520] sm:$0xff]  ;;  %v342_v19 = vld [vmem:[%s3584_s26 + $0x528] sm:$0xff]  ;;  %339 = vst [vmem:[%s3589_s27 + $0x288] sm:$0xff] %v338_v17 }
  0x39   : > { %341 = vst [vmem:[%s3589_s27 + $0x290] sm:$0xff] %v340_v18  ;;  %343 = vst [vmem:[%s3589_s27 + $0x298] sm:$0xff] %v342_v19  ;;  %v344_v20 = vld [vmem:[%s3584_s26 + $0x540] sm:$0xff]  ;;  %v346_v21 = vld [vmem:[%s3584_s26 + $0x548] sm:$0xff] }
  0x3a   : > { %v348_v22 = vld [vmem:[%s3584_s26 + $0x560] sm:$0xff]  ;;  %345 = vst [vmem:[%s3589_s27 + $0x2a0] sm:$0xff] %v344_v20  ;;  %347 = vst [vmem:[%s3589_s27 + $0x2a8] sm:$0xff] %v346_v21  ;;  %v350_v23 = vld [vmem:[%s3584_s26 + $0x568] sm:$0xff] }
  0x3b   : > { %349 = vst [vmem:[%s3589_s27 + $0x2b0] sm:$0xff] %v348_v22  ;;  %v352_v24 = vld [vmem:[%s3584_s26 + $0x580] sm:$0xff]  ;;  %v354_v25 = vld [vmem:[%s3584_s26 + $0x588] sm:$0xff]  ;;  %351 = vst [vmem:[%s3589_s27 + $0x2b8] sm:$0xff] %v350_v23 }
  0x3c   : > { %353 = vst [vmem:[%s3589_s27 + $0x2c0] sm:$0xff] %v352_v24  ;;  %355 = vst [vmem:[%s3589_s27 + $0x2c8] sm:$0xff] %v354_v25  ;;  %v356_v26 = vld [vmem:[%s3584_s26 + $0x5a0] sm:$0xff]  ;;  %v358_v27 = vld [vmem:[%s3584_s26 + $0x5a8] sm:$0xff] }
  0x3d   : > { %v360_v28 = vld [vmem:[%s3584_s26 + $0x5c0] sm:$0xff]  ;;  %357 = vst [vmem:[%s3589_s27 + $0x2d0] sm:$0xff] %v356_v26  ;;  %359 = vst [vmem:[%s3589_s27 + $0x2d8] sm:$0xff] %v358_v27  ;;  %v362_v29 = vld [vmem:[%s3584_s26 + $0x5c8] sm:$0xff] }
  0x3e   : > { %361 = vst [vmem:[%s3589_s27 + $0x2e0] sm:$0xff] %v360_v28  ;;  %v364_v30 = vld [vmem:[%s3584_s26 + $0x5e0] sm:$0xff]  ;;  %v366_v31 = vld [vmem:[%s3584_s26 + $0x5e8] sm:$0xff]  ;;  %363 = vst [vmem:[%s3589_s27 + $0x2e8] sm:$0xff] %v362_v29 }
  0x3f   : > { %365 = vst [vmem:[%s3589_s27 + $0x2f0] sm:$0xff] %v364_v30  ;;  %367 = vst [vmem:[%s3589_s27 + $0x2f8] sm:$0xff] %v366_v31  ;;  %v368_v32 = vld [vmem:[%s3584_s26 + $0x600] sm:$0xff]  ;;  %v370_v33 = vld [vmem:[%s3584_s26 + $0x608] sm:$0xff] }
  0x40   : > { %v372_v34 = vld [vmem:[%s3584_s26 + $0x620] sm:$0xff]  ;;  %369 = vst [vmem:[%s3589_s27 + $0x300] sm:$0xff] %v368_v32  ;;  %371 = vst [vmem:[%s3589_s27 + $0x308] sm:$0xff] %v370_v33  ;;  %v374_v35 = vld [vmem:[%s3584_s26 + $0x628] sm:$0xff] }
  0x41   : > { %373 = vst [vmem:[%s3589_s27 + $0x310] sm:$0xff] %v372_v34  ;;  %v376_v36 = vld [vmem:[%s3584_s26 + $0x640] sm:$0xff]  ;;  %v378_v37 = vld [vmem:[%s3584_s26 + $0x648] sm:$0xff]  ;;  %375 = vst [vmem:[%s3589_s27 + $0x318] sm:$0xff] %v374_v35 }
  0x42   : > { %377 = vst [vmem:[%s3589_s27 + $0x320] sm:$0xff] %v376_v36  ;;  %379 = vst [vmem:[%s3589_s27 + $0x328] sm:$0xff] %v378_v37  ;;  %v380_v38 = vld [vmem:[%s3584_s26 + $0x660] sm:$0xff]  ;;  %v382_v39 = vld [vmem:[%s3584_s26 + $0x668] sm:$0xff] }
  0x43   : > { %v384_v40 = vld [vmem:[%s3584_s26 + $0x680] sm:$0xff]  ;;  %381 = vst [vmem:[%s3589_s27 + $0x330] sm:$0xff] %v380_v38  ;;  %383 = vst [vmem:[%s3589_s27 + $0x338] sm:$0xff] %v382_v39  ;;  %v386_v41 = vld [vmem:[%s3584_s26 + $0x688] sm:$0xff] }
  0x44   : > { %385 = vst [vmem:[%s3589_s27 + $0x340] sm:$0xff] %v384_v40  ;;  %v388_v42 = vld [vmem:[%s3584_s26 + $0x6a0] sm:$0xff]  ;;  %v390_v43 = vld [vmem:[%s3584_s26 + $0x6a8] sm:$0xff]  ;;  %387 = vst [vmem:[%s3589_s27 + $0x348] sm:$0xff] %v386_v41 }
  0x45   : > { %389 = vst [vmem:[%s3589_s27 + $0x350] sm:$0xff] %v388_v42  ;;  %391 = vst [vmem:[%s3589_s27 + $0x358] sm:$0xff] %v390_v43  ;;  %v392_v44 = vld [vmem:[%s3584_s26 + $0x6c0] sm:$0xff]  ;;  %v394_v45 = vld [vmem:[%s3584_s26 + $0x6c8] sm:$0xff] }
  0x46   : > { %v396_v46 = vld [vmem:[%s3584_s26 + $0x6e0] sm:$0xff]  ;;  %393 = vst [vmem:[%s3589_s27 + $0x360] sm:$0xff] %v392_v44  ;;  %395 = vst [vmem:[%s3589_s27 + $0x368] sm:$0xff] %v394_v45  ;;  %v398_v47 = vld [vmem:[%s3584_s26 + $0x6e8] sm:$0xff] }
  0x47   : > { %397 = vst [vmem:[%s3589_s27 + $0x370] sm:$0xff] %v396_v46  ;;  %v400_v48 = vld [vmem:[%s3584_s26 + $0x700] sm:$0xff]  ;;  %v402_v49 = vld [vmem:[%s3584_s26 + $0x708] sm:$0xff]  ;;  %399 = vst [vmem:[%s3589_s27 + $0x378] sm:$0xff] %v398_v47 }
  0x48   : > { %401 = vst [vmem:[%s3589_s27 + $0x380] sm:$0xff] %v400_v48  ;;  %403 = vst [vmem:[%s3589_s27 + $0x388] sm:$0xff] %v402_v49  ;;  %v404_v50 = vld [vmem:[%s3584_s26 + $0x720] sm:$0xff]  ;;  %v406_v51 = vld [vmem:[%s3584_s26 + $0x728] sm:$0xff] }
  0x49   : > { %v408_v52 = vld [vmem:[%s3584_s26 + $0x740] sm:$0xff]  ;;  %405 = vst [vmem:[%s3589_s27 + $0x390] sm:$0xff] %v404_v50  ;;  %407 = vst [vmem:[%s3589_s27 + $0x398] sm:$0xff] %v406_v51  ;;  %v410_v53 = vld [vmem:[%s3584_s26 + $0x748] sm:$0xff] }
  0x4a   : > { %409 = vst [vmem:[%s3589_s27 + $0x3a0] sm:$0xff] %v408_v52  ;;  %v412_v54 = vld [vmem:[%s3584_s26 + $0x760] sm:$0xff]  ;;  %v414_v55 = vld [vmem:[%s3584_s26 + $0x768] sm:$0xff]  ;;  %411 = vst [vmem:[%s3589_s27 + $0x3a8] sm:$0xff] %v410_v53 }
  0x4b   : > { %413 = vst [vmem:[%s3589_s27 + $0x3b0] sm:$0xff] %v412_v54  ;;  %415 = vst [vmem:[%s3589_s27 + $0x3b8] sm:$0xff] %v414_v55  ;;  %v416_v56 = vld [vmem:[%s3584_s26 + $0x780] sm:$0xff]  ;;  %v418_v57 = vld [vmem:[%s3584_s26 + $0x788] sm:$0xff] }
  0x4c   : > { %v420_v58 = vld [vmem:[%s3584_s26 + $0x7a0] sm:$0xff]  ;;  %417 = vst [vmem:[%s3589_s27 + $0x3c0] sm:$0xff] %v416_v56  ;;  %419 = vst [vmem:[%s3589_s27 + $0x3c8] sm:$0xff] %v418_v57  ;;  %v422_v59 = vld [vmem:[%s3584_s26 + $0x7a8] sm:$0xff] }
  0x4d   : > { %421 = vst [vmem:[%s3589_s27 + $0x3d0] sm:$0xff] %v420_v58  ;;  %v424_v60 = vld [vmem:[%s3584_s26 + $0x7c0] sm:$0xff]  ;;  %v426_v61 = vld [vmem:[%s3584_s26 + $0x7c8] sm:$0xff]  ;;  %423 = vst [vmem:[%s3589_s27 + $0x3d8] sm:$0xff] %v422_v59 }
  0x4e   : > { %425 = vst [vmem:[%s3589_s27 + $0x3e0] sm:$0xff] %v424_v60  ;;  %427 = vst [vmem:[%s3589_s27 + $0x3e8] sm:$0xff] %v426_v61  ;;  %v428_v62 = vld [vmem:[%s3584_s26 + $0x7e0] sm:$0xff]  ;;  %v430_v63 = vld [vmem:[%s3584_s26 + $0x7e8] sm:$0xff] }
  0x4f   : > { %v432_v0 = vld [vmem:[%s3584_s26 + $0x800] sm:$0xff]  ;;  %429 = vst [vmem:[%s3589_s27 + $0x3f0] sm:$0xff] %v428_v62  ;;  %431 = vst [vmem:[%s3589_s27 + $0x3f8] sm:$0xff] %v430_v63  ;;  %v434_v1 = vld [vmem:[%s3584_s26 + $0x808] sm:$0xff] }
  0x50   : > { %433 = vst [vmem:[%s3589_s27 + $0x400] sm:$0xff] %v432_v0  ;;  %v436_v2 = vld [vmem:[%s3584_s26 + $0x820] sm:$0xff]  ;;  %v438_v3 = vld [vmem:[%s3584_s26 + $0x828] sm:$0xff]  ;;  %435 = vst [vmem:[%s3589_s27 + $0x408] sm:$0xff] %v434_v1 }
  0x51   : > { %437 = vst [vmem:[%s3589_s27 + $0x410] sm:$0xff] %v436_v2  ;;  %439 = vst [vmem:[%s3589_s27 + $0x418] sm:$0xff] %v438_v3  ;;  %v440_v4 = vld [vmem:[%s3584_s26 + $0x840] sm:$0xff]  ;;  %v442_v5 = vld [vmem:[%s3584_s26 + $0x848] sm:$0xff] }
  0x52   : > { %v444_v6 = vld [vmem:[%s3584_s26 + $0x860] sm:$0xff]  ;;  %441 = vst [vmem:[%s3589_s27 + $0x420] sm:$0xff] %v440_v4  ;;  %443 = vst [vmem:[%s3589_s27 + $0x428] sm:$0xff] %v442_v5  ;;  %v446_v7 = vld [vmem:[%s3584_s26 + $0x868] sm:$0xff] }
  0x53   : > { %445 = vst [vmem:[%s3589_s27 + $0x430] sm:$0xff] %v444_v6  ;;  %v448_v8 = vld [vmem:[%s3584_s26 + $0x880] sm:$0xff]  ;;  %v450_v9 = vld [vmem:[%s3584_s26 + $0x888] sm:$0xff]  ;;  %447 = vst [vmem:[%s3589_s27 + $0x438] sm:$0xff] %v446_v7 }
  0x54   : > { %449 = vst [vmem:[%s3589_s27 + $0x440] sm:$0xff] %v448_v8  ;;  %451 = vst [vmem:[%s3589_s27 + $0x448] sm:$0xff] %v450_v9  ;;  %v452_v10 = vld [vmem:[%s3584_s26 + $0x8a0] sm:$0xff]  ;;  %v454_v11 = vld [vmem:[%s3584_s26 + $0x8a8] sm:$0xff] }
  0x55   : > { %v456_v12 = vld [vmem:[%s3584_s26 + $0x8c0] sm:$0xff]  ;;  %453 = vst [vmem:[%s3589_s27 + $0x450] sm:$0xff] %v452_v10  ;;  %455 = vst [vmem:[%s3589_s27 + $0x458] sm:$0xff] %v454_v11  ;;  %v458_v13 = vld [vmem:[%s3584_s26 + $0x8c8] sm:$0xff] }
  0x56   : > { %457 = vst [vmem:[%s3589_s27 + $0x460] sm:$0xff] %v456_v12  ;;  %v460_v14 = vld [vmem:[%s3584_s26 + $0x8e0] sm:$0xff]  ;;  %v462_v15 = vld [vmem:[%s3584_s26 + $0x8e8] sm:$0xff]  ;;  %459 = vst [vmem:[%s3589_s27 + $0x468] sm:$0xff] %v458_v13 }
  0x57   : > { %461 = vst [vmem:[%s3589_s27 + $0x470] sm:$0xff] %v460_v14  ;;  %463 = vst [vmem:[%s3589_s27 + $0x478] sm:$0xff] %v462_v15  ;;  %v464_v16 = vld [vmem:[%s3584_s26 + $0x900] sm:$0xff]  ;;  %v466_v17 = vld [vmem:[%s3584_s26 + $0x908] sm:$0xff] }
  0x58   : > { %v468_v18 = vld [vmem:[%s3584_s26 + $0x920] sm:$0xff]  ;;  %465 = vst [vmem:[%s3589_s27 + $0x480] sm:$0xff] %v464_v16  ;;  %467 = vst [vmem:[%s3589_s27 + $0x488] sm:$0xff] %v466_v17  ;;  %v470_v19 = vld [vmem:[%s3584_s26 + $0x928] sm:$0xff] }
  0x59   : > { %469 = vst [vmem:[%s3589_s27 + $0x490] sm:$0xff] %v468_v18  ;;  %v472_v20 = vld [vmem:[%s3584_s26 + $0x940] sm:$0xff]  ;;  %v474_v21 = vld [vmem:[%s3584_s26 + $0x948] sm:$0xff]  ;;  %471 = vst [vmem:[%s3589_s27 + $0x498] sm:$0xff] %v470_v19 }
  0x5a   : > { %473 = vst [vmem:[%s3589_s27 + $0x4a0] sm:$0xff] %v472_v20  ;;  %475 = vst [vmem:[%s3589_s27 + $0x4a8] sm:$0xff] %v474_v21  ;;  %v476_v22 = vld [vmem:[%s3584_s26 + $0x960] sm:$0xff]  ;;  %v478_v23 = vld [vmem:[%s3584_s26 + $0x968] sm:$0xff] }
  0x5b   : > { %v480_v24 = vld [vmem:[%s3584_s26 + $0x980] sm:$0xff]  ;;  %477 = vst [vmem:[%s3589_s27 + $0x4b0] sm:$0xff] %v476_v22  ;;  %479 = vst [vmem:[%s3589_s27 + $0x4b8] sm:$0xff] %v478_v23  ;;  %v482_v25 = vld [vmem:[%s3584_s26 + $0x988] sm:$0xff] }
  0x5c   : > { %481 = vst [vmem:[%s3589_s27 + $0x4c0] sm:$0xff] %v480_v24  ;;  %v484_v26 = vld [vmem:[%s3584_s26 + $0x9a0] sm:$0xff]  ;;  %v486_v27 = vld [vmem:[%s3584_s26 + $0x9a8] sm:$0xff]  ;;  %483 = vst [vmem:[%s3589_s27 + $0x4c8] sm:$0xff] %v482_v25 }
  0x5d   : > { %485 = vst [vmem:[%s3589_s27 + $0x4d0] sm:$0xff] %v484_v26  ;;  %487 = vst [vmem:[%s3589_s27 + $0x4d8] sm:$0xff] %v486_v27  ;;  %v488_v28 = vld [vmem:[%s3584_s26 + $0x9c0] sm:$0xff]  ;;  %v490_v29 = vld [vmem:[%s3584_s26 + $0x9c8] sm:$0xff] }
  0x5e   : > { %v492_v30 = vld [vmem:[%s3584_s26 + $0x9e0] sm:$0xff]  ;;  %489 = vst [vmem:[%s3589_s27 + $0x4e0] sm:$0xff] %v488_v28  ;;  %491 = vst [vmem:[%s3589_s27 + $0x4e8] sm:$0xff] %v490_v29  ;;  %v494_v31 = vld [vmem:[%s3584_s26 + $0x9e8] sm:$0xff] }
  0x5f   : > { %493 = vst [vmem:[%s3589_s27 + $0x4f0] sm:$0xff] %v492_v30  ;;  %v496_v32 = vld [vmem:[%s3584_s26 + $0xa00] sm:$0xff]  ;;  %v498_v33 = vld [vmem:[%s3584_s26 + $0xa08] sm:$0xff]  ;;  %495 = vst [vmem:[%s3589_s27 + $0x4f8] sm:$0xff] %v494_v31 }
  0x60   : > { %497 = vst [vmem:[%s3589_s27 + $0x500] sm:$0xff] %v496_v32  ;;  %499 = vst [vmem:[%s3589_s27 + $0x508] sm:$0xff] %v498_v33  ;;  %v500_v34 = vld [vmem:[%s3584_s26 + $0xa20] sm:$0xff]  ;;  %v502_v35 = vld [vmem:[%s3584_s26 + $0xa28] sm:$0xff] }
  0x61   : > { %v504_v36 = vld [vmem:[%s3584_s26 + $0xa40] sm:$0xff]  ;;  %501 = vst [vmem:[%s3589_s27 + $0x510] sm:$0xff] %v500_v34  ;;  %503 = vst [vmem:[%s3589_s27 + $0x518] sm:$0xff] %v502_v35  ;;  %v506_v37 = vld [vmem:[%s3584_s26 + $0xa48] sm:$0xff] }
  0x62   : > { %505 = vst [vmem:[%s3589_s27 + $0x520] sm:$0xff] %v504_v36  ;;  %v508_v38 = vld [vmem:[%s3584_s26 + $0xa60] sm:$0xff]  ;;  %v510_v39 = vld [vmem:[%s3584_s26 + $0xa68] sm:$0xff]  ;;  %507 = vst [vmem:[%s3589_s27 + $0x528] sm:$0xff] %v506_v37 }
  0x63   : > { %509 = vst [vmem:[%s3589_s27 + $0x530] sm:$0xff] %v508_v38  ;;  %511 = vst [vmem:[%s3589_s27 + $0x538] sm:$0xff] %v510_v39  ;;  %v512_v40 = vld [vmem:[%s3584_s26 + $0xa80] sm:$0xff]  ;;  %v514_v41 = vld [vmem:[%s3584_s26 + $0xa88] sm:$0xff] }
  0x64   : > { %v516_v42 = vld [vmem:[%s3584_s26 + $0xaa0] sm:$0xff]  ;;  %513 = vst [vmem:[%s3589_s27 + $0x540] sm:$0xff] %v512_v40  ;;  %515 = vst [vmem:[%s3589_s27 + $0x548] sm:$0xff] %v514_v41  ;;  %v518_v43 = vld [vmem:[%s3584_s26 + $0xaa8] sm:$0xff] }
  0x65   : > { %517 = vst [vmem:[%s3589_s27 + $0x550] sm:$0xff] %v516_v42  ;;  %v520_v44 = vld [vmem:[%s3584_s26 + $0xac0] sm:$0xff]  ;;  %v522_v45 = vld [vmem:[%s3584_s26 + $0xac8] sm:$0xff]  ;;  %519 = vst [vmem:[%s3589_s27 + $0x558] sm:$0xff] %v518_v43 }
  0x66   : > { %521 = vst [vmem:[%s3589_s27 + $0x560] sm:$0xff] %v520_v44  ;;  %523 = vst [vmem:[%s3589_s27 + $0x568] sm:$0xff] %v522_v45  ;;  %v524_v46 = vld [vmem:[%s3584_s26 + $0xae0] sm:$0xff]  ;;  %v526_v47 = vld [vmem:[%s3584_s26 + $0xae8] sm:$0xff] }
  0x67   : > { %v528_v48 = vld [vmem:[%s3584_s26 + $0xb00] sm:$0xff]  ;;  %525 = vst [vmem:[%s3589_s27 + $0x570] sm:$0xff] %v524_v46  ;;  %527 = vst [vmem:[%s3589_s27 + $0x578] sm:$0xff] %v526_v47  ;;  %v530_v49 = vld [vmem:[%s3584_s26 + $0xb08] sm:$0xff] }
  0x68   : > { %529 = vst [vmem:[%s3589_s27 + $0x580] sm:$0xff] %v528_v48  ;;  %v532_v50 = vld [vmem:[%s3584_s26 + $0xb20] sm:$0xff]  ;;  %v534_v51 = vld [vmem:[%s3584_s26 + $0xb28] sm:$0xff]  ;;  %531 = vst [vmem:[%s3589_s27 + $0x588] sm:$0xff] %v530_v49 }
  0x69   : > { %533 = vst [vmem:[%s3589_s27 + $0x590] sm:$0xff] %v532_v50  ;;  %535 = vst [vmem:[%s3589_s27 + $0x598] sm:$0xff] %v534_v51  ;;  %v536_v52 = vld [vmem:[%s3584_s26 + $0xb40] sm:$0xff]  ;;  %v538_v53 = vld [vmem:[%s3584_s26 + $0xb48] sm:$0xff] }
  0x6a   : > { %v540_v54 = vld [vmem:[%s3584_s26 + $0xb60] sm:$0xff]  ;;  %537 = vst [vmem:[%s3589_s27 + $0x5a0] sm:$0xff] %v536_v52  ;;  %539 = vst [vmem:[%s3589_s27 + $0x5a8] sm:$0xff] %v538_v53  ;;  %v542_v55 = vld [vmem:[%s3584_s26 + $0xb68] sm:$0xff] }
  0x6b   : > { %541 = vst [vmem:[%s3589_s27 + $0x5b0] sm:$0xff] %v540_v54  ;;  %v544_v56 = vld [vmem:[%s3584_s26 + $0xb80] sm:$0xff]  ;;  %v546_v57 = vld [vmem:[%s3584_s26 + $0xb88] sm:$0xff]  ;;  %543 = vst [vmem:[%s3589_s27 + $0x5b8] sm:$0xff] %v542_v55 }
  0x6c   : > { %545 = vst [vmem:[%s3589_s27 + $0x5c0] sm:$0xff] %v544_v56  ;;  %547 = vst [vmem:[%s3589_s27 + $0x5c8] sm:$0xff] %v546_v57  ;;  %v548_v58 = vld [vmem:[%s3584_s26 + $0xba0] sm:$0xff]  ;;  %v550_v59 = vld [vmem:[%s3584_s26 + $0xba8] sm:$0xff] }
  0x6d   : > { %v552_v60 = vld [vmem:[%s3584_s26 + $0xbc0] sm:$0xff]  ;;  %549 = vst [vmem:[%s3589_s27 + $0x5d0] sm:$0xff] %v548_v58  ;;  %551 = vst [vmem:[%s3589_s27 + $0x5d8] sm:$0xff] %v550_v59  ;;  %v554_v61 = vld [vmem:[%s3584_s26 + $0xbc8] sm:$0xff] }
  0x6e   : > { %553 = vst [vmem:[%s3589_s27 + $0x5e0] sm:$0xff] %v552_v60  ;;  %v556_v62 = vld [vmem:[%s3584_s26 + $0xbe0] sm:$0xff]  ;;  %v558_v63 = vld [vmem:[%s3584_s26 + $0xbe8] sm:$0xff]  ;;  %555 = vst [vmem:[%s3589_s27 + $0x5e8] sm:$0xff] %v554_v61 }
  0x6f   : > { %557 = vst [vmem:[%s3589_s27 + $0x5f0] sm:$0xff] %v556_v62  ;;  %559 = vst [vmem:[%s3589_s27 + $0x5f8] sm:$0xff] %v558_v63  ;;  %v560_v0 = vld [vmem:[%s3584_s26 + $0xc00] sm:$0xff]  ;;  %v562_v1 = vld [vmem:[%s3584_s26 + $0xc08] sm:$0xff] }
  0x70   : > { %v564_v2 = vld [vmem:[%s3584_s26 + $0xc20] sm:$0xff]  ;;  %561 = vst [vmem:[%s3589_s27 + $0x600] sm:$0xff] %v560_v0  ;;  %563 = vst [vmem:[%s3589_s27 + $0x608] sm:$0xff] %v562_v1  ;;  %v566_v3 = vld [vmem:[%s3584_s26 + $0xc28] sm:$0xff] }
  0x71   : > { %565 = vst [vmem:[%s3589_s27 + $0x610] sm:$0xff] %v564_v2  ;;  %v568_v4 = vld [vmem:[%s3584_s26 + $0xc40] sm:$0xff]  ;;  %v570_v5 = vld [vmem:[%s3584_s26 + $0xc48] sm:$0xff]  ;;  %567 = vst [vmem:[%s3589_s27 + $0x618] sm:$0xff] %v566_v3 }
  0x72   : > { %569 = vst [vmem:[%s3589_s27 + $0x620] sm:$0xff] %v568_v4  ;;  %571 = vst [vmem:[%s3589_s27 + $0x628] sm:$0xff] %v570_v5  ;;  %v572_v6 = vld [vmem:[%s3584_s26 + $0xc60] sm:$0xff]  ;;  %v574_v7 = vld [vmem:[%s3584_s26 + $0xc68] sm:$0xff] }
  0x73   : > { %v576_v8 = vld [vmem:[%s3584_s26 + $0xc80] sm:$0xff]  ;;  %573 = vst [vmem:[%s3589_s27 + $0x630] sm:$0xff] %v572_v6  ;;  %575 = vst [vmem:[%s3589_s27 + $0x638] sm:$0xff] %v574_v7  ;;  %v578_v9 = vld [vmem:[%s3584_s26 + $0xc88] sm:$0xff] }
  0x74   : > { %577 = vst [vmem:[%s3589_s27 + $0x640] sm:$0xff] %v576_v8  ;;  %v580_v10 = vld [vmem:[%s3584_s26 + $0xca0] sm:$0xff]  ;;  %v582_v11 = vld [vmem:[%s3584_s26 + $0xca8] sm:$0xff]  ;;  %579 = vst [vmem:[%s3589_s27 + $0x648] sm:$0xff] %v578_v9 }
  0x75   : > { %581 = vst [vmem:[%s3589_s27 + $0x650] sm:$0xff] %v580_v10  ;;  %583 = vst [vmem:[%s3589_s27 + $0x658] sm:$0xff] %v582_v11  ;;  %v584_v12 = vld [vmem:[%s3584_s26 + $0xcc0] sm:$0xff]  ;;  %v586_v13 = vld [vmem:[%s3584_s26 + $0xcc8] sm:$0xff] }
  0x76   : > { %v588_v14 = vld [vmem:[%s3584_s26 + $0xce0] sm:$0xff]  ;;  %585 = vst [vmem:[%s3589_s27 + $0x660] sm:$0xff] %v584_v12  ;;  %587 = vst [vmem:[%s3589_s27 + $0x668] sm:$0xff] %v586_v13  ;;  %v590_v15 = vld [vmem:[%s3584_s26 + $0xce8] sm:$0xff] }
  0x77   : > { %589 = vst [vmem:[%s3589_s27 + $0x670] sm:$0xff] %v588_v14  ;;  %v592_v16 = vld [vmem:[%s3584_s26 + $0xd00] sm:$0xff]  ;;  %v594_v17 = vld [vmem:[%s3584_s26 + $0xd08] sm:$0xff]  ;;  %591 = vst [vmem:[%s3589_s27 + $0x678] sm:$0xff] %v590_v15 }
  0x78   : > { %593 = vst [vmem:[%s3589_s27 + $0x680] sm:$0xff] %v592_v16  ;;  %595 = vst [vmem:[%s3589_s27 + $0x688] sm:$0xff] %v594_v17  ;;  %v596_v18 = vld [vmem:[%s3584_s26 + $0xd20] sm:$0xff]  ;;  %v598_v19 = vld [vmem:[%s3584_s26 + $0xd28] sm:$0xff] }
  0x79   : > { %v600_v20 = vld [vmem:[%s3584_s26 + $0xd40] sm:$0xff]  ;;  %597 = vst [vmem:[%s3589_s27 + $0x690] sm:$0xff] %v596_v18  ;;  %599 = vst [vmem:[%s3589_s27 + $0x698] sm:$0xff] %v598_v19  ;;  %v602_v21 = vld [vmem:[%s3584_s26 + $0xd48] sm:$0xff] }
  0x7a   : > { %601 = vst [vmem:[%s3589_s27 + $0x6a0] sm:$0xff] %v600_v20  ;;  %v604_v22 = vld [vmem:[%s3584_s26 + $0xd60] sm:$0xff]  ;;  %v606_v23 = vld [vmem:[%s3584_s26 + $0xd68] sm:$0xff]  ;;  %603 = vst [vmem:[%s3589_s27 + $0x6a8] sm:$0xff] %v602_v21 }
  0x7b   : > { %605 = vst [vmem:[%s3589_s27 + $0x6b0] sm:$0xff] %v604_v22  ;;  %607 = vst [vmem:[%s3589_s27 + $0x6b8] sm:$0xff] %v606_v23  ;;  %v608_v24 = vld [vmem:[%s3584_s26 + $0xd80] sm:$0xff]  ;;  %v610_v25 = vld [vmem:[%s3584_s26 + $0xd88] sm:$0xff] }
  0x7c   : > { %v612_v26 = vld [vmem:[%s3584_s26 + $0xda0] sm:$0xff]  ;;  %609 = vst [vmem:[%s3589_s27 + $0x6c0] sm:$0xff] %v608_v24  ;;  %611 = vst [vmem:[%s3589_s27 + $0x6c8] sm:$0xff] %v610_v25  ;;  %v614_v27 = vld [vmem:[%s3584_s26 + $0xda8] sm:$0xff] }
  0x7d   : > { %613 = vst [vmem:[%s3589_s27 + $0x6d0] sm:$0xff] %v612_v26  ;;  %v616_v28 = vld [vmem:[%s3584_s26 + $0xdc0] sm:$0xff]  ;;  %v618_v29 = vld [vmem:[%s3584_s26 + $0xdc8] sm:$0xff]  ;;  %615 = vst [vmem:[%s3589_s27 + $0x6d8] sm:$0xff] %v614_v27 }
  0x7e   : > { %617 = vst [vmem:[%s3589_s27 + $0x6e0] sm:$0xff] %v616_v28  ;;  %619 = vst [vmem:[%s3589_s27 + $0x6e8] sm:$0xff] %v618_v29  ;;  %v620_v30 = vld [vmem:[%s3584_s26 + $0xde0] sm:$0xff]  ;;  %v622_v31 = vld [vmem:[%s3584_s26 + $0xde8] sm:$0xff] }
  0x7f   : > { %v624_v32 = vld [vmem:[%s3584_s26 + $0xe00] sm:$0xff]  ;;  %621 = vst [vmem:[%s3589_s27 + $0x6f0] sm:$0xff] %v620_v30  ;;  %623 = vst [vmem:[%s3589_s27 + $0x6f8] sm:$0xff] %v622_v31  ;;  %v626_v33 = vld [vmem:[%s3584_s26 + $0xe08] sm:$0xff] }
  0x80   : > { %625 = vst [vmem:[%s3589_s27 + $0x700] sm:$0xff] %v624_v32  ;;  %v628_v34 = vld [vmem:[%s3584_s26 + $0xe20] sm:$0xff]  ;;  %v630_v35 = vld [vmem:[%s3584_s26 + $0xe28] sm:$0xff]  ;;  %627 = vst [vmem:[%s3589_s27 + $0x708] sm:$0xff] %v626_v33 }
  0x81   : > { %629 = vst [vmem:[%s3589_s27 + $0x710] sm:$0xff] %v628_v34  ;;  %631 = vst [vmem:[%s3589_s27 + $0x718] sm:$0xff] %v630_v35  ;;  %v632_v36 = vld [vmem:[%s3584_s26 + $0xe40] sm:$0xff]  ;;  %v634_v37 = vld [vmem:[%s3584_s26 + $0xe48] sm:$0xff] }
  0x82   : > { %v636_v38 = vld [vmem:[%s3584_s26 + $0xe60] sm:$0xff]  ;;  %633 = vst [vmem:[%s3589_s27 + $0x720] sm:$0xff] %v632_v36  ;;  %635 = vst [vmem:[%s3589_s27 + $0x728] sm:$0xff] %v634_v37  ;;  %v638_v39 = vld [vmem:[%s3584_s26 + $0xe68] sm:$0xff] }
  0x83   : > { %637 = vst [vmem:[%s3589_s27 + $0x730] sm:$0xff] %v636_v38  ;;  %v640_v40 = vld [vmem:[%s3584_s26 + $0xe80] sm:$0xff]  ;;  %v642_v41 = vld [vmem:[%s3584_s26 + $0xe88] sm:$0xff]  ;;  %639 = vst [vmem:[%s3589_s27 + $0x738] sm:$0xff] %v638_v39 }
  0x84   : > { %641 = vst [vmem:[%s3589_s27 + $0x740] sm:$0xff] %v640_v40  ;;  %643 = vst [vmem:[%s3589_s27 + $0x748] sm:$0xff] %v642_v41  ;;  %v644_v42 = vld [vmem:[%s3584_s26 + $0xea0] sm:$0xff]  ;;  %v646_v43 = vld [vmem:[%s3584_s26 + $0xea8] sm:$0xff] }
  0x85   : > { %v648_v44 = vld [vmem:[%s3584_s26 + $0xec0] sm:$0xff]  ;;  %645 = vst [vmem:[%s3589_s27 + $0x750] sm:$0xff] %v644_v42  ;;  %647 = vst [vmem:[%s3589_s27 + $0x758] sm:$0xff] %v646_v43  ;;  %v650_v45 = vld [vmem:[%s3584_s26 + $0xec8] sm:$0xff] }
  0x86   : > { %649 = vst [vmem:[%s3589_s27 + $0x760] sm:$0xff] %v648_v44  ;;  %v652_v46 = vld [vmem:[%s3584_s26 + $0xee0] sm:$0xff]  ;;  %v654_v47 = vld [vmem:[%s3584_s26 + $0xee8] sm:$0xff]  ;;  %651 = vst [vmem:[%s3589_s27 + $0x768] sm:$0xff] %v650_v45 }
  0x87   : > { %653 = vst [vmem:[%s3589_s27 + $0x770] sm:$0xff] %v652_v46  ;;  %655 = vst [vmem:[%s3589_s27 + $0x778] sm:$0xff] %v654_v47  ;;  %v656_v48 = vld [vmem:[%s3584_s26 + $0xf00] sm:$0xff]  ;;  %v658_v49 = vld [vmem:[%s3584_s26 + $0xf08] sm:$0xff] }
  0x88   : > { %v660_v50 = vld [vmem:[%s3584_s26 + $0xf20] sm:$0xff]  ;;  %657 = vst [vmem:[%s3589_s27 + $0x780] sm:$0xff] %v656_v48  ;;  %659 = vst [vmem:[%s3589_s27 + $0x788] sm:$0xff] %v658_v49  ;;  %v662_v51 = vld [vmem:[%s3584_s26 + $0xf28] sm:$0xff] }
  0x89   : > { %661 = vst [vmem:[%s3589_s27 + $0x790] sm:$0xff] %v660_v50  ;;  %v664_v52 = vld [vmem:[%s3584_s26 + $0xf40] sm:$0xff]  ;;  %v666_v53 = vld [vmem:[%s3584_s26 + $0xf48] sm:$0xff]  ;;  %663 = vst [vmem:[%s3589_s27 + $0x798] sm:$0xff] %v662_v51 }
  0x8a   : > { %665 = vst [vmem:[%s3589_s27 + $0x7a0] sm:$0xff] %v664_v52  ;;  %667 = vst [vmem:[%s3589_s27 + $0x7a8] sm:$0xff] %v666_v53  ;;  %v668_v54 = vld [vmem:[%s3584_s26 + $0xf60] sm:$0xff]  ;;  %v670_v55 = vld [vmem:[%s3584_s26 + $0xf68] sm:$0xff] }
  0x8b   : > { %v672_v56 = vld [vmem:[%s3584_s26 + $0xf80] sm:$0xff]  ;;  %669 = vst [vmem:[%s3589_s27 + $0x7b0] sm:$0xff] %v668_v54  ;;  %671 = vst [vmem:[%s3589_s27 + $0x7b8] sm:$0xff] %v670_v55  ;;  %v674_v57 = vld [vmem:[%s3584_s26 + $0xf88] sm:$0xff] }
  0x8c   : > { %673 = vst [vmem:[%s3589_s27 + $0x7c0] sm:$0xff] %v672_v56  ;;  %v676_v58 = vld [vmem:[%s3584_s26 + $0xfa0] sm:$0xff]  ;;  %v678_v59 = vld [vmem:[%s3584_s26 + $0xfa8] sm:$0xff]  ;;  %675 = vst [vmem:[%s3589_s27 + $0x7c8] sm:$0xff] %v674_v57 }
  0x8d   : > { %677 = vst [vmem:[%s3589_s27 + $0x7d0] sm:$0xff] %v676_v58  ;;  %679 = vst [vmem:[%s3589_s27 + $0x7d8] sm:$0xff] %v678_v59  ;;  %v680_v60 = vld [vmem:[%s3584_s26 + $0xfc0] sm:$0xff]  ;;  %v682_v61 = vld [vmem:[%s3584_s26 + $0xfc8] sm:$0xff] }
  0x8e   : > { %v684_v62 = vld [vmem:[%s3584_s26 + $0xfe0] sm:$0xff]  ;;  %681 = vst [vmem:[%s3589_s27 + $0x7e0] sm:$0xff] %v680_v60  ;;  %683 = vst [vmem:[%s3589_s27 + $0x7e8] sm:$0xff] %v682_v61  ;;  %v686_v63 = vld [vmem:[%s3584_s26 + $0xfe8] sm:$0xff] }
  0x8f   : > { %685 = vst [vmem:[%s3589_s27 + $0x7f0] sm:$0xff] %v684_v62  ;;  %687 = vst [vmem:[%s3589_s27 + $0x7f8] sm:$0xff] %v686_v63 }
  0x90 PF: > { %p2793_p6 = scmp.ge.s32.totalorder %s3519_s16, 1  ;;  %p700_p7 = scmp.lt.s32.totalorder %s3519_s16, 3 }
  0x92   : > { %p701_p8 = pnand %p2793_p6, %p700_p7 }
  0x93   : > { %s707_s28 = sand.u32 (!%p701_p8), 1, %s3503_s12   ;;  %s2795_s26 = sshll.u32 (!%p701_p8), %s3511_s14, 2 }
  0x94   : > { %704 = sbr.rel (%p701_p8) target bundleno = 612 (0x264), region = 51  ;;  %s2794_s6 = sshll.u32 (!%p701_p8), %s707_s28, 11 }
  0x95   : > { %s4113_s7 = scalar_lea.vmem (!%p701_p8), [#allocation2], %s2794_s6  ;;  %p750_p9 = scmp.lt.s32.totalorder (!%p701_p8), %s2795_s26, 7 }
  0x99   : > { %v765_v0 = vld [vmem:[%s4445_s0 + $0x8] sm:$0xff]  ;;  %v767_v1 = vld [vmem:[%s4445_s0 + $0x18] sm:$0xff]  ;;  %v3097_v4 = vld [vmem:[%s4113_s7 + $0xe4] ss:$16 sps:$4 sm:$0xff]   ;;  %s4456_s26 = smov (!%p750_p9, %s2795_s26), 7 }
  0x9a   : > { %v4109_v2 = vpack.c.bf16 %v765_v0, %v765_v0  ;;  %v4111_v3 = vpack.c.bf16 %v767_v1, %v767_v1  ;;  %v3099_v5 = vld [vmem:[%s4113_s7 + $0x2e4] ss:$16 sps:$4 sm:$0xff]   ;;  %2338 = vmatprep.subr.bf16.mxu0 %v3097_v4  ;;  %v3101_v6 = vld [vmem:[%s4113_s7 + $0xe0] ss:$16 sps:$4 sm:$0xff]   ;;  %s752_s29 = scalar_lea.vmem %s4447_s2, %s4456_s26  ;;  %s2797_s14 = sshll.u32 %s4456_s26, 3 }
  0x9b   : > { %v3102_v7 = vld [vmem:[%s4113_s7 + $0x2e0] ss:$16 sps:$4 sm:$0xff]   ;;  %2379 = vmatprep.subr.bf16.mxu1 %v3099_v5  ;;  %v3103_v8 = vld [vmem:[%s4113_s7 + $0xc4] ss:$16 sps:$4 sm:$0xff]   ;;  %2339 = vmatpush1.bf16.msra.mxu0 %v3101_v6  ;;  %s4424_s5 = scalar_lea.vmem %s4448_s3, %s2797_s14 }
  0x9c   : > { %2370 = vmatprep.mubr.bf16.mxu0 %v4109_v2  ;;  %2411 = vmatprep.mubr.bf16.mxu1 %v4111_v3  ;;  %v3105_v9 = vld [vmem:[%s4113_s7 + $0x2c4] ss:$16 sps:$4 sm:$0xff]   ;;  %v3107_v10 = vld [vmem:[%s4113_s7 + $0xc0] ss:$16 sps:$4 sm:$0xff]  }
  0x9d   : > { %2380 = vmatpush1.bf16.msra.mxu1 %v3102_v7  ;;  %2340 = vmatprep.subr.bf16.mxu0 %v3103_v8  ;;  %v3108_v11 = vld [vmem:[%s4113_s7 + $0x2c0] ss:$16 sps:$4 sm:$0xff]   ;;  %v3109_v12 = vld [vmem:[%s4113_s7 + $0xa4] ss:$16 sps:$4 sm:$0xff]  }
  0x9e   : > { %2381 = vmatprep.subr.bf16.mxu1 %v3105_v9  ;;  %v3111_v13 = vld [vmem:[%s4113_s7 + $0x2a4] ss:$16 sps:$4 sm:$0xff]   ;;  %v3113_v14 = vld [vmem:[%s4113_s7 + $0xa0] ss:$16 sps:$4 sm:$0xff]  }
  0x9f   : > { %v3114_v15 = vld [vmem:[%s4113_s7 + $0x2a0] ss:$16 sps:$4 sm:$0xff]   ;;  %2341 = vmatpush1.bf16.msra.mxu0 %v3107_v10  ;;  %v3115_v16 = vld [vmem:[%s4113_s7 + $0x84] ss:$16 sps:$4 sm:$0xff]   ;;  %v769_v10 = vld [vmem:[%s4445_s0 + $0x28] sm:$0xff] }
  0xa0   : > { %2342 = vmatprep.subr.bf16.mxu0 %v3109_v12  ;;  %v3117_v17 = vld [vmem:[%s4113_s7 + $0x284] ss:$16 sps:$4 sm:$0xff]   ;;  %v3119_v18 = vld [vmem:[%s4113_s7 + $0x80] ss:$16 sps:$4 sm:$0xff]  }
  0xa1   : > { %2382 = vmatpush1.bf16.msra.mxu1 %v3108_v11  ;;  %v3120_v19 = vld [vmem:[%s4113_s7 + $0x280] ss:$16 sps:$4 sm:$0xff]   ;;  %v3121_v20 = vld [vmem:[%s4113_s7 + $0x64] ss:$16 sps:$4 sm:$0xff]   ;;  %v771_v11 = vld [vmem:[%s4445_s0 + $0x38] sm:$0xff] }
  0xa2   : > { %2383 = vmatprep.subr.bf16.mxu1 %v3111_v13  ;;  %v3123_v21 = vld [vmem:[%s4113_s7 + $0x264] ss:$16 sps:$4 sm:$0xff]   ;;  %v3125_v22 = vld [vmem:[%s4113_s7 + $0x60] ss:$16 sps:$4 sm:$0xff]  }
  0xa3   : > { %2343 = vmatpush1.bf16.msra.mxu0 %v3113_v14  ;;  %v3126_v23 = vld [vmem:[%s4113_s7 + $0x260] ss:$16 sps:$4 sm:$0xff]   ;;  %v3127_v24 = vld [vmem:[%s4113_s7 + $0x44] ss:$16 sps:$4 sm:$0xff]  }
  0xa4   : > { %2344 = vmatprep.subr.bf16.mxu0 %v3115_v16  ;;  %v3129_v25 = vld [vmem:[%s4113_s7 + $0x244] ss:$16 sps:$4 sm:$0xff]   ;;  %v3131_v26 = vld [vmem:[%s4113_s7 + $0x40] ss:$16 sps:$4 sm:$0xff]  }
  0xa5   : > { %2384 = vmatpush1.bf16.msra.mxu1 %v3114_v15  ;;  %v3132_v27 = vld [vmem:[%s4113_s7 + $0x240] ss:$16 sps:$4 sm:$0xff]   ;;  %v3133_v28 = vld [vmem:[%s4113_s7 + $0x24] ss:$16 sps:$4 sm:$0xff]  }
  0xa6   : > { %2385 = vmatprep.subr.bf16.mxu1 %v3117_v17  ;;  %v3135_v29 = vld [vmem:[%s4113_s7 + $0x224] ss:$16 sps:$4 sm:$0xff]   ;;  %v3137_v30 = vld [vmem:[%s4113_s7 + $0x20] ss:$16 sps:$4 sm:$0xff]  }
  0xa7   : > { %2345 = vmatpush1.bf16.msra.mxu0 %v3119_v18  ;;  %v3138_v31 = vld [vmem:[%s4113_s7 + $0x220] ss:$16 sps:$4 sm:$0xff]   ;;  %v3139_v32 = vld [vmem:[%s4113_s7 + $0x4] ss:$16 sps:$4 sm:$0xff]   ;;  %v4203_v18 = vpack.c.bf16 %v769_v10, %v769_v10 }
  0xa8   : > { %2346 = vmatprep.subr.bf16.mxu0 %v3121_v20  ;;  %v3141_v33 = vld [vmem:[%s4113_s7 + $0x204] ss:$16 sps:$4 sm:$0xff]   ;;  %v3143_v34 = vld [vmem:[%s4113_s7] ss:$16 sps:$4 sm:$0xff]  }
  0xa9   : > { %2386 = vmatpush1.bf16.msra.mxu1 %v3120_v19  ;;  %v3144_v35 = vld [vmem:[%s4113_s7 + $0x200] ss:$16 sps:$4 sm:$0xff]   ;;  %v3145_v36 = vld [vmem:[%s4113_s7 + $0x1e4] ss:$16 sps:$4 sm:$0xff]   ;;  %v4205_v19 = vpack.c.bf16 %v771_v11, %v771_v11 }
  0xaa   : > { %2387 = vmatprep.subr.bf16.mxu1 %v3123_v21  ;;  %v3147_v37 = vld [vmem:[%s4113_s7 + $0x3e4] ss:$16 sps:$4 sm:$0xff]   ;;  %v3149_v38 = vld [vmem:[%s4113_s7 + $0x1e0] ss:$16 sps:$4 sm:$0xff]  }
  0xab   : > { %2347 = vmatpush1.bf16.msra.mxu0 %v3125_v22  ;;  %v3150_v39 = vld [vmem:[%s4113_s7 + $0x3e0] ss:$16 sps:$4 sm:$0xff]   ;;  %v3151_v40 = vld [vmem:[%s4113_s7 + $0x1c4] ss:$16 sps:$4 sm:$0xff]  }
  0xac   : > { %2348 = vmatprep.subr.bf16.mxu0 %v3127_v24  ;;  %v3153_v41 = vld [vmem:[%s4113_s7 + $0x3c4] ss:$16 sps:$4 sm:$0xff]   ;;  %v3155_v42 = vld [vmem:[%s4113_s7 + $0x1c0] ss:$16 sps:$4 sm:$0xff]  }
  0xad   : > { %2388 = vmatpush1.bf16.msra.mxu1 %v3126_v23  ;;  %v3156_v43 = vld [vmem:[%s4113_s7 + $0x3c0] ss:$16 sps:$4 sm:$0xff]   ;;  %v3157_v44 = vld [vmem:[%s4113_s7 + $0x1a4] ss:$16 sps:$4 sm:$0xff]  }
  0xae   : > { %2389 = vmatprep.subr.bf16.mxu1 %v3129_v25  ;;  %v3159_v45 = vld [vmem:[%s4113_s7 + $0x3a4] ss:$16 sps:$4 sm:$0xff]   ;;  %v3161_v46 = vld [vmem:[%s4113_s7 + $0x1a0] ss:$16 sps:$4 sm:$0xff]  }
  0xaf   : > { %2349 = vmatpush1.bf16.msra.mxu0 %v3131_v26  ;;  %v3162_v47 = vld [vmem:[%s4113_s7 + $0x3a0] ss:$16 sps:$4 sm:$0xff]   ;;  %v3163_v48 = vld [vmem:[%s4113_s7 + $0x184] ss:$16 sps:$4 sm:$0xff]  }
  0xb0   : > { %2350 = vmatprep.subr.bf16.mxu0 %v3133_v28  ;;  %v3165_v49 = vld [vmem:[%s4113_s7 + $0x384] ss:$16 sps:$4 sm:$0xff]   ;;  %v3167_v50 = vld [vmem:[%s4113_s7 + $0x180] ss:$16 sps:$4 sm:$0xff]  }
  0xb1   : > { %2390 = vmatpush1.bf16.msra.mxu1 %v3132_v27  ;;  %v3168_v51 = vld [vmem:[%s4113_s7 + $0x380] ss:$16 sps:$4 sm:$0xff]   ;;  %v3169_v52 = vld [vmem:[%s4113_s7 + $0x164] ss:$16 sps:$4 sm:$0xff]  }
  0xb2   : > { %2391 = vmatprep.subr.bf16.mxu1 %v3135_v29  ;;  %v3171_v53 = vld [vmem:[%s4113_s7 + $0x364] ss:$16 sps:$4 sm:$0xff]   ;;  %v3173_v54 = vld [vmem:[%s4113_s7 + $0x160] ss:$16 sps:$4 sm:$0xff]  }
  0xb3   : > { %2351 = vmatpush1.bf16.msra.mxu0 %v3137_v30  ;;  %v3174_v55 = vld [vmem:[%s4113_s7 + $0x360] ss:$16 sps:$4 sm:$0xff]   ;;  %v3175_v56 = vld [vmem:[%s4113_s7 + $0x144] ss:$16 sps:$4 sm:$0xff]  }
  0xb4   : > { %2352 = vmatprep.subr.bf16.mxu0 %v3139_v32  ;;  %v3177_v57 = vld [vmem:[%s4113_s7 + $0x344] ss:$16 sps:$4 sm:$0xff]   ;;  %v3179_v58 = vld [vmem:[%s4113_s7 + $0x140] ss:$16 sps:$4 sm:$0xff]  }
  0xb5   : > { %2392 = vmatpush1.bf16.msra.mxu1 %v3138_v31  ;;  %v3180_v59 = vld [vmem:[%s4113_s7 + $0x340] ss:$16 sps:$4 sm:$0xff]   ;;  %v3181_v60 = vld [vmem:[%s4113_s7 + $0x124] ss:$16 sps:$4 sm:$0xff]  }
  0xb6   : > { %2393 = vmatprep.subr.bf16.mxu1 %v3141_v33  ;;  %v3183_v61 = vld [vmem:[%s4113_s7 + $0x324] ss:$16 sps:$4 sm:$0xff]   ;;  %v3185_v62 = vld [vmem:[%s4113_s7 + $0x120] ss:$16 sps:$4 sm:$0xff]  }
  0xb7   : > { %2353 = vmatpush1.bf16.msra.mxu0 %v3143_v34  ;;  %v3186_v63 = vld [vmem:[%s4113_s7 + $0x320] ss:$16 sps:$4 sm:$0xff]   ;;  %v3187_v0 = vld [vmem:[%s4113_s7 + $0x104] ss:$16 sps:$4 sm:$0xff]  }
  0xb8   : > { %2354 = vmatprep.subr.bf16.mxu0 %v3145_v36  ;;  %v3189_v1 = vld [vmem:[%s4113_s7 + $0x304] ss:$16 sps:$4 sm:$0xff]   ;;  %v3191_v6 = vld [vmem:[%s4113_s7 + $0x100] ss:$16 sps:$4 sm:$0xff]  }
  0xb9   : > { %2394 = vmatpush1.bf16.msra.mxu1 %v3144_v35  ;;  %v764_v4 = vld [vmem:[%s4445_s0] sm:$0xff]  ;;  %v766_v5 = vld [vmem:[%s4445_s0 + $0x10] sm:$0xff] }
  0xba   : > { %2395 = vmatprep.subr.bf16.mxu1 %v3147_v37  ;;  %v3192_v7 = vld [vmem:[%s4113_s7 + $0x300] ss:$16 sps:$4 sm:$0xff]   ;;  %v3195_v8 = vld [vmem:[%s4113_s7 + $0x4e4] ss:$16 sps:$4 sm:$0xff]   ;;  %v4195_v12 = vpack.c.bf16 %v764_v4, %v764_v4  ;;  %v4197_v13 = vpack.c.bf16 %v766_v5, %v766_v5 }
  0xbb   : > { %2355 = vmatpush2.bf16.msra.mxu0 %v3149_v38  ;;  %v3198_v9 = vld [vmem:[%s4113_s7 + $0x6e4] ss:$16 sps:$4 sm:$0xff]   ;;  %v3193_v14 = vld [vmem:[%s4113_s7 + $0x4e0] ss:$16 sps:$4 sm:$0xff]  }
  0xbc   : > { %2356 = vmatprep.subr.bf16.mxu0 %v3151_v40  ;;  %v3196_v15 = vld [vmem:[%s4113_s7 + $0x6e0] ss:$16 sps:$4 sm:$0xff]   ;;  %v3201_v16 = vld [vmem:[%s4113_s7 + $0x4c4] ss:$16 sps:$4 sm:$0xff]  }
  0xbd   : > { %2396 = vmatpush2.bf16.msra.mxu1 %v3150_v39  ;;  %v3204_v17 = vld [vmem:[%s4113_s7 + $0x6c4] ss:$16 sps:$4 sm:$0xff]   ;;  %v3199_v20 = vld [vmem:[%s4113_s7 + $0x4c0] ss:$16 sps:$4 sm:$0xff]  }
  0xbe   : > { %2397 = vmatprep.subr.bf16.mxu1 %v3153_v41  ;;  %v3202_v21 = vld [vmem:[%s4113_s7 + $0x6c0] ss:$16 sps:$4 sm:$0xff]   ;;  %v3207_v22 = vld [vmem:[%s4113_s7 + $0x4a4] ss:$16 sps:$4 sm:$0xff]  }
  0xbf   : > { %2357 = vmatpush2.bf16.msra.mxu0 %v3155_v42  ;;  %v3210_v23 = vld [vmem:[%s4113_s7 + $0x6a4] ss:$16 sps:$4 sm:$0xff]   ;;  %v3205_v24 = vld [vmem:[%s4113_s7 + $0x4a0] ss:$16 sps:$4 sm:$0xff]  }
  0xc0   : > { %2358 = vmatprep.subr.bf16.mxu0 %v3157_v44  ;;  %v3208_v25 = vld [vmem:[%s4113_s7 + $0x6a0] ss:$16 sps:$4 sm:$0xff]   ;;  %v3213_v26 = vld [vmem:[%s4113_s7 + $0x484] ss:$16 sps:$4 sm:$0xff]  }
  0xc1   : > { %2398 = vmatpush2.bf16.msra.mxu1 %v3156_v43  ;;  %v3216_v27 = vld [vmem:[%s4113_s7 + $0x684] ss:$16 sps:$4 sm:$0xff]   ;;  %v3211_v28 = vld [vmem:[%s4113_s7 + $0x480] ss:$16 sps:$4 sm:$0xff]  }
  0xc2   : > { %2399 = vmatprep.subr.bf16.mxu1 %v3159_v45  ;;  %v3214_v29 = vld [vmem:[%s4113_s7 + $0x680] ss:$16 sps:$4 sm:$0xff]   ;;  %v3219_v30 = vld [vmem:[%s4113_s7 + $0x464] ss:$16 sps:$4 sm:$0xff]  }
  0xc3   : > { %2359 = vmatpush2.bf16.msra.mxu0 %v3161_v46  ;;  %v3222_v31 = vld [vmem:[%s4113_s7 + $0x664] ss:$16 sps:$4 sm:$0xff]   ;;  %v3217_v32 = vld [vmem:[%s4113_s7 + $0x460] ss:$16 sps:$4 sm:$0xff]  }
  0xc4   : > { %2360 = vmatprep.subr.bf16.mxu0 %v3163_v48  ;;  %v3220_v33 = vld [vmem:[%s4113_s7 + $0x660] ss:$16 sps:$4 sm:$0xff]   ;;  %v3225_v34 = vld [vmem:[%s4113_s7 + $0x444] ss:$16 sps:$4 sm:$0xff]  }
  0xc5   : > { %2400 = vmatpush2.bf16.msra.mxu1 %v3162_v47  ;;  %v3228_v35 = vld [vmem:[%s4113_s7 + $0x644] ss:$16 sps:$4 sm:$0xff]   ;;  %v3223_v36 = vld [vmem:[%s4113_s7 + $0x440] ss:$16 sps:$4 sm:$0xff]  }
  0xc6   : > { %2401 = vmatprep.subr.bf16.mxu1 %v3165_v49  ;;  %v3226_v37 = vld [vmem:[%s4113_s7 + $0x640] ss:$16 sps:$4 sm:$0xff]   ;;  %v3231_v38 = vld [vmem:[%s4113_s7 + $0x424] ss:$16 sps:$4 sm:$0xff]  }
  0xc7   : > { %2361 = vmatpush2.bf16.msra.mxu0 %v3167_v50  ;;  %v3234_v39 = vld [vmem:[%s4113_s7 + $0x624] ss:$16 sps:$4 sm:$0xff]   ;;  %v3229_v40 = vld [vmem:[%s4113_s7 + $0x420] ss:$16 sps:$4 sm:$0xff]  }
  0xc8   : > { %2362 = vmatprep.subr.bf16.mxu0 %v3169_v52  ;;  %v3232_v41 = vld [vmem:[%s4113_s7 + $0x620] ss:$16 sps:$4 sm:$0xff]   ;;  %v3237_v42 = vld [vmem:[%s4113_s7 + $0x404] ss:$16 sps:$4 sm:$0xff]  }
  0xc9   : > { %2402 = vmatpush2.bf16.msra.mxu1 %v3168_v51  ;;  %v3240_v43 = vld [vmem:[%s4113_s7 + $0x604] ss:$16 sps:$4 sm:$0xff]   ;;  %v3235_v44 = vld [vmem:[%s4113_s7 + $0x400] ss:$16 sps:$4 sm:$0xff]  }
  0xca   : > { %2403 = vmatprep.subr.bf16.mxu1 %v3171_v53  ;;  %v3238_v45 = vld [vmem:[%s4113_s7 + $0x600] ss:$16 sps:$4 sm:$0xff]   ;;  %v3243_v46 = vld [vmem:[%s4113_s7 + $0x5e4] ss:$16 sps:$4 sm:$0xff]  }
  0xcb   : > { %2363 = vmatpush2.bf16.msra.mxu0 %v3173_v54  ;;  %v3246_v47 = vld [vmem:[%s4113_s7 + $0x7e4] ss:$16 sps:$4 sm:$0xff]   ;;  %v3241_v48 = vld [vmem:[%s4113_s7 + $0x5e0] ss:$16 sps:$4 sm:$0xff]  }
  0xcc   : > { %2364 = vmatprep.subr.bf16.mxu0 %v3175_v56  ;;  %v3244_v49 = vld [vmem:[%s4113_s7 + $0x7e0] ss:$16 sps:$4 sm:$0xff]   ;;  %v3249_v50 = vld [vmem:[%s4113_s7 + $0x5c4] ss:$16 sps:$4 sm:$0xff]  }
  0xcd   : > { %2404 = vmatpush2.bf16.msra.mxu1 %v3174_v55  ;;  %v3252_v51 = vld [vmem:[%s4113_s7 + $0x7c4] ss:$16 sps:$4 sm:$0xff]   ;;  %v3247_v52 = vld [vmem:[%s4113_s7 + $0x5c0] ss:$16 sps:$4 sm:$0xff]  }
  0xce   : > { %2405 = vmatprep.subr.bf16.mxu1 %v3177_v57  ;;  %v3250_v53 = vld [vmem:[%s4113_s7 + $0x7c0] ss:$16 sps:$4 sm:$0xff]   ;;  %v3255_v54 = vld [vmem:[%s4113_s7 + $0x5a4] ss:$16 sps:$4 sm:$0xff]  }
  0xcf   : > { %2365 = vmatpush2.bf16.msra.mxu0 %v3179_v58  ;;  %v3258_v55 = vld [vmem:[%s4113_s7 + $0x7a4] ss:$16 sps:$4 sm:$0xff]   ;;  %v3253_v56 = vld [vmem:[%s4113_s7 + $0x5a0] ss:$16 sps:$4 sm:$0xff]  }
  0xd0   : > { %2366 = vmatprep.subr.bf16.mxu0 %v3181_v60  ;;  %v3256_v57 = vld [vmem:[%s4113_s7 + $0x7a0] ss:$16 sps:$4 sm:$0xff]   ;;  %v3261_v58 = vld [vmem:[%s4113_s7 + $0x584] ss:$16 sps:$4 sm:$0xff]  }
  0xd1   : > { %2406 = vmatpush2.bf16.msra.mxu1 %v3180_v59  ;;  %v3264_v59 = vld [vmem:[%s4113_s7 + $0x784] ss:$16 sps:$4 sm:$0xff]   ;;  %v3259_v60 = vld [vmem:[%s4113_s7 + $0x580] ss:$16 sps:$4 sm:$0xff]  }
  0xd2   : > { %2407 = vmatprep.subr.bf16.mxu1 %v3183_v61  ;;  %v3262_v61 = vld [vmem:[%s4113_s7 + $0x780] ss:$16 sps:$4 sm:$0xff]   ;;  %v3273_v4 = vld [vmem:[%s4113_s7 + $0x544] ss:$16 sps:$4 sm:$0xff]  }
  0xd3   : > { %2367 = vmatpush2.bf16.msra.mxu0 %v3185_v62  ;;  %v3267_v62 = vld [vmem:[%s4113_s7 + $0x564] ss:$16 sps:$4 sm:$0xff]   ;;  %v3277_v10 = vld [vmem:[%s4113_s7 + $0x520] ss:$16 sps:$4 sm:$0xff]  }
  0xd4   : > { %2368 = vmatprep.subr.bf16.mxu0 %v3187_v0  ;;  %v3265_v0 = vld [vmem:[%s4113_s7 + $0x560] ss:$16 sps:$4 sm:$0xff]   ;;  %v3276_v5 = vld [vmem:[%s4113_s7 + $0x744] ss:$16 sps:$4 sm:$0xff]  }
  0xd5   : > { %2408 = vmatpush2.bf16.msra.mxu1 %v3186_v63  ;;  %v3270_v63 = vld [vmem:[%s4113_s7 + $0x764] ss:$16 sps:$4 sm:$0xff]   ;;  %v3280_v11 = vld [vmem:[%s4113_s7 + $0x720] ss:$16 sps:$4 sm:$0xff]  }
  0xd6   : > { %2409 = vmatprep.subr.bf16.mxu1 %v3189_v1  ;;  %v3268_v1 = vld [vmem:[%s4113_s7 + $0x760] ss:$16 sps:$4 sm:$0xff]  }
  0xd7   : > { %2369 = vmatpush2.bf16.msra.mxu0 %v3191_v6  ;;  %v3271_v6 = vld [vmem:[%s4113_s7 + $0x540] ss:$16 sps:$4 sm:$0xff]  }
  0xd8   : > { %2420 = vmatprep.subr.bf16.mxu0 %v3195_v8  ;;  %v3279_v8 = vld [vmem:[%s4113_s7 + $0x524] ss:$16 sps:$4 sm:$0xff]  }
  0xd9   : > { %2410 = vmatpush2.bf16.msra.mxu1 %v3192_v7  ;;  %v3274_v7 = vld [vmem:[%s4113_s7 + $0x740] ss:$16 sps:$4 sm:$0xff]  }
  0xda   : > { %2461 = vmatprep.subr.bf16.mxu1 %v3198_v9  ;;  %2371 = vmatmul.mubr.bf16.vlgmr.msra.gmra.mxu0 %v4195_v12  ;;  %v3282_v9 = vld [vmem:[%s4113_s7 + $0x724] ss:$16 sps:$4 sm:$0xff]  }
  0xdb   : > { %2421 = vmatpush1.bf16.msra.mxu0 %v3193_v14  ;;  %2452 = vmatprep.mubr.bf16.mxu0 %v4203_v18  ;;  %v3285_v14 = vld [vmem:[%s4113_s7 + $0x504] ss:$16 sps:$4 sm:$0xff]  }
  0xdc   : > { %2412 = vmatmul.mubr.bf16.vlgmr.msra.gmra.mxu1 %v4197_v13  ;;  %2422 = vmatprep.subr.bf16.mxu0 %v3201_v16  ;;  %v3283_v16 = vld [vmem:[%s4113_s7 + $0x500] ss:$16 sps:$4 sm:$0xff]  }
  0xdd   : > { %2462 = vmatpush1.bf16.msra.mxu1 %v3196_v15  ;;  %2493 = vmatprep.mubr.bf16.mxu1 %v4205_v19  ;;  %v3288_v15 = vld [vmem:[%s4113_s7 + $0x704] ss:$16 sps:$4 sm:$0xff]  }
  0xde   : > { %2463 = vmatprep.subr.bf16.mxu1 %v3204_v17  ;;  %v3286_v17 = vld [vmem:[%s4113_s7 + $0x700] ss:$16 sps:$4 sm:$0xff]  }
  0xdf   : > { %2423 = vmatpush1.bf16.msra.mxu0 %v3199_v20  ;;  %v768_v20 = vld [vmem:[%s4445_s0 + $0x20] sm:$0xff] }
  0xe0   : > { %2424 = vmatprep.subr.bf16.mxu0 %v3207_v22  ;;  %v3291_v22 = vld [vmem:[%s4113_s7 + $0xec] ss:$16 sps:$4 sm:$0xff]  }
  0xe1   : > { %2464 = vmatpush1.bf16.msra.mxu1 %v3202_v21  ;;  %v770_v21 = vld [vmem:[%s4445_s0 + $0x30] sm:$0xff] }
  0xe2   : > { %2465 = vmatprep.subr.bf16.mxu1 %v3210_v23  ;;  %v3294_v23 = vld [vmem:[%s4113_s7 + $0x2ec] ss:$16 sps:$4 sm:$0xff]  }
  0xe3   : > { %2425 = vmatpush1.bf16.msra.mxu0 %v3205_v24  ;;  %v4277_v24 = vpack.c.bf16 %v768_v20, %v768_v20  ;;  %v3375_v20 = vld [vmem:[%s4113_s7 + $0x12c] ss:$16 sps:$4 sm:$0xff]  }
  0xe4   : > { %2426 = vmatprep.subr.bf16.mxu0 %v3213_v26  ;;  %v3289_v26 = vld [vmem:[%s4113_s7 + $0xe8] ss:$16 sps:$4 sm:$0xff]  }
  0xe5   : > { %2466 = vmatpush1.bf16.msra.mxu1 %v3208_v25  ;;  %v4279_v25 = vpack.c.bf16 %v770_v21, %v770_v21  ;;  %v3378_v21 = vld [vmem:[%s4113_s7 + $0x32c] ss:$16 sps:$4 sm:$0xff]  }
  0xe6   : > { %2467 = vmatprep.subr.bf16.mxu1 %v3216_v27  ;;  %v3292_v27 = vld [vmem:[%s4113_s7 + $0x2e8] ss:$16 sps:$4 sm:$0xff]  }
  0xe7   : > { %2427 = vmatpush1.bf16.msra.mxu0 %v3211_v28  ;;  %v3297_v28 = vld [vmem:[%s4113_s7 + $0xcc] ss:$16 sps:$4 sm:$0xff]  }
  0xe8   : > { %2428 = vmatprep.subr.bf16.mxu0 %v3219_v30  ;;  %v3295_v30 = vld [vmem:[%s4113_s7 + $0xc8] ss:$16 sps:$4 sm:$0xff]  }
  0xe9   : > { %2468 = vmatpush1.bf16.msra.mxu1 %v3214_v29  ;;  %v3300_v29 = vld [vmem:[%s4113_s7 + $0x2cc] ss:$16 sps:$4 sm:$0xff]  }
  0xea   : > { %2469 = vmatprep.subr.bf16.mxu1 %v3222_v31  ;;  %v3298_v31 = vld [vmem:[%s4113_s7 + $0x2c8] ss:$16 sps:$4 sm:$0xff]  }
  0xeb   : > { %2429 = vmatpush1.bf16.msra.mxu0 %v3217_v32  ;;  %v3303_v32 = vld [vmem:[%s4113_s7 + $0xac] ss:$16 sps:$4 sm:$0xff]  }
  0xec   : > { %2430 = vmatprep.subr.bf16.mxu0 %v3225_v34  ;;  %v3301_v34 = vld [vmem:[%s4113_s7 + $0xa8] ss:$16 sps:$4 sm:$0xff]  }
  0xed   : > { %2470 = vmatpush1.bf16.msra.mxu1 %v3220_v33  ;;  %v3306_v33 = vld [vmem:[%s4113_s7 + $0x2ac] ss:$16 sps:$4 sm:$0xff]  }
  0xee   : > { %2471 = vmatprep.subr.bf16.mxu1 %v3228_v35  ;;  %v3304_v35 = vld [vmem:[%s4113_s7 + $0x2a8] ss:$16 sps:$4 sm:$0xff]  }
  0xef   : > { %2431 = vmatpush1.bf16.msra.mxu0 %v3223_v36  ;;  %v3309_v36 = vld [vmem:[%s4113_s7 + $0x8c] ss:$16 sps:$4 sm:$0xff]  }
  0xf0   : > { %2432 = vmatprep.subr.bf16.mxu0 %v3231_v38  ;;  %v3307_v38 = vld [vmem:[%s4113_s7 + $0x88] ss:$16 sps:$4 sm:$0xff]  }
  0xf1   : > { %2472 = vmatpush1.bf16.msra.mxu1 %v3226_v37  ;;  %v3312_v37 = vld [vmem:[%s4113_s7 + $0x28c] ss:$16 sps:$4 sm:$0xff]  }
  0xf2   : > { %2473 = vmatprep.subr.bf16.mxu1 %v3234_v39  ;;  %v3318_v39 = vld [vmem:[%s4113_s7 + $0x26c] ss:$16 sps:$4 sm:$0xff]  }
  0xf3   : > { %2433 = vmatpush1.bf16.msra.mxu0 %v3229_v40  ;;  %v3313_v40 = vld [vmem:[%s4113_s7 + $0x68] ss:$16 sps:$4 sm:$0xff]  }
  0xf4   : > { %2434 = vmatprep.subr.bf16.mxu0 %v3237_v42  ;;  %v3321_v42 = vld [vmem:[%s4113_s7 + $0x4c] ss:$16 sps:$4 sm:$0xff]  }
  0xf5   : > { %2474 = vmatpush1.bf16.msra.mxu1 %v3232_v41  ;;  %v3316_v41 = vld [vmem:[%s4113_s7 + $0x268] ss:$16 sps:$4 sm:$0xff]  }
  0xf6   : > { %2475 = vmatprep.subr.bf16.mxu1 %v3240_v43  ;;  %v3324_v43 = vld [vmem:[%s4113_s7 + $0x24c] ss:$16 sps:$4 sm:$0xff]  }
  0xf7   : > { %2435 = vmatpush1.bf16.msra.mxu0 %v3235_v44  ;;  %v3319_v44 = vld [vmem:[%s4113_s7 + $0x48] ss:$16 sps:$4 sm:$0xff]  }
  0xf8   : > { %2436 = vmatprep.subr.bf16.mxu0 %v3243_v46  ;;  %v3327_v46 = vld [vmem:[%s4113_s7 + $0x2c] ss:$16 sps:$4 sm:$0xff]  }
  0xf9   : > { %2476 = vmatpush1.bf16.msra.mxu1 %v3238_v45  ;;  %v3322_v45 = vld [vmem:[%s4113_s7 + $0x248] ss:$16 sps:$4 sm:$0xff]  }
  0xfa   : > { %2477 = vmatprep.subr.bf16.mxu1 %v3246_v47  ;;  %v3330_v47 = vld [vmem:[%s4113_s7 + $0x22c] ss:$16 sps:$4 sm:$0xff]  }
  0xfb   : > { %2437 = vmatpush2.bf16.msra.mxu0 %v3241_v48  ;;  %v3325_v48 = vld [vmem:[%s4113_s7 + $0x28] ss:$16 sps:$4 sm:$0xff]  }
  0xfc   : > { %2438 = vmatprep.subr.bf16.mxu0 %v3249_v50  ;;  %v3333_v50 = vld [vmem:[%s4113_s7 + $0xc] ss:$16 sps:$4 sm:$0xff]  }
  0xfd   : > { %2478 = vmatpush2.bf16.msra.mxu1 %v3244_v49  ;;  %v3328_v49 = vld [vmem:[%s4113_s7 + $0x228] ss:$16 sps:$4 sm:$0xff]  }
  0xfe   : > { %2479 = vmatprep.subr.bf16.mxu1 %v3252_v51  ;;  %v3336_v51 = vld [vmem:[%s4113_s7 + $0x20c] ss:$16 sps:$4 sm:$0xff]  }
  0xff   : > { %2439 = vmatpush2.bf16.msra.mxu0 %v3247_v52  ;;  %v3331_v52 = vld [vmem:[%s4113_s7 + $0x8] ss:$16 sps:$4 sm:$0xff]  }
 0x100   : > { %2440 = vmatprep.subr.bf16.mxu0 %v3255_v54  ;;  %v3339_v54 = vld [vmem:[%s4113_s7 + $0x1ec] ss:$16 sps:$4 sm:$0xff]  }
 0x101   : > { %2480 = vmatpush2.bf16.msra.mxu1 %v3250_v53  ;;  %v3334_v53 = vld [vmem:[%s4113_s7 + $0x208] ss:$16 sps:$4 sm:$0xff]  }
 0x102   : > { %2481 = vmatprep.subr.bf16.mxu1 %v3258_v55  ;;  %v3342_v55 = vld [vmem:[%s4113_s7 + $0x3ec] ss:$16 sps:$4 sm:$0xff]  }
 0x103   : > { %2441 = vmatpush2.bf16.msra.mxu0 %v3253_v56  ;;  %v3337_v56 = vld [vmem:[%s4113_s7 + $0x1e8] ss:$16 sps:$4 sm:$0xff]  }
 0x104   : > { %2442 = vmatprep.subr.bf16.mxu0 %v3261_v58  ;;  %v3345_v58 = vld [vmem:[%s4113_s7 + $0x1cc] ss:$16 sps:$4 sm:$0xff]  }
 0x105   : > { %2482 = vmatpush2.bf16.msra.mxu1 %v3256_v57  ;;  %v3340_v57 = vld [vmem:[%s4113_s7 + $0x3e8] ss:$16 sps:$4 sm:$0xff]  }
 0x106   : > { %2483 = vmatprep.subr.bf16.mxu1 %v3264_v59  ;;  %v3348_v59 = vld [vmem:[%s4113_s7 + $0x3cc] ss:$16 sps:$4 sm:$0xff]  }
 0x107   : > { %2443 = vmatpush2.bf16.msra.mxu0 %v3259_v60  ;;  %v3343_v60 = vld [vmem:[%s4113_s7 + $0x1c8] ss:$16 sps:$4 sm:$0xff]  }
 0x108   : > { %2444 = vmatprep.subr.bf16.mxu0 %v3267_v62  ;;  %v3351_v62 = vld [vmem:[%s4113_s7 + $0x1ac] ss:$16 sps:$4 sm:$0xff]  }
 0x109   : > { %2484 = vmatpush2.bf16.msra.mxu1 %v3262_v61  ;;  %v3346_v61 = vld [vmem:[%s4113_s7 + $0x3c8] ss:$16 sps:$4 sm:$0xff]  }
 0x10a   : > { %2485 = vmatprep.subr.bf16.mxu1 %v3270_v63  ;;  %v3354_v63 = vld [vmem:[%s4113_s7 + $0x3ac] ss:$16 sps:$4 sm:$0xff]  }
 0x10b   : > { %2445 = vmatpush2.bf16.msra.mxu0 %v3265_v0  ;;  %v3349_v0 = vld [vmem:[%s4113_s7 + $0x1a8] ss:$16 sps:$4 sm:$0xff]  }
 0x10c   : > { %2446 = vmatprep.subr.bf16.mxu0 %v3273_v4  ;;  %v3357_v4 = vld [vmem:[%s4113_s7 + $0x18c] ss:$16 sps:$4 sm:$0xff]  }
 0x10d   : > { %2486 = vmatpush2.bf16.msra.mxu1 %v3268_v1  ;;  %v3352_v1 = vld [vmem:[%s4113_s7 + $0x3a8] ss:$16 sps:$4 sm:$0xff]  }
 0x10e   : > { %2487 = vmatprep.subr.bf16.mxu1 %v3276_v5  ;;  %v3360_v5 = vld [vmem:[%s4113_s7 + $0x38c] ss:$16 sps:$4 sm:$0xff]  }
 0x10f   : > { %2447 = vmatpush2.bf16.msra.mxu0 %v3271_v6  ;;  %v3355_v6 = vld [vmem:[%s4113_s7 + $0x188] ss:$16 sps:$4 sm:$0xff]  }
 0x110   : > { %2448 = vmatprep.subr.bf16.mxu0 %v3279_v8  ;;  %v3363_v8 = vld [vmem:[%s4113_s7 + $0x16c] ss:$16 sps:$4 sm:$0xff]  }
 0x111   : > { %2488 = vmatpush2.bf16.msra.mxu1 %v3274_v7  ;;  %v3358_v7 = vld [vmem:[%s4113_s7 + $0x388] ss:$16 sps:$4 sm:$0xff]  }
 0x112   : > { %2489 = vmatprep.subr.bf16.mxu1 %v3282_v9  ;;  %v3366_v9 = vld [vmem:[%s4113_s7 + $0x36c] ss:$16 sps:$4 sm:$0xff]  }
 0x113   : > { %2449 = vmatpush2.bf16.msra.mxu0 %v3277_v10  ;;  %v3361_v10 = vld [vmem:[%s4113_s7 + $0x168] ss:$16 sps:$4 sm:$0xff]  }
 0x114   : > { %2450 = vmatprep.subr.bf16.mxu0 %v3285_v14  ;;  %v3369_v14 = vld [vmem:[%s4113_s7 + $0x14c] ss:$16 sps:$4 sm:$0xff]  }
 0x115   : > { %2490 = vmatpush2.bf16.msra.mxu1 %v3280_v11  ;;  %v3364_v11 = vld [vmem:[%s4113_s7 + $0x368] ss:$16 sps:$4 sm:$0xff]  }
 0x116   : > { %2491 = vmatprep.subr.bf16.mxu1 %v3288_v15  ;;  %v3372_v15 = vld [vmem:[%s4113_s7 + $0x34c] ss:$16 sps:$4 sm:$0xff]  }
 0x117   : > { %2451 = vmatpush2.bf16.msra.mxu0 %v3283_v16  ;;  %v3367_v16 = vld [vmem:[%s4113_s7 + $0x148] ss:$16 sps:$4 sm:$0xff]  }
 0x118   : > { %2502 = vmatprep.subr.bf16.mxu0 %v3291_v22  ;;  %v3373_v22 = vld [vmem:[%s4113_s7 + $0x128] ss:$16 sps:$4 sm:$0xff]  }
 0x119   : > { %2492 = vmatpush2.bf16.msra.mxu1 %v3286_v17  ;;  %v3370_v17 = vld [vmem:[%s4113_s7 + $0x348] ss:$16 sps:$4 sm:$0xff]  }
 0x11a   : > { %2543 = vmatprep.subr.bf16.mxu1 %v3294_v23  ;;  %2453 = vmatmul.mubr.bf16.vlgmr.msra.gmra.mxu0 %v4277_v24  ;;  %v3376_v23 = vld [vmem:[%s4113_s7 + $0x328] ss:$16 sps:$4 sm:$0xff]  }
 0x11b   : > { %2503 = vmatpush1.bf16.msra.mxu0 %v3289_v26  ;;  %2534 = vmatprep.mubr.bf16.mxu0 %v4109_v2  ;;  %v3310_v2 = vld [vmem:[%s4113_s7 + $0x288] ss:$16 sps:$4 sm:$0xff]   ;;  %v3381_v26 = vld [vmem:[%s4113_s7 + $0x10c] ss:$16 sps:$4 sm:$0xff]  }
 0x11c   : > { %2494 = vmatmul.mubr.bf16.vlgmr.msra.gmra.mxu1 %v4279_v25  ;;  %2504 = vmatprep.subr.bf16.mxu0 %v3297_v28  ;;  %v3379_v28 = vld [vmem:[%s4113_s7 + $0x108] ss:$16 sps:$4 sm:$0xff]  }
 0x11d   : > { %2544 = vmatpush1.bf16.msra.mxu1 %v3292_v27  ;;  %2575 = vmatprep.mubr.bf16.mxu1 %v4111_v3  ;;  %v3315_v3 = vld [vmem:[%s4113_s7 + $0x6c] ss:$16 sps:$4 sm:$0xff]  }
 0x11e   : > { %2545 = vmatprep.subr.bf16.mxu1 %v3300_v29  ;;  %v3384_v27 = vld [vmem:[%s4113_s7 + $0x30c] ss:$16 sps:$4 sm:$0xff]   ;;  %v3382_v29 = vld [vmem:[%s4113_s7 + $0x308] ss:$16 sps:$4 sm:$0xff]  }
 0x11f   : > { %2505 = vmatpush1.bf16.msra.mxu0 %v3295_v30  ;;  %v3387_v30 = vld [vmem:[%s4113_s7 + $0x4ec] ss:$16 sps:$4 sm:$0xff]  }
 0x120   : > { %2506 = vmatprep.subr.bf16.mxu0 %v3303_v32  ;;  %v3385_v32 = vld [vmem:[%s4113_s7 + $0x4e8] ss:$16 sps:$4 sm:$0xff]  }
 0x121   : > { %2546 = vmatpush1.bf16.msra.mxu1 %v3298_v31  ;;  %v3390_v31 = vld [vmem:[%s4113_s7 + $0x6ec] ss:$16 sps:$4 sm:$0xff]  }
 0x122   : > { %2547 = vmatprep.subr.bf16.mxu1 %v3306_v33  ;;  %v3388_v33 = vld [vmem:[%s4113_s7 + $0x6e8] ss:$16 sps:$4 sm:$0xff]  }
 0x123   : > { %2507 = vmatpush1.bf16.msra.mxu0 %v3301_v34  ;;  %v3393_v34 = vld [vmem:[%s4113_s7 + $0x4cc] ss:$16 sps:$4 sm:$0xff]  }
 0x124   : > { %2508 = vmatprep.subr.bf16.mxu0 %v3309_v36  ;;  %v3391_v36 = vld [vmem:[%s4113_s7 + $0x4c8] ss:$16 sps:$4 sm:$0xff]  }
 0x125   : > { %2548 = vmatpush1.bf16.msra.mxu1 %v3304_v35  ;;  %v3396_v35 = vld [vmem:[%s4113_s7 + $0x6cc] ss:$16 sps:$4 sm:$0xff]  }
 0x126   : > { %2549 = vmatprep.subr.bf16.mxu1 %v3312_v37  ;;  %v3394_v37 = vld [vmem:[%s4113_s7 + $0x6c8] ss:$16 sps:$4 sm:$0xff]  }
 0x127   : > { %2509 = vmatpush1.bf16.msra.mxu0 %v3307_v38  ;;  %v3399_v38 = vld [vmem:[%s4113_s7 + $0x4ac] ss:$16 sps:$4 sm:$0xff]  }
 0x128   : > { %2510 = vmatprep.subr.bf16.mxu0 %v3315_v3  ;;  %v3405_v3 = vld [vmem:[%s4113_s7 + $0x48c] ss:$16 sps:$4 sm:$0xff]  }
 0x129   : > { %2550 = vmatpush1.bf16.msra.mxu1 %v3310_v2  ;;  %v3402_v2 = vld [vmem:[%s4113_s7 + $0x6ac] ss:$16 sps:$4 sm:$0xff]  }
 0x12a   : > { %2551 = vmatprep.subr.bf16.mxu1 %v3318_v39  ;;  %v3408_v39 = vld [vmem:[%s4113_s7 + $0x68c] ss:$16 sps:$4 sm:$0xff]  }
 0x12b   : > { %2511 = vmatpush1.bf16.msra.mxu0 %v3313_v40  ;;  %v3403_v40 = vld [vmem:[%s4113_s7 + $0x488] ss:$16 sps:$4 sm:$0xff]  }
 0x12c   : > { %2512 = vmatprep.subr.bf16.mxu0 %v3321_v42  ;;  %v3409_v42 = vld [vmem:[%s4113_s7 + $0x468] ss:$16 sps:$4 sm:$0xff]  }
 0x12d   : > { %2552 = vmatpush1.bf16.msra.mxu1 %v3316_v41  ;;  %v3414_v41 = vld [vmem:[%s4113_s7 + $0x66c] ss:$16 sps:$4 sm:$0xff]  }
 0x12e   : > { %2553 = vmatprep.subr.bf16.mxu1 %v3324_v43  ;;  %v3412_v43 = vld [vmem:[%s4113_s7 + $0x668] ss:$16 sps:$4 sm:$0xff]  }
 0x12f   : > { %2513 = vmatpush1.bf16.msra.mxu0 %v3319_v44  ;;  %v3417_v44 = vld [vmem:[%s4113_s7 + $0x44c] ss:$16 sps:$4 sm:$0xff]  }
 0x130   : > { %2514 = vmatprep.subr.bf16.mxu0 %v3327_v46  ;;  %v3415_v46 = vld [vmem:[%s4113_s7 + $0x448] ss:$16 sps:$4 sm:$0xff]  }
 0x131   : > { %2554 = vmatpush1.bf16.msra.mxu1 %v3322_v45  ;;  %v3420_v45 = vld [vmem:[%s4113_s7 + $0x64c] ss:$16 sps:$4 sm:$0xff]  }
 0x132   : > { %2555 = vmatprep.subr.bf16.mxu1 %v3330_v47  ;;  %v3418_v47 = vld [vmem:[%s4113_s7 + $0x648] ss:$16 sps:$4 sm:$0xff]  }
 0x133   : > { %2515 = vmatpush1.bf16.msra.mxu0 %v3325_v48  ;;  %v3423_v48 = vld [vmem:[%s4113_s7 + $0x42c] ss:$16 sps:$4 sm:$0xff]  }
 0x134   : > { %2516 = vmatprep.subr.bf16.mxu0 %v3333_v50  ;;  %v3421_v50 = vld [vmem:[%s4113_s7 + $0x428] ss:$16 sps:$4 sm:$0xff]  }
 0x135   : > { %2556 = vmatpush1.bf16.msra.mxu1 %v3328_v49  ;;  %v3426_v49 = vld [vmem:[%s4113_s7 + $0x62c] ss:$16 sps:$4 sm:$0xff]  }
 0x136   : > { %2557 = vmatprep.subr.bf16.mxu1 %v3336_v51  ;;  %v3424_v51 = vld [vmem:[%s4113_s7 + $0x628] ss:$16 sps:$4 sm:$0xff]  }
 0x137   : > { %2517 = vmatpush1.bf16.msra.mxu0 %v3331_v52  ;;  %v3429_v52 = vld [vmem:[%s4113_s7 + $0x40c] ss:$16 sps:$4 sm:$0xff]  }
 0x138   : > { %2518 = vmatprep.subr.bf16.mxu0 %v3339_v54  ;;  %v3427_v54 = vld [vmem:[%s4113_s7 + $0x408] ss:$16 sps:$4 sm:$0xff]  }
 0x139   : > { %2558 = vmatpush1.bf16.msra.mxu1 %v3334_v53  ;;  %v3432_v53 = vld [vmem:[%s4113_s7 + $0x60c] ss:$16 sps:$4 sm:$0xff]  }
 0x13a   : > { %2559 = vmatprep.subr.bf16.mxu1 %v3342_v55  ;;  %v3430_v55 = vld [vmem:[%s4113_s7 + $0x608] ss:$16 sps:$4 sm:$0xff]  }
 0x13b   : > { %2519 = vmatpush2.bf16.msra.mxu0 %v3337_v56  ;;  %v3435_v56 = vld [vmem:[%s4113_s7 + $0x5ec] ss:$16 sps:$4 sm:$0xff]  }
 0x13c   : > { %2520 = vmatprep.subr.bf16.mxu0 %v3345_v58  ;;  %v3433_v58 = vld [vmem:[%s4113_s7 + $0x5e8] ss:$16 sps:$4 sm:$0xff]  }
 0x13d   : > { %2560 = vmatpush2.bf16.msra.mxu1 %v3340_v57  ;;  %v3438_v57 = vld [vmem:[%s4113_s7 + $0x7ec] ss:$16 sps:$4 sm:$0xff]  }
 0x13e   : > { %2561 = vmatprep.subr.bf16.mxu1 %v3348_v59  ;;  %v3436_v59 = vld [vmem:[%s4113_s7 + $0x7e8] ss:$16 sps:$4 sm:$0xff]  }
 0x13f   : > { %2521 = vmatpush2.bf16.msra.mxu0 %v3343_v60  ;;  %v3441_v60 = vld [vmem:[%s4113_s7 + $0x5cc] ss:$16 sps:$4 sm:$0xff]  }
 0x140   : > { %2522 = vmatprep.subr.bf16.mxu0 %v3351_v62  ;;  %v3439_v62 = vld [vmem:[%s4113_s7 + $0x5c8] ss:$16 sps:$4 sm:$0xff]  }
 0x141   : > { %2562 = vmatpush2.bf16.msra.mxu1 %v3346_v61  ;;  %v3444_v61 = vld [vmem:[%s4113_s7 + $0x7cc] ss:$16 sps:$4 sm:$0xff]  }
 0x142   : > { %2563 = vmatprep.subr.bf16.mxu1 %v3354_v63  ;;  %v3442_v63 = vld [vmem:[%s4113_s7 + $0x7c8] ss:$16 sps:$4 sm:$0xff]  }
 0x143   : > { %2523 = vmatpush2.bf16.msra.mxu0 %v3349_v0  ;;  %v3447_v0 = vld [vmem:[%s4113_s7 + $0x5ac] ss:$16 sps:$4 sm:$0xff]  }
 0x144   : > { %2524 = vmatprep.subr.bf16.mxu0 %v3357_v4  ;;  %v3445_v4 = vld [vmem:[%s4113_s7 + $0x5a8] ss:$16 sps:$4 sm:$0xff]  }
 0x145   : > { %2564 = vmatpush2.bf16.msra.mxu1 %v3352_v1  ;;  %v3450_v1 = vld [vmem:[%s4113_s7 + $0x7ac] ss:$16 sps:$4 sm:$0xff]  }
 0x146   : > { %2565 = vmatprep.subr.bf16.mxu1 %v3360_v5  ;;  %v3448_v5 = vld [vmem:[%s4113_s7 + $0x7a8] ss:$16 sps:$4 sm:$0xff]  }
 0x147   : > { %2525 = vmatpush2.bf16.msra.mxu0 %v3355_v6  ;;  %v3453_v6 = vld [vmem:[%s4113_s7 + $0x58c] ss:$16 sps:$4 sm:$0xff]  }
 0x148   : > { %2526 = vmatprep.subr.bf16.mxu0 %v3363_v8  ;;  %v3451_v8 = vld [vmem:[%s4113_s7 + $0x588] ss:$16 sps:$4 sm:$0xff]  }
 0x149   : > { %2566 = vmatpush2.bf16.msra.mxu1 %v3358_v7  ;;  %v3456_v7 = vld [vmem:[%s4113_s7 + $0x78c] ss:$16 sps:$4 sm:$0xff]  }
 0x14a   : > { %2567 = vmatprep.subr.bf16.mxu1 %v3366_v9  ;;  %v3454_v9 = vld [vmem:[%s4113_s7 + $0x788] ss:$16 sps:$4 sm:$0xff]  }
 0x14b   : > { %2527 = vmatpush2.bf16.msra.mxu0 %v3361_v10  ;;  %v3459_v10 = vld [vmem:[%s4113_s7 + $0x56c] ss:$16 sps:$4 sm:$0xff]  }
 0x14c   : > { %2528 = vmatprep.subr.bf16.mxu0 %v3369_v14  ;;  %v3457_v14 = vld [vmem:[%s4113_s7 + $0x568] ss:$16 sps:$4 sm:$0xff]  }
 0x14d   : > { %2568 = vmatpush2.bf16.msra.mxu1 %v3364_v11  ;;  %v3462_v11 = vld [vmem:[%s4113_s7 + $0x76c] ss:$16 sps:$4 sm:$0xff]  }
 0x14e   : > { %2569 = vmatprep.subr.bf16.mxu1 %v3372_v15  ;;  %v3460_v15 = vld [vmem:[%s4113_s7 + $0x768] ss:$16 sps:$4 sm:$0xff]  }
 0x14f   : > { %2529 = vmatpush2.bf16.msra.mxu0 %v3367_v16  ;;  %v3465_v16 = vld [vmem:[%s4113_s7 + $0x54c] ss:$16 sps:$4 sm:$0xff]  }
 0x150   : > { %2530 = vmatprep.subr.bf16.mxu0 %v3375_v20  ;;  %v3463_v20 = vld [vmem:[%s4113_s7 + $0x548] ss:$16 sps:$4 sm:$0xff]  }
 0x151   : > { %2570 = vmatpush2.bf16.msra.mxu1 %v3370_v17  ;;  %v3468_v17 = vld [vmem:[%s4113_s7 + $0x74c] ss:$16 sps:$4 sm:$0xff]  }
 0x152   : > { %2571 = vmatprep.subr.bf16.mxu1 %v3378_v21  ;;  %v3466_v21 = vld [vmem:[%s4113_s7 + $0x748] ss:$16 sps:$4 sm:$0xff]  }
 0x153   : > { %2531 = vmatpush2.bf16.msra.mxu0 %v3373_v22  ;;  %v3471_v22 = vld [vmem:[%s4113_s7 + $0x52c] ss:$16 sps:$4 sm:$0xff]  }
 0x154   : > { %2532 = vmatprep.subr.bf16.mxu0 %v3381_v26  ;;  %v3469_v26 = vld [vmem:[%s4113_s7 + $0x528] ss:$16 sps:$4 sm:$0xff]  }
 0x155   : > { %2572 = vmatpush2.bf16.msra.mxu1 %v3376_v23  ;;  %v3474_v23 = vld [vmem:[%s4113_s7 + $0x72c] ss:$16 sps:$4 sm:$0xff]  }
 0x156   : > { %2573 = vmatprep.subr.bf16.mxu1 %v3384_v27  ;;  %v3472_v27 = vld [vmem:[%s4113_s7 + $0x728] ss:$16 sps:$4 sm:$0xff]  }
 0x157   : > { %2533 = vmatpush2.bf16.msra.mxu0 %v3379_v28  ;;  %v3477_v28 = vld [vmem:[%s4113_s7 + $0x50c] ss:$16 sps:$4 sm:$0xff]  }
 0x158   : > { %2584 = vmatprep.subr.bf16.mxu0 %v3387_v30  ;;  %v3475_v30 = vld [vmem:[%s4113_s7 + $0x508] ss:$16 sps:$4 sm:$0xff]  }
 0x159   : > { %2574 = vmatpush2.bf16.msra.mxu1 %v3382_v29  ;;  %v3480_v29 = vld [vmem:[%s4113_s7 + $0x70c] ss:$16 sps:$4 sm:$0xff]  }
 0x15a   : > { %2625 = vmatprep.subr.bf16.mxu1 %v3390_v31  ;;  %2535 = vmatmul.mubr.bf16.vlgmr.msra.gmra.mxu0 %v4195_v12  ;;  %v3397_v12 = vld [vmem:[%s4113_s7 + $0x4a8] ss:$16 sps:$4 sm:$0xff]  }
 0x15b   : > { %2585 = vmatpush1.bf16.msra.mxu0 %v3385_v32  ;;  %2616 = vmatprep.mubr.bf16.mxu0 %v4203_v18  ;;  %v3406_v18 = vld [vmem:[%s4113_s7 + $0x688] ss:$16 sps:$4 sm:$0xff]  }
 0x15c   : > { %2576 = vmatmul.mubr.bf16.vlgmr.msra.gmra.mxu1 %v4197_v13  ;;  %2586 = vmatprep.subr.bf16.mxu0 %v3393_v34  ;;  %v3400_v13 = vld [vmem:[%s4113_s7 + $0x6a8] ss:$16 sps:$4 sm:$0xff]  }
 0x15d   : > { %2626 = vmatpush1.bf16.msra.mxu1 %v3388_v33  ;;  %2657 = vmatprep.mubr.bf16.mxu1 %v4205_v19  ;;  %v3411_v19 = vld [vmem:[%s4113_s7 + $0x46c] ss:$16 sps:$4 sm:$0xff]   ;;  %v3478_v31 = vld [vmem:[%s4113_s7 + $0x708] ss:$16 sps:$4 sm:$0xff]  }
 0x15e   : > { %2627 = vmatprep.subr.bf16.mxu1 %v3396_v35 }
 0x15f   : > { %2587 = vmatpush1.bf16.msra.mxu0 %v3391_v36 }
 0x160   : > { %2588 = vmatprep.subr.bf16.mxu0 %v3399_v38 }
 0x161   : > { %2628 = vmatpush1.bf16.msra.mxu1 %v3394_v37 }
 0x162   : > { %2629 = vmatprep.subr.bf16.mxu1 %v3402_v2 }
 0x163   : > { %2589 = vmatpush1.bf16.msra.mxu0 %v3397_v12  ;;  %v1038_v12 = vlaneseq }
 0x164   : > { %2590 = vmatprep.subr.bf16.mxu0 %v3405_v3 }
 0x165   : > { %2630 = vmatpush1.bf16.msra.mxu1 %v3400_v13  ;;  %v1039_v13 = vshrl.u32 %v1038_v12, 7 }
 0x166   : > { %2631 = vmatprep.subr.bf16.mxu1 %v3408_v39  ;;  %v1036_v39 = vld [vmem:[%s752_s29] sm:$0xf] }
 0x167   : > { %2591 = vmatpush1.bf16.msra.mxu0 %v3403_v40  ;;  %v1040_v3 = vsub.s32 0, %v1039_v13 }
 0x168   : > { %2592 = vmatprep.subr.bf16.mxu0 %v3411_v19 }
 0x169   : > { %2632 = vmatpush1.bf16.msra.mxu1 %v3406_v18  ;;  %v1041_v40 = vrot.slane %v1036_v39, %v1040_v3 }
 0x16a   : > { %2633 = vmatprep.subr.bf16.mxu1 %v3414_v41 }
 0x16b   : > { %2593 = vmatpush1.bf16.msra.mxu0 %v3409_v42 }
 0x16c   : > { %2594 = vmatprep.subr.bf16.mxu0 %v3417_v44 }
 0x16d   : > { %2634 = vmatpush1.bf16.msra.mxu1 %v3412_v43 }
 0x16e   : > { %2635 = vmatprep.subr.bf16.mxu1 %v3420_v45 }
 0x16f   : > { %2595 = vmatpush1.bf16.msra.mxu0 %v3415_v46 }
 0x170   : > { %2596 = vmatprep.subr.bf16.mxu0 %v3423_v48 }
 0x171   : > { %2636 = vmatpush1.bf16.msra.mxu1 %v3418_v47 }
 0x172   : > { %2637 = vmatprep.subr.bf16.mxu1 %v3426_v49 }
 0x173   : > { %2597 = vmatpush1.bf16.msra.mxu0 %v3421_v50 }
 0x174   : > { %2598 = vmatprep.subr.bf16.mxu0 %v3429_v52 }
 0x175   : > { %2638 = vmatpush1.bf16.msra.mxu1 %v3424_v51 }
 0x176   : > { %2639 = vmatprep.subr.bf16.mxu1 %v3432_v53 }
 0x177   : > { %2599 = vmatpush1.bf16.msra.mxu0 %v3427_v54 }
 0x178   : > { %2600 = vmatprep.subr.bf16.mxu0 %v3435_v56 }
 0x179   : > { %2640 = vmatpush1.bf16.msra.mxu1 %v3430_v55 }
 0x17a   : > { %2641 = vmatprep.subr.bf16.mxu1 %v3438_v57 }
 0x17b   : > { %2601 = vmatpush2.bf16.msra.mxu0 %v3433_v58 }
 0x17c   : > { %2602 = vmatprep.subr.bf16.mxu0 %v3441_v60 }
 0x17d   : > { %2642 = vmatpush2.bf16.msra.mxu1 %v3436_v59 }
 0x17e   : > { %2643 = vmatprep.subr.bf16.mxu1 %v3444_v61 }
 0x17f   : > { %2603 = vmatpush2.bf16.msra.mxu0 %v3439_v62 }
 0x180   : > { %2604 = vmatprep.subr.bf16.mxu0 %v3447_v0 }
 0x181   : > { %2644 = vmatpush2.bf16.msra.mxu1 %v3442_v63 }
 0x182   : > { %2645 = vmatprep.subr.bf16.mxu1 %v3450_v1  ;;  %v1048_v1 = vsub.s32 2, %v1039_v13 }
 0x183   : > { %2605 = vmatpush2.bf16.msra.mxu0 %v3445_v4  ;;  %v1052_v4 = vsub.s32 3, %v1039_v13 }
 0x184   : > { %2606 = vmatprep.subr.bf16.mxu0 %v3453_v6 }
 0x185   : > { %2646 = vmatpush2.bf16.msra.mxu1 %v3448_v5  ;;  %v1049_v5 = vrot.slane %v1036_v39, %v1048_v1  ;;  %v1053_v6 = vrot.slane %v1036_v39, %v1052_v4 }
 0x186   : > { %2647 = vmatprep.subr.bf16.mxu1 %v3456_v7 }
 0x187   : > { %2607 = vmatpush2.bf16.msra.mxu0 %v3451_v8 }
 0x188   : > { %2608 = vmatprep.subr.bf16.mxu0 %v3459_v10 }
 0x189   : > { %2648 = vmatpush2.bf16.msra.mxu1 %v3454_v9 }
 0x18a   : > { %2649 = vmatprep.subr.bf16.mxu1 %v3462_v11 }
 0x18b   : > { %2609 = vmatpush2.bf16.msra.mxu0 %v3457_v14 }
 0x18c   : > { %2610 = vmatprep.subr.bf16.mxu0 %v3465_v16 }
 0x18d   : > { %2650 = vmatpush2.bf16.msra.mxu1 %v3460_v15 }
 0x18e   : > { %2651 = vmatprep.subr.bf16.mxu1 %v3468_v17 }
 0x18f   : > { %2611 = vmatpush2.bf16.msra.mxu0 %v3463_v20 }
 0x190   : > { %2612 = vmatprep.subr.bf16.mxu0 %v3471_v22 }
 0x191   : > { %2652 = vmatpush2.bf16.msra.mxu1 %v3466_v21 }
 0x192   : > { %2653 = vmatprep.subr.bf16.mxu1 %v3474_v23 }
 0x193   : > { %2613 = vmatpush2.bf16.msra.mxu0 %v3469_v26 }
 0x194   : > { %2614 = vmatprep.subr.bf16.mxu0 %v3477_v28 }
 0x195   : > { %2654 = vmatpush2.bf16.msra.mxu1 %v3472_v27 }
 0x196   : > { %2655 = vmatprep.subr.bf16.mxu1 %v3480_v29 }
 0x197   : > { %2615 = vmatpush2.bf16.msra.mxu0 %v3475_v30 }
 0x199   : > { %2656 = vmatpush2.bf16.msra.mxu1 %v3478_v31 }
 0x19a   : > { %v2372_v32 = vpop.f32.mrf.mxu0  ;;  %2617 = vmatmul.mubr.bf16.vlgmr.msra.gmra.mxu0 %v4277_v24  ;;  %v1044_v24 = vsub.s32 1, %v1039_v13 }
 0x19b   : > { %v2373_v18 = vadd.f32 %v2372_v32, %v1041_v40 }
 0x19c   : > { %v2413_v33 = vpop.f32.mrf.mxu1  ;;  %2658 = vmatmul.mubr.bf16.vlgmr.msra.gmra.mxu1 %v4279_v25  ;;  %v2374_v34 = vpop.f32.mrf.mxu0  ;;  %v1045_v25 = vrot.slane %v1036_v39, %v1044_v24 }
 0x19d   : > { %v2414_v41 = vadd.f32 %v2413_v33, %v2373_v18 }
 0x19e   : > { %v2415_v35 = vpop.f32.mrf.mxu1  ;;  %v2376_v36 = vpop.f32.mrf.mxu0  ;;  %v2375_v19 = vadd.f32 %v2374_v34, %v1045_v25 }
 0x1a0   : > { %v2417_v37 = vpop.f32.mrf.mxu1  ;;  %v2377_v38 = vpop.f32.mrf.mxu0  ;;  %v2416_v44 = vadd.f32 %v2415_v35, %v2375_v19 }
 0x1a2   : > { %v2418_v2 = vpop.f32.mrf.mxu1 }
 0x1da   : > { %v2454_v42 = vpop.f32.mrf.mxu0 }
 0x1db   : > { %v2455_v45 = vadd.f32 %v2454_v42, %v2414_v41 }
 0x1dc   : > { %v2495_v43 = vpop.f32.mrf.mxu1  ;;  %v2456_v46 = vpop.f32.mrf.mxu0 }
 0x1dd   : > { %v2496_v48 = vadd.f32 %v2495_v43, %v2455_v45  ;;  %v2457_v49 = vadd.f32 %v2456_v46, %v2416_v44 }
 0x1de   : > { %v2497_v47 = vpop.f32.mrf.mxu1  ;;  %v2458_v50 = vpop.f32.mrf.mxu0 }
 0x1df   : > { %v2666_v52 = vmax.f32 %v2496_v48, 0.0  ;;  %v2498_v53 = vadd.f32 %v2497_v47, %v2457_v49 }
 0x1e0   : > { %v2499_v51 = vpop.f32.mrf.mxu1  ;;  %v2459_v54 = vpop.f32.mrf.mxu0 }
 0x1e1   : > { %2670 = vst [vmem:[%s4424_s5] sm:$0xff] %v2666_v52  ;;  %v2667_v56 = vmax.f32 %v2498_v53, 0.0 }
 0x1e2   : > { %v2500_v55 = vpop.f32.mrf.mxu1 }
 0x1e3   : > { %2671 = vst [vmem:[%s4424_s5 + $0x8] sm:$0xff] %v2667_v56 }
 0x21a   : > { %v2536_v57 = vpop.f32.mrf.mxu0 }
 0x21b   : > { %v2537_v7 = vadd.f32 %v2536_v57, %v1049_v5 }
 0x21c   : > { %v2577_v58 = vpop.f32.mrf.mxu1  ;;  %v2538_v59 = vpop.f32.mrf.mxu0 }
 0x21d   : > { %v2539_v8 = vadd.f32 %v2538_v59, %v1053_v6  ;;  %v2578_v9 = vadd.f32 %v2577_v58, %v2537_v7 }
 0x21e   : > { %v2579_v60 = vpop.f32.mrf.mxu1  ;;  %v2540_v61 = vpop.f32.mrf.mxu0 }
 0x21f   : > { %v2580_v14 = vadd.f32 %v2579_v60, %v2539_v8 }
 0x220   : > { %v2581_v62 = vpop.f32.mrf.mxu1  ;;  %v2541_v63 = vpop.f32.mrf.mxu0 }
 0x222   : > { %v2582_v0 = vpop.f32.mrf.mxu1 }
 0x25a   : > { %v2618_v10 = vpop.f32.mrf.mxu0 }
 0x25b   : > { %v2619_v15 = vadd.f32 %v2618_v10, %v2578_v9 }
 0x25c   : > { %v2659_v11 = vpop.f32.mrf.mxu1  ;;  %v2620_v16 = vpop.f32.mrf.mxu0 }
 0x25d   : > { %v2660_v20 = vadd.f32 %v2659_v11, %v2619_v15  ;;  %v2621_v21 = vadd.f32 %v2620_v16, %v2580_v14 }
 0x25e   : > { %v2661_v17 = vpop.f32.mrf.mxu1  ;;  %v2622_v22 = vpop.f32.mrf.mxu0 }
 0x25f   : > { %v2668_v26 = vmax.f32 %v2660_v20, 0.0  ;;  %v2662_v27 = vadd.f32 %v2661_v17, %v2621_v21 }
 0x260   : > { %v2663_v23 = vpop.f32.mrf.mxu1  ;;  %v2623_v28 = vpop.f32.mrf.mxu0 }
 0x261   : > { %2672 = vst [vmem:[%s4424_s5 + $0x10] sm:$0xff] %v2668_v26  ;;  %v2669_v30 = vmax.f32 %v2662_v27, 0.0 }
 0x262   : > { %v2664_v29 = vpop.f32.mrf.mxu1 }
 0x263   : > { %2673 = vst [vmem:[%s4424_s5 + $0x18] sm:$0xff] %v2669_v30 }
 0x264 PF: > { %s13_s16 = sadd.s32 1, %s3519_s16   ;;  %s4449_s12 = smov %s3507_s13 }
 0x265   : > { %p10_p10 = scmp.ge.s32.totalorder %s13_s16, 4   ;;  %s4450_s13 = smov %s3576_s20 }
 0x266   : > { %s4451_s14 = smov %s3515_s15  ;;  %s4452_s15 = smov %s4454_s17 }
 0x267   :  { %12 = sbr.rel (!%p10_p10) target bundleno = 3 (0x3), region = 96 }

// kernel: move_model_forward.6
= control target key start
LH: loop header
LB: loop body
LE: loop exit
PB: predicated region body
PF: predicated region fallthrough
CT: control target
= control target key end

     0   :  { %s7417_s0 = inlined_call_operand.vmem [shape: f32[8,4608], index: 0, kind: input, shape index: {}]   ;;  %s7418_s1 = inlined_call_operand.hbm [shape: bf16[4608,1024], index: 1, kind: input, shape index: {}]   ;;  %s7419_s2 = inlined_call_operand.hbm [shape: f32[1,1024], index: 2, kind: input, shape index: {}]   ;;  %s7420_s3 = inlined_call_operand.vmem [shape: f32[8,1024], index: 3, kind: output, shape index: {}]  }
   0x1   :  { %7421 = sst [smem:[#allocation9_spill]] %s7417_s0 }
   0x2   :  { %7422 = sst [smem:[#allocation10_spill]] %s7418_s1 }
   0x3   :  { %7423 = sst [smem:[#allocation11_spill]] %s7420_s3 }
   0x4   :  { %8 = vsyncpa [#allocation4], 0 }
   0x5   :  { %10 = vsyncpa [#allocation4 + $0x1], 0 }
   0x6   :  { %11 = vsyncpa [#allocation6], 0 }
   0x7   :  { %13 = vsyncpa [#allocation6 + $0x1], 0  ;;  %s6482_s12 = smov 0   ;;  %s6484_s13 = smov 0  }
   0x8   :  { %s6486_s14 = smov 0   ;;  %s6488_s15 = smov 0  }
   0x9   :  { %s6490_s16 = smov 0   ;;  %s6492_s17 = smov 0  }
   0xa   :  { %s6494_s18 = smov 0   ;;  %s6496_s19 = smov 0  }
   0xb   :  { %s6498_s20 = smov 0   ;;  %s6500_s21 = smov 0  }
   0xc   :  { %s6502_s22 = smov 0  }
   0xd LB: > { %s31_s23 = sadd.s32 1, %s6446_s20  ;;  %p82_p1 = scmp.ne.s32.totalorder %s6434_s17, %s6430_s16  ;;  %s6454_s22 = sphi %s6502_s22, %s19_s22   ;;  %s6450_s21 = sphi %s6500_s21, %s7446_s21   ;;  %s6446_s20 = sphi %s6498_s20, %s7445_s20   ;;  %s6442_s19 = sphi %s6496_s19, %s7444_s19   ;;  %s6438_s18 = sphi %s6494_s18, %s7443_s18   ;;  %s6434_s17 = sphi %s6492_s17, %s7442_s17   ;;  %s6430_s16 = sphi %s6490_s16, %s7441_s16   ;;  %s6426_s15 = sphi %s6488_s15, %s7440_s15   ;;  %s6422_s14 = sphi %s6486_s14, %s7439_s14   ;;  %s6418_s13 = sphi %s6484_s13, %s7438_s13   ;;  %s6414_s12 = sphi %s6482_s12, %s7437_s12  }
   0xe   : > { %p6539_p0 = scmp.ge.s32.totalorder %s31_s23, 2  ;;  %p83_p2 = scmp.eq.s32.totalorder %s6454_s22, 0 }
   0xf   : > { %p5347_p4 = scmp.lt.s32.totalorder %s6454_s22, 4  ;;  %s179_s27 = sand.u32 1, %s6434_s17  }
  0x10   : > { %s7448_s23 = smov (%p6539_p0, %s31_s23), 0  ;;  %p84_p3 = por %p83_p2, %p82_p1 }
  0x11   : > { %s5334_s28 = smul.u32 4608, %s179_s27  ;;  %s4741_s29 = sshll.u32 %s6450_s21, 2 }
  0x12   : > { %s5332_s30 = smul.u32 2304, %s6446_s20  ;;  %p6560_p5 = pnand %p5347_p4, %p84_p3 }
  0x13   : > { %s183_s6 = scalar_lea.vmem [#allocation3], %s5334_s28  ;;  %s7426_s1 = sld [smem:[#allocation10_spill]] }
  0x14   : > { %s190_s5 = sadd.s32 %s5332_s30, %s4741_s29  ;;  %s193_s7 = sshll.u32 %s183_s6, 4  ;;  %s194_s7 = int_to_ptr.vmem [resolvable:$true] %s193_s7 }
  0x15   : > { %s4743_s8 = sshll.u32 %s190_s5, 6  ;;  %p4747_p6 = scmp.ge.s32.totalorder %s6454_s22, 1 }
  0x16   : > { %s180_s24 = scalar_lea.sflag [#allocation4], %s179_s27  ;;  %p6306_p7 = pneg %p6560_p5 }
  0x17   : > { %s6317_s26 = scalar_lea.vmem %s194_s7, 73728  ;;  %s6456_s0 = smov [#allocation3]  }
  0x18   : > { %p6318_p8 = scmp.ne.s32.totalorder %s194_s7, %s6317_s26  ;;  %s6322_s3 = sshll.u32 %s6456_s0, 4  ;;  %s6323_s3 = int_to_ptr.vmem [resolvable:$false] %s6322_s3 }
  0x19   : > { %s192_s11 = scalar_lea.hbm %s7426_s1, %s4743_s8  ;;  %s6324_s29 = scalar_lea.vmem %s6323_s3, 147456 }
  0x1a   : > { %p6320_p9 = pnand %p6318_p8, %p6306_p7  ;;  %p6325_p11 = scmp.lt.s32.totalorder %s194_s7, %s6323_s3 }
  0x1b   : > { %p6326_p12 = scmp.lt.s32.totalorder %s6324_s29, %s6317_s26 }
  0x1c   : > { %p6321_p10 = pneg %p6320_p9 }
  0x1d   : > { %p6327_p13 = por %p6326_p12, %p6325_p11 }
  0x1f   : > { %p6328_p1 = pnand %p6327_p13, %p6321_p10 }
  0x21   : > { %6331 = shalt.err (!%p6328_p1)
}
  0x22   : > { %s6457_s28 = smov 512   ;;  %s6458_s0 = smov 256  }
  0x23   : > { %s6459_s3 = smov 16   ;;  %p220_p3 = scmp.lt.s32.totalorder %s6454_s22, 5 }
  0x24   : > { %5343 = dma.hbm_to_vmem [thread:$0]  (!%p6560_p5), %s192_s11, 73728, %s194_s7, %s180_s24, %s6457_s28, %s6458_s0, %s6459_s3  }
  0x25   : > { %p6575_p7 = pnand %p4747_p6, %p220_p3  ;;  %s4737_s27 = sadd.s32 4294967295, %s6454_s22  }
  0x26   : > { %s38_s30 = sadd.s32 1, %s6450_s21  ;;  %p88_p8 = scmp.ne.s32.totalorder %s6430_s16, %s6426_s15 }
  0x27   : > { %s7450_s30 = smov (!%p6539_p0, %s38_s30), %s6450_s21  ;;  %p6586_p9 = scmp.eq.s32.totalorder %s4737_s27, 0 }
  0x28   : > { %p40_p5 = scmp.ge.s32.totalorder %s7450_s30, 2  ;;  %s101_s24 = sadd.s32 1, %s6422_s14 }
  0x29   : > { %p6593_p6 = por %p6586_p9, %p88_p8  ;;  %p108_p10 = scmp.ne.s32.totalorder %s6422_s14, %s6418_s13 }
  0x2a   : > { %s7452_s30 = smov (%p40_p5, %s7450_s30), 0  ;;  %p114_p11 = scmp.ne.s32.totalorder %s6418_s13, %s6414_s12 }
  0x2b   : > { %p6603_p0 = por %p108_p10, %p83_p2  ;;  %s71_s25 = ssub.s32 %s6450_s21, %s7452_s30 }
  0x2c   : > { %s203_s6 = sand.u32 1, %s6422_s14   ;;  %s7431_s7 = ssub.s32 %s6446_s20, %s7448_s23 }
  0x2d   : > { %s72_s8 = sor.u32 %s71_s25, %s7431_s7  ;;  %p99_p12 = scmp.eq.s32.totalorder %s71_s25, 0 }
  0x2e   : > { %p73_p13 = scmp.eq.s32.totalorder %s72_s8, 0  ;;  %p6617_p1 = por %p114_p11, %p6586_p9 }
  0x2f   : > { %s6622_s10 = scalar_select %p99_p12, %s6422_s14, %s101_s24  }
  0x30   : > { %s7433_s11 = sadd.s32 1, %s6434_s17  ;;  %s4744_s28 = sshll.u32 %s203_s6, 2 }
  0x31   : > { %s6627_s29 = scalar_select %p73_p13, %s6434_s17, %s7433_s11  }
  0x32   : > { %s5333_s0 = sshll.u32 %s6450_s21, 6  ;;  %s207_s1 = scalar_lea.vmem [#allocation5], %s4744_s28 }
  0x33   : > { %s213_s27 = scalar_lea.hbm %s7419_s2, %s5333_s0  ;;  %s215_s7 = sshll.u32 %s207_s1, 4  ;;  %s216_s7 = int_to_ptr.vmem [resolvable:$true] %s215_s7 }
  0x34   : > { %p6637_p2 = pnand %p5347_p4, %p6603_p0  ;;  %s204_s24 = scalar_lea.sflag [#allocation6], %s203_s6 }
  0x35   : > { %s6345_s25 = scalar_lea.vmem %s216_s7, 64  ;;  %s6460_s8 = smov [#allocation5]  }
  0x36   : > { %p6334_p3 = pneg %p6637_p2  ;;  %p6346_p8 = scmp.ne.s32.totalorder %s216_s7, %s6345_s25 }
  0x37   : > { %s6350_s11 = sshll.u32 %s6460_s8, 4  ;;  %s6351_s11 = int_to_ptr.vmem [resolvable:$false] %s6350_s11 }
  0x38   : > { %p6348_p9 = pnand %p6346_p8, %p6334_p3  ;;  %s6352_s28 = scalar_lea.vmem %s6351_s11, 128 }
  0x39   : > { %p6353_p10 = scmp.lt.s32.totalorder %s216_s7, %s6351_s11  ;;  %p6354_p11 = scmp.lt.s32.totalorder %s6352_s28, %s6345_s25 }
  0x3a   : > { %p6349_p5 = pneg %p6348_p9 }
  0x3b   : > { %p6355_p12 = por %p6354_p11, %p6353_p10 }
  0x3d   : > { %p6356_p13 = pnand %p6355_p12, %p6349_p5 }
  0x3f   : > { %6359 = shalt.err (!%p6356_p13)
}
  0x40   : > { %5346 = dma.hbm_to_vmem [thread:$0]  (!%p6637_p2), %s213_s27, 64, %s216_s7, %s204_s24  }
  0x41   : > { %224 = sbr.rel (%p6575_p7) target bundleno = 881 (0x371), region = 32  ;;  %s226_s1 = sand.u32 (!%p6575_p7), 1, %s6430_s16  }
  0x42   : > { %s5335_s15 = smul.u32 (!%p6575_p7), 4608, %s226_s1  ;;  %s227_s6 = scalar_lea.sflag (!%p6575_p7), [#allocation4], %s226_s1 }
  0x44   : > { %s6648_s0 = scalar_lea.vmem (!%p6575_p7), [#allocation3], %s5335_s15 }
  0x46   : > { %6405 = dma.done.wait (%p6593_p6), %s227_s6, 73728  }
  0x47   : > { %6407 = vsyncadd (%p6593_p6), %s227_s6, 4294893568  ;;  %s235_s3 = sand.u32 1, %s6418_s13  }
  0x48   : > { %s6655_s12 = sshll.u32 %s235_s3, 2  ;;  %s236_s26 = scalar_lea.sflag [#allocation6], %s235_s3 }
  0x49   : > { %s239_s27 = scalar_lea.vmem [#allocation5], %s6655_s12 }
  0x4a   : > { %6409 = dma.done.wait (%p6617_p1), %s236_s26, 64  }
  0x4b   : > { %6411 = vsyncadd (%p6617_p1), %s236_s26, 4294967232  ;;  %s280_s7 = smul.u32 18, %s6438_s18  ;;  %s4750_s4 = sshll.u32 %s6442_s19, 2 }
  0x4c   : > { %p296_p4 = scmp.lt.s32.totalorder %s4750_s4, 7  ;;  %s7435_s11 = sld [smem:[#allocation11_spill]] }
  0x4d   : > { %p283_p7 = scmp.lt.s32.totalorder %s280_s7, 35  ;;  %s7436_s6 = sld [smem:[#allocation9_spill]] }
  0x4e   : > { %s7454_s4 = smov (!%p296_p4, %s4750_s4), 7  ;;  %p4752_p6 = scmp.ne.s32.totalorder %s6438_s18, 0 }
  0x4f   : > { %s7456_s7 = smov (!%p283_p7, %s280_s7), 35  ;;  %s4751_s5 = sshll.u32 %s7454_s4, 3 }
  0x50   : > { %s4749_s24 = sshll.u32 %s7456_s7, 3  ;;  %306 = sbr.rel (%p4752_p6) target bundleno = 88 (0x58), region = 44 }
  0x52   : > { %s6667_s28 = scalar_lea.vmem %s7435_s11, %s4751_s5 }
  0x53   : > { %s6672_s9 = scalar_lea.vmem %s7436_s6, %s4749_s24 }
  0x55   : > { %v6461_v0 = vmov 0.0  }
  0x56   : > { %307 = vst [vmem:[#allocation2 + $0x10] sm:$0xff] %v6461_v0  ;;  %308 = vst [vmem:[#allocation2] sm:$0xff] %v6461_v0 }
  0x57   : > { %309 = vst [vmem:[#allocation2 + $0x18] sm:$0xff] %v6461_v0  ;;  %310 = vst [vmem:[#allocation2 + $0x8] sm:$0xff] %v6461_v0 }
  0x58 PF: > { %v5440_v1 = vld [vmem:[%s6648_s0 + $0xe4] ss:$16 sps:$4 sm:$0xff]   ;;  %v5444_v3 = vld [vmem:[%s6648_s0 + $0xe0] ss:$16 sps:$4 sm:$0xff]   ;;  %v316_v47 = vld [vmem:[%s6672_s9 + $0x8] sm:$0xff]  ;;  %p5329_p0 = scmp.ne.s32.totalorder %s6438_s18, 1 }
  0x59   : > { %v5442_v2 = vld [vmem:[%s6648_s0 + $0x2e4] ss:$16 sps:$4 sm:$0xff]   ;;  %3807 = vmatprep.subr.bf16.mxu0 %v5440_v1  ;;  %v5445_v4 = vld [vmem:[%s6648_s0 + $0x2e0] ss:$16 sps:$4 sm:$0xff]   ;;  %v6724_v50 = vpack.c.bf16 %v316_v47, %v316_v47  ;;  %v318_v51 = vld [vmem:[%s6672_s9 + $0x18] sm:$0xff] }
  0x5a   : > { %3848 = vmatprep.subr.bf16.mxu1 %v5442_v2  ;;  %v5446_v5 = vld [vmem:[%s6648_s0 + $0xc4] ss:$16 sps:$4 sm:$0xff]   ;;  %3808 = vmatpush1.bf16.msra.mxu0 %v5444_v3  ;;  %v5450_v7 = vld [vmem:[%s6648_s0 + $0xc0] ss:$16 sps:$4 sm:$0xff]   ;;  %v6728_v53 = vpack.c.bf16 %v318_v51, %v318_v51 }
  0x5b   : > { %3849 = vmatpush1.bf16.msra.mxu1 %v5445_v4  ;;  %v5448_v6 = vld [vmem:[%s6648_s0 + $0x2c4] ss:$16 sps:$4 sm:$0xff]   ;;  %3809 = vmatprep.subr.bf16.mxu0 %v5446_v5  ;;  %v5451_v8 = vld [vmem:[%s6648_s0 + $0x2c0] ss:$16 sps:$4 sm:$0xff]  }
  0x5c   : > { %3850 = vmatprep.subr.bf16.mxu1 %v5448_v6  ;;  %v5452_v9 = vld [vmem:[%s6648_s0 + $0xa4] ss:$16 sps:$4 sm:$0xff]   ;;  %v5456_v11 = vld [vmem:[%s6648_s0 + $0xa0] ss:$16 sps:$4 sm:$0xff]   ;;  %3839 = vmatprep.mubr.bf16.mxu0 %v6724_v50 }
  0x5d   : > { %v5454_v10 = vld [vmem:[%s6648_s0 + $0x2a4] ss:$16 sps:$4 sm:$0xff]   ;;  %v5457_v12 = vld [vmem:[%s6648_s0 + $0x2a0] ss:$16 sps:$4 sm:$0xff]   ;;  %3880 = vmatprep.mubr.bf16.mxu1 %v6728_v53 }
  0x5e   : > { %3810 = vmatpush1.bf16.msra.mxu0 %v5450_v7  ;;  %v5458_v13 = vld [vmem:[%s6648_s0 + $0x84] ss:$16 sps:$4 sm:$0xff]   ;;  %v5462_v15 = vld [vmem:[%s6648_s0 + $0x80] ss:$16 sps:$4 sm:$0xff]  }
  0x5f   : > { %3851 = vmatpush1.bf16.msra.mxu1 %v5451_v8  ;;  %3811 = vmatprep.subr.bf16.mxu0 %v5452_v9  ;;  %v5460_v14 = vld [vmem:[%s6648_s0 + $0x284] ss:$16 sps:$4 sm:$0xff]   ;;  %v5463_v16 = vld [vmem:[%s6648_s0 + $0x280] ss:$16 sps:$4 sm:$0xff]  }
  0x60   : > { %3852 = vmatprep.subr.bf16.mxu1 %v5454_v10  ;;  %v5464_v17 = vld [vmem:[%s6648_s0 + $0x64] ss:$16 sps:$4 sm:$0xff]   ;;  %v5468_v19 = vld [vmem:[%s6648_s0 + $0x60] ss:$16 sps:$4 sm:$0xff]  }
  0x61   : > { %v5466_v18 = vld [vmem:[%s6648_s0 + $0x264] ss:$16 sps:$4 sm:$0xff]   ;;  %v5469_v20 = vld [vmem:[%s6648_s0 + $0x260] ss:$16 sps:$4 sm:$0xff]  }
  0x62   : > { %3812 = vmatpush1.bf16.msra.mxu0 %v5456_v11  ;;  %v5470_v21 = vld [vmem:[%s6648_s0 + $0x44] ss:$16 sps:$4 sm:$0xff]   ;;  %v5474_v23 = vld [vmem:[%s6648_s0 + $0x40] ss:$16 sps:$4 sm:$0xff]  }
  0x63   : > { %3853 = vmatpush1.bf16.msra.mxu1 %v5457_v12  ;;  %3813 = vmatprep.subr.bf16.mxu0 %v5458_v13  ;;  %v5472_v22 = vld [vmem:[%s6648_s0 + $0x244] ss:$16 sps:$4 sm:$0xff]   ;;  %v5475_v24 = vld [vmem:[%s6648_s0 + $0x240] ss:$16 sps:$4 sm:$0xff]  }
  0x64   : > { %3854 = vmatprep.subr.bf16.mxu1 %v5460_v14  ;;  %v5476_v25 = vld [vmem:[%s6648_s0 + $0x24] ss:$16 sps:$4 sm:$0xff]   ;;  %v5480_v27 = vld [vmem:[%s6648_s0 + $0x20] ss:$16 sps:$4 sm:$0xff]  }
  0x65   : > { %v5478_v26 = vld [vmem:[%s6648_s0 + $0x224] ss:$16 sps:$4 sm:$0xff]   ;;  %v5481_v28 = vld [vmem:[%s6648_s0 + $0x220] ss:$16 sps:$4 sm:$0xff]  }
  0x66   : > { %3814 = vmatpush1.bf16.msra.mxu0 %v5462_v15  ;;  %v5482_v29 = vld [vmem:[%s6648_s0 + $0x4] ss:$16 sps:$4 sm:$0xff]   ;;  %v5486_v31 = vld [vmem:[%s6648_s0] ss:$16 sps:$4 sm:$0xff]  }
  0x67   : > { %3855 = vmatpush1.bf16.msra.mxu1 %v5463_v16  ;;  %3815 = vmatprep.subr.bf16.mxu0 %v5464_v17  ;;  %v5484_v30 = vld [vmem:[%s6648_s0 + $0x204] ss:$16 sps:$4 sm:$0xff]   ;;  %v5487_v32 = vld [vmem:[%s6648_s0 + $0x200] ss:$16 sps:$4 sm:$0xff]  }
  0x68   : > { %3856 = vmatprep.subr.bf16.mxu1 %v5466_v18  ;;  %v5488_v33 = vld [vmem:[%s6648_s0 + $0x1e4] ss:$16 sps:$4 sm:$0xff]   ;;  %v5492_v35 = vld [vmem:[%s6648_s0 + $0x1e0] ss:$16 sps:$4 sm:$0xff]  }
  0x69   : > { %v5490_v34 = vld [vmem:[%s6648_s0 + $0x3e4] ss:$16 sps:$4 sm:$0xff]   ;;  %v5493_v36 = vld [vmem:[%s6648_s0 + $0x3e0] ss:$16 sps:$4 sm:$0xff]  }
  0x6a   : > { %3816 = vmatpush1.bf16.msra.mxu0 %v5468_v19  ;;  %v5494_v37 = vld [vmem:[%s6648_s0 + $0x1c4] ss:$16 sps:$4 sm:$0xff]   ;;  %v5498_v39 = vld [vmem:[%s6648_s0 + $0x1c0] ss:$16 sps:$4 sm:$0xff]  }
  0x6b   : > { %3857 = vmatpush1.bf16.msra.mxu1 %v5469_v20  ;;  %3817 = vmatprep.subr.bf16.mxu0 %v5470_v21  ;;  %v5496_v38 = vld [vmem:[%s6648_s0 + $0x3c4] ss:$16 sps:$4 sm:$0xff]   ;;  %v5499_v40 = vld [vmem:[%s6648_s0 + $0x3c0] ss:$16 sps:$4 sm:$0xff]  }
  0x6c   : > { %3858 = vmatprep.subr.bf16.mxu1 %v5472_v22  ;;  %v5500_v41 = vld [vmem:[%s6648_s0 + $0x1a4] ss:$16 sps:$4 sm:$0xff]   ;;  %v5504_v43 = vld [vmem:[%s6648_s0 + $0x1a0] ss:$16 sps:$4 sm:$0xff]  }
  0x6d   : > { %v5502_v42 = vld [vmem:[%s6648_s0 + $0x3a4] ss:$16 sps:$4 sm:$0xff]   ;;  %v5505_v44 = vld [vmem:[%s6648_s0 + $0x3a0] ss:$16 sps:$4 sm:$0xff]  }
  0x6e   : > { %3818 = vmatpush1.bf16.msra.mxu0 %v5474_v23  ;;  %v5506_v45 = vld [vmem:[%s6648_s0 + $0x184] ss:$16 sps:$4 sm:$0xff]   ;;  %v5510_v48 = vld [vmem:[%s6648_s0 + $0x180] ss:$16 sps:$4 sm:$0xff]  }
  0x6f   : > { %3859 = vmatpush1.bf16.msra.mxu1 %v5475_v24  ;;  %3819 = vmatprep.subr.bf16.mxu0 %v5476_v25  ;;  %v5508_v46 = vld [vmem:[%s6648_s0 + $0x384] ss:$16 sps:$4 sm:$0xff]   ;;  %v5511_v49 = vld [vmem:[%s6648_s0 + $0x380] ss:$16 sps:$4 sm:$0xff]  }
  0x70   : > { %3860 = vmatprep.subr.bf16.mxu1 %v5478_v26  ;;  %v5512_v52 = vld [vmem:[%s6648_s0 + $0x164] ss:$16 sps:$4 sm:$0xff]   ;;  %v5516_v55 = vld [vmem:[%s6648_s0 + $0x160] ss:$16 sps:$4 sm:$0xff]  }
  0x71   : > { %v5514_v54 = vld [vmem:[%s6648_s0 + $0x364] ss:$16 sps:$4 sm:$0xff]   ;;  %v5517_v56 = vld [vmem:[%s6648_s0 + $0x360] ss:$16 sps:$4 sm:$0xff]  }
  0x72   : > { %3820 = vmatpush1.bf16.msra.mxu0 %v5480_v27  ;;  %v5518_v57 = vld [vmem:[%s6648_s0 + $0x144] ss:$16 sps:$4 sm:$0xff]   ;;  %v5522_v59 = vld [vmem:[%s6648_s0 + $0x140] ss:$16 sps:$4 sm:$0xff]  }
  0x73   : > { %3861 = vmatpush1.bf16.msra.mxu1 %v5481_v28  ;;  %3821 = vmatprep.subr.bf16.mxu0 %v5482_v29  ;;  %v5520_v58 = vld [vmem:[%s6648_s0 + $0x344] ss:$16 sps:$4 sm:$0xff]   ;;  %v5523_v60 = vld [vmem:[%s6648_s0 + $0x340] ss:$16 sps:$4 sm:$0xff]  }
  0x74   : > { %3862 = vmatprep.subr.bf16.mxu1 %v5484_v30  ;;  %v5524_v61 = vld [vmem:[%s6648_s0 + $0x124] ss:$16 sps:$4 sm:$0xff]   ;;  %v5528_v63 = vld [vmem:[%s6648_s0 + $0x120] ss:$16 sps:$4 sm:$0xff]  }
  0x75   : > { %v5526_v62 = vld [vmem:[%s6648_s0 + $0x324] ss:$16 sps:$4 sm:$0xff]   ;;  %v5529_v0 = vld [vmem:[%s6648_s0 + $0x320] ss:$16 sps:$4 sm:$0xff]  }
  0x76   : > { %3822 = vmatpush1.bf16.msra.mxu0 %v5486_v31  ;;  %v5530_v1 = vld [vmem:[%s6648_s0 + $0x104] ss:$16 sps:$4 sm:$0xff]   ;;  %v5534_v3 = vld [vmem:[%s6648_s0 + $0x100] ss:$16 sps:$4 sm:$0xff]  }
  0x77   : > { %3863 = vmatpush1.bf16.msra.mxu1 %v5487_v32  ;;  %3823 = vmatprep.subr.bf16.mxu0 %v5488_v33  ;;  %v5532_v2 = vld [vmem:[%s6648_s0 + $0x304] ss:$16 sps:$4 sm:$0xff]   ;;  %v5535_v4 = vld [vmem:[%s6648_s0 + $0x300] ss:$16 sps:$4 sm:$0xff]  }
  0x78   : > { %3864 = vmatprep.subr.bf16.mxu1 %v5490_v34  ;;  %v315_v5 = vld [vmem:[%s6672_s9] sm:$0xff]  ;;  %v317_v6 = vld [vmem:[%s6672_s9 + $0x10] sm:$0xff] }
  0x79   : > { %v5538_v7 = vld [vmem:[%s6648_s0 + $0x4e4] ss:$16 sps:$4 sm:$0xff]   ;;  %v6751_v9 = vpack.c.bf16 %v315_v5, %v315_v5  ;;  %v6753_v10 = vpack.c.bf16 %v317_v6, %v317_v6  ;;  %v5536_v11 = vld [vmem:[%s6648_s0 + $0x4e0] ss:$16 sps:$4 sm:$0xff]  }
  0x7a   : > { %3824 = vmatpush2.bf16.msra.mxu0 %v5492_v35  ;;  %v5541_v8 = vld [vmem:[%s6648_s0 + $0x6e4] ss:$16 sps:$4 sm:$0xff]   ;;  %v5539_v12 = vld [vmem:[%s6648_s0 + $0x6e0] ss:$16 sps:$4 sm:$0xff]   ;;  %v320_v35 = vld [vmem:[%s6672_s9 + $0x28] sm:$0xff] }
  0x7b   : > { %3865 = vmatpush2.bf16.msra.mxu1 %v5493_v36  ;;  %3825 = vmatprep.subr.bf16.mxu0 %v5494_v37  ;;  %v5544_v13 = vld [vmem:[%s6648_s0 + $0x4c4] ss:$16 sps:$4 sm:$0xff]   ;;  %v5542_v15 = vld [vmem:[%s6648_s0 + $0x4c0] ss:$16 sps:$4 sm:$0xff]  }
  0x7c   : > { %3866 = vmatprep.subr.bf16.mxu1 %v5496_v38  ;;  %v5547_v14 = vld [vmem:[%s6648_s0 + $0x6c4] ss:$16 sps:$4 sm:$0xff]   ;;  %v5545_v16 = vld [vmem:[%s6648_s0 + $0x6c0] ss:$16 sps:$4 sm:$0xff]   ;;  %v6784_v38 = vpack.c.bf16 %v320_v35, %v320_v35 }
  0x7d   : > { %v5550_v17 = vld [vmem:[%s6648_s0 + $0x4a4] ss:$16 sps:$4 sm:$0xff]   ;;  %v5548_v19 = vld [vmem:[%s6648_s0 + $0x4a0] ss:$16 sps:$4 sm:$0xff]  }
  0x7e   : > { %3826 = vmatpush2.bf16.msra.mxu0 %v5498_v39  ;;  %v5553_v18 = vld [vmem:[%s6648_s0 + $0x6a4] ss:$16 sps:$4 sm:$0xff]   ;;  %v5551_v20 = vld [vmem:[%s6648_s0 + $0x6a0] ss:$16 sps:$4 sm:$0xff]   ;;  %v322_v39 = vld [vmem:[%s6672_s9 + $0x38] sm:$0xff] }
  0x7f   : > { %3867 = vmatpush2.bf16.msra.mxu1 %v5499_v40  ;;  %3827 = vmatprep.subr.bf16.mxu0 %v5500_v41  ;;  %v5556_v21 = vld [vmem:[%s6648_s0 + $0x484] ss:$16 sps:$4 sm:$0xff]   ;;  %v5554_v23 = vld [vmem:[%s6648_s0 + $0x480] ss:$16 sps:$4 sm:$0xff]   ;;  %v6788_v41 = vpack.c.bf16 %v322_v39, %v322_v39 }
  0x80   : > { %3868 = vmatprep.subr.bf16.mxu1 %v5502_v42  ;;  %v5559_v22 = vld [vmem:[%s6648_s0 + $0x684] ss:$16 sps:$4 sm:$0xff]   ;;  %v5557_v24 = vld [vmem:[%s6648_s0 + $0x680] ss:$16 sps:$4 sm:$0xff]  }
  0x81   : > { %v5562_v25 = vld [vmem:[%s6648_s0 + $0x464] ss:$16 sps:$4 sm:$0xff]   ;;  %v5560_v27 = vld [vmem:[%s6648_s0 + $0x460] ss:$16 sps:$4 sm:$0xff]  }
  0x82   : > { %3828 = vmatpush2.bf16.msra.mxu0 %v5504_v43  ;;  %v5565_v26 = vld [vmem:[%s6648_s0 + $0x664] ss:$16 sps:$4 sm:$0xff]   ;;  %v5563_v28 = vld [vmem:[%s6648_s0 + $0x660] ss:$16 sps:$4 sm:$0xff]  }
  0x83   : > { %3869 = vmatpush2.bf16.msra.mxu1 %v5505_v44  ;;  %3829 = vmatprep.subr.bf16.mxu0 %v5506_v45  ;;  %v5568_v29 = vld [vmem:[%s6648_s0 + $0x444] ss:$16 sps:$4 sm:$0xff]   ;;  %v5566_v31 = vld [vmem:[%s6648_s0 + $0x440] ss:$16 sps:$4 sm:$0xff]  }
  0x84   : > { %3870 = vmatprep.subr.bf16.mxu1 %v5508_v46  ;;  %v5571_v30 = vld [vmem:[%s6648_s0 + $0x644] ss:$16 sps:$4 sm:$0xff]   ;;  %v5569_v32 = vld [vmem:[%s6648_s0 + $0x640] ss:$16 sps:$4 sm:$0xff]  }
  0x85   : > { %v5574_v33 = vld [vmem:[%s6648_s0 + $0x424] ss:$16 sps:$4 sm:$0xff]   ;;  %v5572_v36 = vld [vmem:[%s6648_s0 + $0x420] ss:$16 sps:$4 sm:$0xff]  }
  0x86   : > { %3830 = vmatpush2.bf16.msra.mxu0 %v5510_v48  ;;  %v5577_v34 = vld [vmem:[%s6648_s0 + $0x624] ss:$16 sps:$4 sm:$0xff]   ;;  %v5575_v37 = vld [vmem:[%s6648_s0 + $0x620] ss:$16 sps:$4 sm:$0xff]  }
  0x87   : > { %3871 = vmatpush2.bf16.msra.mxu1 %v5511_v49  ;;  %3831 = vmatprep.subr.bf16.mxu0 %v5512_v52  ;;  %v5580_v40 = vld [vmem:[%s6648_s0 + $0x404] ss:$16 sps:$4 sm:$0xff]   ;;  %v5578_v43 = vld [vmem:[%s6648_s0 + $0x400] ss:$16 sps:$4 sm:$0xff]  }
  0x88   : > { %3872 = vmatprep.subr.bf16.mxu1 %v5514_v54  ;;  %v5583_v42 = vld [vmem:[%s6648_s0 + $0x604] ss:$16 sps:$4 sm:$0xff]   ;;  %v5581_v44 = vld [vmem:[%s6648_s0 + $0x600] ss:$16 sps:$4 sm:$0xff]  }
  0x89   : > { %v5586_v45 = vld [vmem:[%s6648_s0 + $0x5e4] ss:$16 sps:$4 sm:$0xff]   ;;  %v5584_v47 = vld [vmem:[%s6648_s0 + $0x5e0] ss:$16 sps:$4 sm:$0xff]  }
  0x8a   : > { %3832 = vmatpush2.bf16.msra.mxu0 %v5516_v55  ;;  %v5589_v46 = vld [vmem:[%s6648_s0 + $0x7e4] ss:$16 sps:$4 sm:$0xff]   ;;  %v5587_v48 = vld [vmem:[%s6648_s0 + $0x7e0] ss:$16 sps:$4 sm:$0xff]  }
  0x8b   : > { %3873 = vmatpush2.bf16.msra.mxu1 %v5517_v56  ;;  %3833 = vmatprep.subr.bf16.mxu0 %v5518_v57  ;;  %v5592_v49 = vld [vmem:[%s6648_s0 + $0x5c4] ss:$16 sps:$4 sm:$0xff]   ;;  %v5590_v52 = vld [vmem:[%s6648_s0 + $0x5c0] ss:$16 sps:$4 sm:$0xff]  }
  0x8c   : > { %3874 = vmatprep.subr.bf16.mxu1 %v5520_v58  ;;  %v5595_v51 = vld [vmem:[%s6648_s0 + $0x7c4] ss:$16 sps:$4 sm:$0xff]   ;;  %v5593_v54 = vld [vmem:[%s6648_s0 + $0x7c0] ss:$16 sps:$4 sm:$0xff]  }
  0x8d   : > { %v5598_v55 = vld [vmem:[%s6648_s0 + $0x5a4] ss:$16 sps:$4 sm:$0xff]   ;;  %v5596_v57 = vld [vmem:[%s6648_s0 + $0x5a0] ss:$16 sps:$4 sm:$0xff]  }
  0x8e   : > { %3834 = vmatpush2.bf16.msra.mxu0 %v5522_v59  ;;  %v5601_v56 = vld [vmem:[%s6648_s0 + $0x7a4] ss:$16 sps:$4 sm:$0xff]   ;;  %v5599_v58 = vld [vmem:[%s6648_s0 + $0x7a0] ss:$16 sps:$4 sm:$0xff]  }
  0x8f   : > { %3875 = vmatpush2.bf16.msra.mxu1 %v5523_v60  ;;  %3835 = vmatprep.subr.bf16.mxu0 %v5524_v61  ;;  %v5604_v59 = vld [vmem:[%s6648_s0 + $0x584] ss:$16 sps:$4 sm:$0xff]   ;;  %v5602_v61 = vld [vmem:[%s6648_s0 + $0x580] ss:$16 sps:$4 sm:$0xff]  }
  0x90   : > { %3876 = vmatprep.subr.bf16.mxu1 %v5526_v62  ;;  %v5607_v60 = vld [vmem:[%s6648_s0 + $0x784] ss:$16 sps:$4 sm:$0xff]   ;;  %v5605_v62 = vld [vmem:[%s6648_s0 + $0x780] ss:$16 sps:$4 sm:$0xff]  }
  0x91   : > { %v5614_v5 = vld [vmem:[%s6648_s0 + $0x540] ss:$16 sps:$4 sm:$0xff]   ;;  %v5655_v39 = vld [vmem:[%s6648_s0 + $0xa84] ss:$16 sps:$4 sm:$0xff]  }
  0x92   : > { %3836 = vmatpush2.bf16.msra.mxu0 %v5528_v63  ;;  %v5610_v63 = vld [vmem:[%s6648_s0 + $0x564] ss:$16 sps:$4 sm:$0xff]   ;;  %v5617_v6 = vld [vmem:[%s6648_s0 + $0x740] ss:$16 sps:$4 sm:$0xff]  }
  0x93   : > { %3877 = vmatpush2.bf16.msra.mxu1 %v5529_v0  ;;  %3837 = vmatprep.subr.bf16.mxu0 %v5530_v1  ;;  %v5613_v0 = vld [vmem:[%s6648_s0 + $0x764] ss:$16 sps:$4 sm:$0xff]   ;;  %v5608_v1 = vld [vmem:[%s6648_s0 + $0x560] ss:$16 sps:$4 sm:$0xff]  }
  0x94   : > { %3878 = vmatprep.subr.bf16.mxu1 %v5532_v2  ;;  %v5611_v2 = vld [vmem:[%s6648_s0 + $0x760] ss:$16 sps:$4 sm:$0xff]  }
  0x95   : > { %v5644_v35 = vld [vmem:[%s6648_s0 + $0x8a0] ss:$16 sps:$4 sm:$0xff]  }
  0x96   : > { %3838 = vmatpush2.bf16.msra.mxu0 %v5534_v3  ;;  %v5616_v3 = vld [vmem:[%s6648_s0 + $0x544] ss:$16 sps:$4 sm:$0xff]  }
  0x97   : > { %3879 = vmatpush2.bf16.msra.mxu1 %v5535_v4  ;;  %3889 = vmatprep.subr.bf16.mxu0 %v5538_v7  ;;  %v5619_v4 = vld [vmem:[%s6648_s0 + $0x744] ss:$16 sps:$4 sm:$0xff]  }
  0x98   : > { %3930 = vmatprep.subr.bf16.mxu1 %v5541_v8  ;;  %v5622_v7 = vld [vmem:[%s6648_s0 + $0x524] ss:$16 sps:$4 sm:$0xff]  }
  0x99   : > { %3840 = vmatmul.mubr.bf16.vlgmr.msra.gmra.mxu0 %v6751_v9  ;;  %v5625_v8 = vld [vmem:[%s6648_s0 + $0x724] ss:$16 sps:$4 sm:$0xff]  }
  0x9a   : > { %3881 = vmatmul.mubr.bf16.vlgmr.msra.gmra.mxu1 %v6753_v10  ;;  %3890 = vmatpush1.bf16.msra.mxu0 %v5536_v11  ;;  %v5620_v11 = vld [vmem:[%s6648_s0 + $0x520] ss:$16 sps:$4 sm:$0xff]  }
  0x9b   : > { %3931 = vmatpush1.bf16.msra.mxu1 %v5539_v12  ;;  %3891 = vmatprep.subr.bf16.mxu0 %v5544_v13  ;;  %v5623_v12 = vld [vmem:[%s6648_s0 + $0x720] ss:$16 sps:$4 sm:$0xff]   ;;  %v5628_v13 = vld [vmem:[%s6648_s0 + $0x504] ss:$16 sps:$4 sm:$0xff]  }
  0x9c   : > { %3932 = vmatprep.subr.bf16.mxu1 %v5547_v14  ;;  %3921 = vmatprep.mubr.bf16.mxu0 %v6784_v38  ;;  %v5631_v14 = vld [vmem:[%s6648_s0 + $0x704] ss:$16 sps:$4 sm:$0xff]  }
  0x9d   : > { %3962 = vmatprep.mubr.bf16.mxu1 %v6788_v41 }
  0x9e   : > { %3892 = vmatpush1.bf16.msra.mxu0 %v5542_v15  ;;  %v5626_v15 = vld [vmem:[%s6648_s0 + $0x500] ss:$16 sps:$4 sm:$0xff]  }
  0x9f   : > { %3933 = vmatpush1.bf16.msra.mxu1 %v5545_v16  ;;  %3893 = vmatprep.subr.bf16.mxu0 %v5550_v17  ;;  %v5629_v16 = vld [vmem:[%s6648_s0 + $0x700] ss:$16 sps:$4 sm:$0xff]  }
  0xa0   : > { %3934 = vmatprep.subr.bf16.mxu1 %v5553_v18  ;;  %v319_v17 = vld [vmem:[%s6672_s9 + $0x20] sm:$0xff]  ;;  %v321_v18 = vld [vmem:[%s6672_s9 + $0x30] sm:$0xff] }
  0xa2   : > { %3894 = vmatpush1.bf16.msra.mxu0 %v5548_v19  ;;  %v5634_v19 = vld [vmem:[%s6648_s0 + $0x8e4] ss:$16 sps:$4 sm:$0xff]  }
  0xa3   : > { %3935 = vmatpush1.bf16.msra.mxu1 %v5551_v20  ;;  %3895 = vmatprep.subr.bf16.mxu0 %v5556_v21  ;;  %v5637_v20 = vld [vmem:[%s6648_s0 + $0xae4] ss:$16 sps:$4 sm:$0xff]   ;;  %v6831_v21 = vpack.c.bf16 %v319_v17, %v319_v17  ;;  %v5704_v17 = vld [vmem:[%s6648_s0 + $0x960] ss:$16 sps:$4 sm:$0xff]  }
  0xa4   : > { %3936 = vmatprep.subr.bf16.mxu1 %v5559_v22  ;;  %v6833_v22 = vpack.c.bf16 %v321_v18, %v321_v18  ;;  %v5707_v18 = vld [vmem:[%s6648_s0 + $0xb60] ss:$16 sps:$4 sm:$0xff]  }
  0xa6   : > { %3896 = vmatpush1.bf16.msra.mxu0 %v5554_v23  ;;  %v5632_v23 = vld [vmem:[%s6648_s0 + $0x8e0] ss:$16 sps:$4 sm:$0xff]  }
  0xa7   : > { %3937 = vmatpush1.bf16.msra.mxu1 %v5557_v24  ;;  %3897 = vmatprep.subr.bf16.mxu0 %v5562_v25  ;;  %v5635_v24 = vld [vmem:[%s6648_s0 + $0xae0] ss:$16 sps:$4 sm:$0xff]   ;;  %v5640_v25 = vld [vmem:[%s6648_s0 + $0x8c4] ss:$16 sps:$4 sm:$0xff]  }
  0xa8   : > { %3938 = vmatprep.subr.bf16.mxu1 %v5565_v26  ;;  %v5643_v26 = vld [vmem:[%s6648_s0 + $0xac4] ss:$16 sps:$4 sm:$0xff]  }
  0xaa   : > { %3898 = vmatpush1.bf16.msra.mxu0 %v5560_v27  ;;  %v324_v27 = vld [vmem:[%s6672_s9 + $0x48] sm:$0xff] }
  0xab   : > { %3939 = vmatpush1.bf16.msra.mxu1 %v5563_v28  ;;  %3899 = vmatprep.subr.bf16.mxu0 %v5568_v29  ;;  %v5638_v28 = vld [vmem:[%s6648_s0 + $0x8c0] ss:$16 sps:$4 sm:$0xff]  }
  0xac   : > { %3940 = vmatprep.subr.bf16.mxu1 %v5571_v30  ;;  %v5641_v29 = vld [vmem:[%s6648_s0 + $0xac0] ss:$16 sps:$4 sm:$0xff]   ;;  %v6844_v30 = vpack.c.bf16 %v324_v27, %v324_v27 }
  0xad   : > { %v5716_v27 = vld [vmem:[%s6648_s0 + $0x920] ss:$16 sps:$4 sm:$0xff]  }
  0xae   : > { %3900 = vmatpush1.bf16.msra.mxu0 %v5566_v31  ;;  %v326_v31 = vld [vmem:[%s6672_s9 + $0x58] sm:$0xff] }
  0xaf   : > { %3941 = vmatpush1.bf16.msra.mxu1 %v5569_v32  ;;  %3901 = vmatprep.subr.bf16.mxu0 %v5574_v33  ;;  %v5646_v32 = vld [vmem:[%s6648_s0 + $0x8a4] ss:$16 sps:$4 sm:$0xff]   ;;  %v6848_v33 = vpack.c.bf16 %v326_v31, %v326_v31 }
  0xb0   : > { %3942 = vmatprep.subr.bf16.mxu1 %v5577_v34  ;;  %v5649_v34 = vld [vmem:[%s6648_s0 + $0xaa4] ss:$16 sps:$4 sm:$0xff]  }
  0xb1   : > { %v5727_v31 = vld [vmem:[%s6648_s0 + $0xb04] ss:$16 sps:$4 sm:$0xff]  }
  0xb2   : > { %3902 = vmatpush1.bf16.msra.mxu0 %v5572_v36  ;;  %v5647_v36 = vld [vmem:[%s6648_s0 + $0xaa0] ss:$16 sps:$4 sm:$0xff]  }
  0xb3   : > { %3943 = vmatpush1.bf16.msra.mxu1 %v5575_v37  ;;  %3903 = vmatprep.subr.bf16.mxu0 %v5580_v40  ;;  %v5652_v37 = vld [vmem:[%s6648_s0 + $0x884] ss:$16 sps:$4 sm:$0xff]   ;;  %v5650_v40 = vld [vmem:[%s6648_s0 + $0x880] ss:$16 sps:$4 sm:$0xff]  }
  0xb4   : > { %3944 = vmatprep.subr.bf16.mxu1 %v5583_v42  ;;  %v5653_v42 = vld [vmem:[%s6648_s0 + $0xa80] ss:$16 sps:$4 sm:$0xff]  }
  0xb6   : > { %3904 = vmatpush1.bf16.msra.mxu0 %v5578_v43  ;;  %v5658_v43 = vld [vmem:[%s6648_s0 + $0x864] ss:$16 sps:$4 sm:$0xff]  }
  0xb7   : > { %3945 = vmatpush1.bf16.msra.mxu1 %v5581_v44  ;;  %3905 = vmatprep.subr.bf16.mxu0 %v5586_v45  ;;  %v5661_v44 = vld [vmem:[%s6648_s0 + $0xa64] ss:$16 sps:$4 sm:$0xff]   ;;  %v5656_v45 = vld [vmem:[%s6648_s0 + $0x860] ss:$16 sps:$4 sm:$0xff]  }
  0xb8   : > { %3946 = vmatprep.subr.bf16.mxu1 %v5589_v46  ;;  %v5659_v46 = vld [vmem:[%s6648_s0 + $0xa60] ss:$16 sps:$4 sm:$0xff]  }
  0xba   : > { %3906 = vmatpush2.bf16.msra.mxu0 %v5584_v47  ;;  %v5664_v47 = vld [vmem:[%s6648_s0 + $0x844] ss:$16 sps:$4 sm:$0xff]  }
  0xbb   : > { %3947 = vmatpush2.bf16.msra.mxu1 %v5587_v48  ;;  %3907 = vmatprep.subr.bf16.mxu0 %v5592_v49  ;;  %v5667_v48 = vld [vmem:[%s6648_s0 + $0xa44] ss:$16 sps:$4 sm:$0xff]   ;;  %v5662_v49 = vld [vmem:[%s6648_s0 + $0x840] ss:$16 sps:$4 sm:$0xff]  }
  0xbc   : > { %3948 = vmatprep.subr.bf16.mxu1 %v5595_v51  ;;  %v5665_v51 = vld [vmem:[%s6648_s0 + $0xa40] ss:$16 sps:$4 sm:$0xff]  }
  0xbe   : > { %3908 = vmatpush2.bf16.msra.mxu0 %v5590_v52  ;;  %v5670_v52 = vld [vmem:[%s6648_s0 + $0x824] ss:$16 sps:$4 sm:$0xff]  }
  0xbf   : > { %3949 = vmatpush2.bf16.msra.mxu1 %v5593_v54  ;;  %3909 = vmatprep.subr.bf16.mxu0 %v5598_v55  ;;  %v5673_v54 = vld [vmem:[%s6648_s0 + $0xa24] ss:$16 sps:$4 sm:$0xff]   ;;  %v5668_v55 = vld [vmem:[%s6648_s0 + $0x820] ss:$16 sps:$4 sm:$0xff]  }
  0xc0   : > { %3950 = vmatprep.subr.bf16.mxu1 %v5601_v56  ;;  %v5671_v56 = vld [vmem:[%s6648_s0 + $0xa20] ss:$16 sps:$4 sm:$0xff]  }
  0xc2   : > { %3910 = vmatpush2.bf16.msra.mxu0 %v5596_v57  ;;  %v5676_v57 = vld [vmem:[%s6648_s0 + $0x804] ss:$16 sps:$4 sm:$0xff]  }
  0xc3   : > { %3951 = vmatpush2.bf16.msra.mxu1 %v5599_v58  ;;  %3911 = vmatprep.subr.bf16.mxu0 %v5604_v59  ;;  %v5679_v58 = vld [vmem:[%s6648_s0 + $0xa04] ss:$16 sps:$4 sm:$0xff]   ;;  %v5674_v59 = vld [vmem:[%s6648_s0 + $0x800] ss:$16 sps:$4 sm:$0xff]  }
  0xc4   : > { %3952 = vmatprep.subr.bf16.mxu1 %v5607_v60  ;;  %v5677_v60 = vld [vmem:[%s6648_s0 + $0xa00] ss:$16 sps:$4 sm:$0xff]  }
  0xc6   : > { %3912 = vmatpush2.bf16.msra.mxu0 %v5602_v61  ;;  %v5682_v61 = vld [vmem:[%s6648_s0 + $0x9e4] ss:$16 sps:$4 sm:$0xff]  }
  0xc7   : > { %3953 = vmatpush2.bf16.msra.mxu1 %v5605_v62  ;;  %3913 = vmatprep.subr.bf16.mxu0 %v5610_v63  ;;  %v5685_v62 = vld [vmem:[%s6648_s0 + $0xbe4] ss:$16 sps:$4 sm:$0xff]   ;;  %v5680_v63 = vld [vmem:[%s6648_s0 + $0x9e0] ss:$16 sps:$4 sm:$0xff]  }
  0xc8   : > { %3954 = vmatprep.subr.bf16.mxu1 %v5613_v0  ;;  %v5683_v0 = vld [vmem:[%s6648_s0 + $0xbe0] ss:$16 sps:$4 sm:$0xff]  }
  0xca   : > { %3914 = vmatpush2.bf16.msra.mxu0 %v5608_v1  ;;  %v5688_v1 = vld [vmem:[%s6648_s0 + $0x9c4] ss:$16 sps:$4 sm:$0xff]  }
  0xcb   : > { %3955 = vmatpush2.bf16.msra.mxu1 %v5611_v2  ;;  %3915 = vmatprep.subr.bf16.mxu0 %v5616_v3  ;;  %v5691_v2 = vld [vmem:[%s6648_s0 + $0xbc4] ss:$16 sps:$4 sm:$0xff]   ;;  %v5686_v3 = vld [vmem:[%s6648_s0 + $0x9c0] ss:$16 sps:$4 sm:$0xff]  }
  0xcc   : > { %3956 = vmatprep.subr.bf16.mxu1 %v5619_v4  ;;  %v5689_v4 = vld [vmem:[%s6648_s0 + $0xbc0] ss:$16 sps:$4 sm:$0xff]  }
  0xce   : > { %3916 = vmatpush2.bf16.msra.mxu0 %v5614_v5  ;;  %v5694_v5 = vld [vmem:[%s6648_s0 + $0x9a4] ss:$16 sps:$4 sm:$0xff]  }
  0xcf   : > { %3957 = vmatpush2.bf16.msra.mxu1 %v5617_v6  ;;  %3917 = vmatprep.subr.bf16.mxu0 %v5622_v7  ;;  %v5697_v6 = vld [vmem:[%s6648_s0 + $0xba4] ss:$16 sps:$4 sm:$0xff]   ;;  %v5692_v7 = vld [vmem:[%s6648_s0 + $0x9a0] ss:$16 sps:$4 sm:$0xff]  }
  0xd0   : > { %3958 = vmatprep.subr.bf16.mxu1 %v5625_v8  ;;  %v5695_v8 = vld [vmem:[%s6648_s0 + $0xba0] ss:$16 sps:$4 sm:$0xff]  }
  0xd2   : > { %3918 = vmatpush2.bf16.msra.mxu0 %v5620_v11  ;;  %v5700_v11 = vld [vmem:[%s6648_s0 + $0x984] ss:$16 sps:$4 sm:$0xff]  }
  0xd3   : > { %3959 = vmatpush2.bf16.msra.mxu1 %v5623_v12  ;;  %3919 = vmatprep.subr.bf16.mxu0 %v5628_v13  ;;  %v5703_v12 = vld [vmem:[%s6648_s0 + $0xb84] ss:$16 sps:$4 sm:$0xff]   ;;  %v5698_v13 = vld [vmem:[%s6648_s0 + $0x980] ss:$16 sps:$4 sm:$0xff]  }
  0xd4   : > { %3960 = vmatprep.subr.bf16.mxu1 %v5631_v14  ;;  %v5701_v14 = vld [vmem:[%s6648_s0 + $0xb80] ss:$16 sps:$4 sm:$0xff]  }
  0xd6   : > { %3920 = vmatpush2.bf16.msra.mxu0 %v5626_v15  ;;  %v5706_v15 = vld [vmem:[%s6648_s0 + $0x964] ss:$16 sps:$4 sm:$0xff]  }
  0xd7   : > { %3961 = vmatpush2.bf16.msra.mxu1 %v5629_v16  ;;  %3971 = vmatprep.subr.bf16.mxu0 %v5634_v19  ;;  %v5709_v16 = vld [vmem:[%s6648_s0 + $0xb64] ss:$16 sps:$4 sm:$0xff]  }
  0xd8   : > { %4012 = vmatprep.subr.bf16.mxu1 %v5637_v20  ;;  %v5712_v19 = vld [vmem:[%s6648_s0 + $0x944] ss:$16 sps:$4 sm:$0xff]  }
  0xd9   : > { %3922 = vmatmul.mubr.bf16.vlgmr.msra.gmra.mxu0 %v6831_v21  ;;  %v5715_v20 = vld [vmem:[%s6648_s0 + $0xb44] ss:$16 sps:$4 sm:$0xff]  }
  0xda   : > { %3963 = vmatmul.mubr.bf16.vlgmr.msra.gmra.mxu1 %v6833_v22  ;;  %3972 = vmatpush1.bf16.msra.mxu0 %v5632_v23  ;;  %v5710_v23 = vld [vmem:[%s6648_s0 + $0x940] ss:$16 sps:$4 sm:$0xff]  }
  0xdb   : > { %4013 = vmatpush1.bf16.msra.mxu1 %v5635_v24  ;;  %3973 = vmatprep.subr.bf16.mxu0 %v5640_v25  ;;  %v5713_v24 = vld [vmem:[%s6648_s0 + $0xb40] ss:$16 sps:$4 sm:$0xff]   ;;  %v5718_v25 = vld [vmem:[%s6648_s0 + $0x924] ss:$16 sps:$4 sm:$0xff]  }
  0xdc   : > { %4014 = vmatprep.subr.bf16.mxu1 %v5643_v26  ;;  %4003 = vmatprep.mubr.bf16.mxu0 %v6844_v30  ;;  %v5721_v26 = vld [vmem:[%s6648_s0 + $0xb24] ss:$16 sps:$4 sm:$0xff]  }
  0xdd   : > { %4044 = vmatprep.mubr.bf16.mxu1 %v6848_v33 }
  0xde   : > { %3974 = vmatpush1.bf16.msra.mxu0 %v5638_v28  ;;  %v5719_v28 = vld [vmem:[%s6648_s0 + $0xb20] ss:$16 sps:$4 sm:$0xff]  }
  0xdf   : > { %4015 = vmatpush1.bf16.msra.mxu1 %v5641_v29  ;;  %3975 = vmatprep.subr.bf16.mxu0 %v5646_v32  ;;  %v5724_v29 = vld [vmem:[%s6648_s0 + $0x904] ss:$16 sps:$4 sm:$0xff]   ;;  %v5722_v32 = vld [vmem:[%s6648_s0 + $0x900] ss:$16 sps:$4 sm:$0xff]  }
  0xe0   : > { %4016 = vmatprep.subr.bf16.mxu1 %v5649_v34  ;;  %v5725_v34 = vld [vmem:[%s6648_s0 + $0xb00] ss:$16 sps:$4 sm:$0xff]  }
  0xe2   : > { %3976 = vmatpush1.bf16.msra.mxu0 %v5644_v35  ;;  %v323_v35 = vld [vmem:[%s6672_s9 + $0x40] sm:$0xff] }
  0xe3   : > { %4017 = vmatpush1.bf16.msra.mxu1 %v5647_v36  ;;  %3977 = vmatprep.subr.bf16.mxu0 %v5652_v37  ;;  %v325_v36 = vld [vmem:[%s6672_s9 + $0x50] sm:$0xff] }
  0xe4   : > { %4018 = vmatprep.subr.bf16.mxu1 %v5655_v39  ;;  %v5730_v37 = vld [vmem:[%s6648_s0 + $0xce4] ss:$16 sps:$4 sm:$0xff]  }
  0xe5   : > { %v5733_v39 = vld [vmem:[%s6648_s0 + $0xee4] ss:$16 sps:$4 sm:$0xff]  }
  0xe6   : > { %3978 = vmatpush1.bf16.msra.mxu0 %v5650_v40  ;;  %v5728_v40 = vld [vmem:[%s6648_s0 + $0xce0] ss:$16 sps:$4 sm:$0xff]  }
  0xe7   : > { %4019 = vmatpush1.bf16.msra.mxu1 %v5653_v42  ;;  %3979 = vmatprep.subr.bf16.mxu0 %v5658_v43  ;;  %v5731_v42 = vld [vmem:[%s6648_s0 + $0xee0] ss:$16 sps:$4 sm:$0xff]   ;;  %v6913_v43 = vpack.c.bf16 %v323_v35, %v323_v35 }
  0xe8   : > { %4020 = vmatprep.subr.bf16.mxu1 %v5661_v44  ;;  %v6915_v44 = vpack.c.bf16 %v325_v36, %v325_v36  ;;  %v5794_v35 = vld [vmem:[%s6648_s0 + $0xd80] ss:$16 sps:$4 sm:$0xff]  }
  0xe9   : > { %v5797_v36 = vld [vmem:[%s6648_s0 + $0xf80] ss:$16 sps:$4 sm:$0xff]  }
  0xea   : > { %3980 = vmatpush1.bf16.msra.mxu0 %v5656_v45  ;;  %v328_v45 = vld [vmem:[%s6672_s9 + $0x68] sm:$0xff] }
  0xeb   : > { %4021 = vmatpush1.bf16.msra.mxu1 %v5659_v46  ;;  %3981 = vmatprep.subr.bf16.mxu0 %v5664_v47  ;;  %v330_v46 = vld [vmem:[%s6672_s9 + $0x78] sm:$0xff]  ;;  %v5736_v47 = vld [vmem:[%s6648_s0 + $0xcc4] ss:$16 sps:$4 sm:$0xff]  }
  0xec   : > { %4022 = vmatprep.subr.bf16.mxu1 %v5667_v48  ;;  %v5739_v48 = vld [vmem:[%s6648_s0 + $0xec4] ss:$16 sps:$4 sm:$0xff]  }
  0xee   : > { %3982 = vmatpush1.bf16.msra.mxu0 %v5662_v49  ;;  %v6921_v49 = vpack.c.bf16 %v328_v45, %v328_v45  ;;  %v5808_v45 = vld [vmem:[%s6648_s0 + $0xd44] ss:$16 sps:$4 sm:$0xff]  }
  0xef   : > { %4023 = vmatpush1.bf16.msra.mxu1 %v5665_v51  ;;  %3983 = vmatprep.subr.bf16.mxu0 %v5670_v52  ;;  %v6923_v51 = vpack.c.bf16 %v330_v46, %v330_v46  ;;  %v5734_v52 = vld [vmem:[%s6648_s0 + $0xcc0] ss:$16 sps:$4 sm:$0xff]   ;;  %v5811_v46 = vld [vmem:[%s6648_s0 + $0xf44] ss:$16 sps:$4 sm:$0xff]  }
  0xf0   : > { %4024 = vmatprep.subr.bf16.mxu1 %v5673_v54  ;;  %v5737_v54 = vld [vmem:[%s6648_s0 + $0xec0] ss:$16 sps:$4 sm:$0xff]  }
  0xf2   : > { %3984 = vmatpush1.bf16.msra.mxu0 %v5668_v55  ;;  %v5742_v55 = vld [vmem:[%s6648_s0 + $0xca4] ss:$16 sps:$4 sm:$0xff]  }
  0xf3   : > { %4025 = vmatpush1.bf16.msra.mxu1 %v5671_v56  ;;  %3985 = vmatprep.subr.bf16.mxu0 %v5676_v57  ;;  %v5745_v56 = vld [vmem:[%s6648_s0 + $0xea4] ss:$16 sps:$4 sm:$0xff]   ;;  %v5740_v57 = vld [vmem:[%s6648_s0 + $0xca0] ss:$16 sps:$4 sm:$0xff]  }
  0xf4   : > { %4026 = vmatprep.subr.bf16.mxu1 %v5679_v58  ;;  %v5743_v58 = vld [vmem:[%s6648_s0 + $0xea0] ss:$16 sps:$4 sm:$0xff]  }
  0xf6   : > { %3986 = vmatpush1.bf16.msra.mxu0 %v5674_v59  ;;  %v5748_v59 = vld [vmem:[%s6648_s0 + $0xc84] ss:$16 sps:$4 sm:$0xff]  }
  0xf7   : > { %4027 = vmatpush1.bf16.msra.mxu1 %v5677_v60  ;;  %3987 = vmatprep.subr.bf16.mxu0 %v5682_v61  ;;  %v5751_v60 = vld [vmem:[%s6648_s0 + $0xe84] ss:$16 sps:$4 sm:$0xff]   ;;  %v5746_v61 = vld [vmem:[%s6648_s0 + $0xc80] ss:$16 sps:$4 sm:$0xff]  }
  0xf8   : > { %4028 = vmatprep.subr.bf16.mxu1 %v5685_v62  ;;  %v5749_v62 = vld [vmem:[%s6648_s0 + $0xe80] ss:$16 sps:$4 sm:$0xff]  }
  0xfa   : > { %3988 = vmatpush2.bf16.msra.mxu0 %v5680_v63  ;;  %v5754_v63 = vld [vmem:[%s6648_s0 + $0xc64] ss:$16 sps:$4 sm:$0xff]  }
  0xfb   : > { %4029 = vmatpush2.bf16.msra.mxu1 %v5683_v0  ;;  %3989 = vmatprep.subr.bf16.mxu0 %v5688_v1  ;;  %v5757_v0 = vld [vmem:[%s6648_s0 + $0xe64] ss:$16 sps:$4 sm:$0xff]   ;;  %v5752_v1 = vld [vmem:[%s6648_s0 + $0xc60] ss:$16 sps:$4 sm:$0xff]  }
  0xfc   : > { %4030 = vmatprep.subr.bf16.mxu1 %v5691_v2  ;;  %v5755_v2 = vld [vmem:[%s6648_s0 + $0xe60] ss:$16 sps:$4 sm:$0xff]  }
  0xfe   : > { %3990 = vmatpush2.bf16.msra.mxu0 %v5686_v3  ;;  %v5760_v3 = vld [vmem:[%s6648_s0 + $0xc44] ss:$16 sps:$4 sm:$0xff]  }
  0xff   : > { %4031 = vmatpush2.bf16.msra.mxu1 %v5689_v4  ;;  %3991 = vmatprep.subr.bf16.mxu0 %v5694_v5  ;;  %v5763_v4 = vld [vmem:[%s6648_s0 + $0xe44] ss:$16 sps:$4 sm:$0xff]   ;;  %v5758_v5 = vld [vmem:[%s6648_s0 + $0xc40] ss:$16 sps:$4 sm:$0xff]  }
 0x100   : > { %4032 = vmatprep.subr.bf16.mxu1 %v5697_v6  ;;  %v5761_v6 = vld [vmem:[%s6648_s0 + $0xe40] ss:$16 sps:$4 sm:$0xff]  }
 0x102   : > { %3992 = vmatpush2.bf16.msra.mxu0 %v5692_v7  ;;  %v5766_v7 = vld [vmem:[%s6648_s0 + $0xc24] ss:$16 sps:$4 sm:$0xff]  }
 0x103   : > { %4033 = vmatpush2.bf16.msra.mxu1 %v5695_v8  ;;  %3993 = vmatprep.subr.bf16.mxu0 %v5700_v11  ;;  %v5769_v8 = vld [vmem:[%s6648_s0 + $0xe24] ss:$16 sps:$4 sm:$0xff]   ;;  %v5764_v11 = vld [vmem:[%s6648_s0 + $0xc20] ss:$16 sps:$4 sm:$0xff]  }
 0x104   : > { %4034 = vmatprep.subr.bf16.mxu1 %v5703_v12  ;;  %v5767_v12 = vld [vmem:[%s6648_s0 + $0xe20] ss:$16 sps:$4 sm:$0xff]  }
 0x106   : > { %3994 = vmatpush2.bf16.msra.mxu0 %v5698_v13  ;;  %v5772_v13 = vld [vmem:[%s6648_s0 + $0xc04] ss:$16 sps:$4 sm:$0xff]  }
 0x107   : > { %4035 = vmatpush2.bf16.msra.mxu1 %v5701_v14  ;;  %3995 = vmatprep.subr.bf16.mxu0 %v5706_v15  ;;  %v5775_v14 = vld [vmem:[%s6648_s0 + $0xe04] ss:$16 sps:$4 sm:$0xff]   ;;  %v5770_v15 = vld [vmem:[%s6648_s0 + $0xc00] ss:$16 sps:$4 sm:$0xff]  }
 0x108   : > { %4036 = vmatprep.subr.bf16.mxu1 %v5709_v16  ;;  %v5773_v16 = vld [vmem:[%s6648_s0 + $0xe00] ss:$16 sps:$4 sm:$0xff]  }
 0x10a   : > { %3996 = vmatpush2.bf16.msra.mxu0 %v5704_v17  ;;  %v5778_v17 = vld [vmem:[%s6648_s0 + $0xde4] ss:$16 sps:$4 sm:$0xff]  }
 0x10b   : > { %4037 = vmatpush2.bf16.msra.mxu1 %v5707_v18  ;;  %3997 = vmatprep.subr.bf16.mxu0 %v5712_v19  ;;  %v5781_v18 = vld [vmem:[%s6648_s0 + $0xfe4] ss:$16 sps:$4 sm:$0xff]   ;;  %v5776_v19 = vld [vmem:[%s6648_s0 + $0xde0] ss:$16 sps:$4 sm:$0xff]  }
 0x10c   : > { %4038 = vmatprep.subr.bf16.mxu1 %v5715_v20  ;;  %v5779_v20 = vld [vmem:[%s6648_s0 + $0xfe0] ss:$16 sps:$4 sm:$0xff]  }
 0x10e   : > { %3998 = vmatpush2.bf16.msra.mxu0 %v5710_v23  ;;  %v5784_v23 = vld [vmem:[%s6648_s0 + $0xdc4] ss:$16 sps:$4 sm:$0xff]  }
 0x10f   : > { %4039 = vmatpush2.bf16.msra.mxu1 %v5713_v24  ;;  %3999 = vmatprep.subr.bf16.mxu0 %v5718_v25  ;;  %v5787_v24 = vld [vmem:[%s6648_s0 + $0xfc4] ss:$16 sps:$4 sm:$0xff]   ;;  %v5782_v25 = vld [vmem:[%s6648_s0 + $0xdc0] ss:$16 sps:$4 sm:$0xff]  }
 0x110   : > { %4040 = vmatprep.subr.bf16.mxu1 %v5721_v26  ;;  %v5785_v26 = vld [vmem:[%s6648_s0 + $0xfc0] ss:$16 sps:$4 sm:$0xff]  }
 0x112   : > { %4000 = vmatpush2.bf16.msra.mxu0 %v5716_v27  ;;  %v5790_v27 = vld [vmem:[%s6648_s0 + $0xda4] ss:$16 sps:$4 sm:$0xff]  }
 0x113   : > { %4041 = vmatpush2.bf16.msra.mxu1 %v5719_v28  ;;  %4001 = vmatprep.subr.bf16.mxu0 %v5724_v29  ;;  %v5793_v28 = vld [vmem:[%s6648_s0 + $0xfa4] ss:$16 sps:$4 sm:$0xff]   ;;  %v5788_v29 = vld [vmem:[%s6648_s0 + $0xda0] ss:$16 sps:$4 sm:$0xff]  }
 0x114   : > { %4042 = vmatprep.subr.bf16.mxu1 %v5727_v31  ;;  %v5791_v31 = vld [vmem:[%s6648_s0 + $0xfa0] ss:$16 sps:$4 sm:$0xff]  }
 0x116   : > { %4002 = vmatpush2.bf16.msra.mxu0 %v5722_v32  ;;  %v5796_v32 = vld [vmem:[%s6648_s0 + $0xd84] ss:$16 sps:$4 sm:$0xff]  }
 0x117   : > { %4043 = vmatpush2.bf16.msra.mxu1 %v5725_v34  ;;  %4053 = vmatprep.subr.bf16.mxu0 %v5730_v37  ;;  %v5799_v34 = vld [vmem:[%s6648_s0 + $0xf84] ss:$16 sps:$4 sm:$0xff]  }
 0x118   : > { %4094 = vmatprep.subr.bf16.mxu1 %v5733_v39  ;;  %v5802_v37 = vld [vmem:[%s6648_s0 + $0xd64] ss:$16 sps:$4 sm:$0xff]  }
 0x119   : > { %4004 = vmatmul.mubr.bf16.vlgmr.msra.gmra.mxu0 %v6913_v43  ;;  %v5805_v39 = vld [vmem:[%s6648_s0 + $0xf64] ss:$16 sps:$4 sm:$0xff]  }
 0x11a   : > { %4045 = vmatmul.mubr.bf16.vlgmr.msra.gmra.mxu1 %v6915_v44  ;;  %4054 = vmatpush1.bf16.msra.mxu0 %v5728_v40  ;;  %v5800_v40 = vld [vmem:[%s6648_s0 + $0xd60] ss:$16 sps:$4 sm:$0xff]  }
 0x11b   : > { %4095 = vmatpush1.bf16.msra.mxu1 %v5731_v42  ;;  %4055 = vmatprep.subr.bf16.mxu0 %v5736_v47  ;;  %v5803_v42 = vld [vmem:[%s6648_s0 + $0xf60] ss:$16 sps:$4 sm:$0xff]  }
 0x11c   : > { %4096 = vmatprep.subr.bf16.mxu1 %v5739_v48  ;;  %4085 = vmatprep.mubr.bf16.mxu0 %v6921_v49  ;;  %v5806_v47 = vld [vmem:[%s6648_s0 + $0xd40] ss:$16 sps:$4 sm:$0xff]  }
 0x11d   : > { %4126 = vmatprep.mubr.bf16.mxu1 %v6923_v51  ;;  %v5809_v48 = vld [vmem:[%s6648_s0 + $0xf40] ss:$16 sps:$4 sm:$0xff]  }
 0x11e   : > { %4056 = vmatpush1.bf16.msra.mxu0 %v5734_v52  ;;  %v5814_v52 = vld [vmem:[%s6648_s0 + $0xd24] ss:$16 sps:$4 sm:$0xff]  }
 0x11f   : > { %4097 = vmatpush1.bf16.msra.mxu1 %v5737_v54  ;;  %4057 = vmatprep.subr.bf16.mxu0 %v5742_v55  ;;  %v5817_v54 = vld [vmem:[%s6648_s0 + $0xf24] ss:$16 sps:$4 sm:$0xff]   ;;  %v5812_v55 = vld [vmem:[%s6648_s0 + $0xd20] ss:$16 sps:$4 sm:$0xff]  }
 0x120   : > { %4098 = vmatprep.subr.bf16.mxu1 %v5745_v56  ;;  %v5815_v56 = vld [vmem:[%s6648_s0 + $0xf20] ss:$16 sps:$4 sm:$0xff]  }
 0x122   : > { %4058 = vmatpush1.bf16.msra.mxu0 %v5740_v57  ;;  %v5820_v57 = vld [vmem:[%s6648_s0 + $0xd04] ss:$16 sps:$4 sm:$0xff]  }
 0x123   : > { %4099 = vmatpush1.bf16.msra.mxu1 %v5743_v58  ;;  %4059 = vmatprep.subr.bf16.mxu0 %v5748_v59  ;;  %v5823_v58 = vld [vmem:[%s6648_s0 + $0xf04] ss:$16 sps:$4 sm:$0xff]   ;;  %v5818_v59 = vld [vmem:[%s6648_s0 + $0xd00] ss:$16 sps:$4 sm:$0xff]  }
 0x124   : > { %4100 = vmatprep.subr.bf16.mxu1 %v5751_v60  ;;  %v5821_v60 = vld [vmem:[%s6648_s0 + $0xf00] ss:$16 sps:$4 sm:$0xff]  }
 0x126   : > { %4060 = vmatpush1.bf16.msra.mxu0 %v5746_v61  ;;  %v327_v61 = vld [vmem:[%s6672_s9 + $0x60] sm:$0xff] }
 0x127   : > { %4101 = vmatpush1.bf16.msra.mxu1 %v5749_v62  ;;  %4061 = vmatprep.subr.bf16.mxu0 %v5754_v63  ;;  %v329_v62 = vld [vmem:[%s6672_s9 + $0x70] sm:$0xff] }
 0x128   : > { %4102 = vmatprep.subr.bf16.mxu1 %v5757_v0  ;;  %v5826_v63 = vld [vmem:[%s6648_s0 + $0x10e4] ss:$16 sps:$4 sm:$0xff]   ;;  %v5829_v0 = vld [vmem:[%s6648_s0 + $0xec] ss:$16 sps:$4 sm:$0xff]  }
 0x12a   : > { %4062 = vmatpush1.bf16.msra.mxu0 %v5752_v1  ;;  %v6991_v1 = vpack.c.bf16 %v327_v61, %v327_v61  ;;  %v5875_v61 = vld [vmem:[%s6648_s0 + $0x1e8] ss:$16 sps:$4 sm:$0xff]  }
 0x12b   : > { %4103 = vmatpush1.bf16.msra.mxu1 %v5755_v2  ;;  %4063 = vmatprep.subr.bf16.mxu0 %v5760_v3  ;;  %v6993_v2 = vpack.c.bf16 %v329_v62, %v329_v62  ;;  %v332_v3 = vld [vmem:[%s6672_s9 + $0x88] sm:$0xff]  ;;  %v5880_v62 = vld [vmem:[%s6648_s0 + $0x11c4] ss:$16 sps:$4 sm:$0xff]  }
 0x12c   : > { %4104 = vmatprep.subr.bf16.mxu1 %v5763_v4  ;;  %v5824_v4 = vld [vmem:[%s6648_s0 + $0x10e0] ss:$16 sps:$4 sm:$0xff]  }
 0x12e   : > { %4064 = vmatpush1.bf16.msra.mxu0 %v5758_v5  ;;  %v5827_v5 = vld [vmem:[%s6648_s0 + $0xe8] ss:$16 sps:$4 sm:$0xff]  }
 0x12f   : > { %4105 = vmatpush1.bf16.msra.mxu1 %v5761_v6  ;;  %4065 = vmatprep.subr.bf16.mxu0 %v5766_v7  ;;  %v5832_v6 = vld [vmem:[%s6648_s0 + $0x10c4] ss:$16 sps:$4 sm:$0xff]   ;;  %v5835_v7 = vld [vmem:[%s6648_s0 + $0xcc] ss:$16 sps:$4 sm:$0xff]  }
 0x130   : > { %4106 = vmatprep.subr.bf16.mxu1 %v5769_v8  ;;  %v7000_v8 = vpack.c.bf16 %v332_v3, %v332_v3  ;;  %v5881_v3 = vld [vmem:[%s6648_s0 + $0x1c8] ss:$16 sps:$4 sm:$0xff]  }
 0x132   : > { %4066 = vmatpush1.bf16.msra.mxu0 %v5764_v11 }
 0x133   : > { %4107 = vmatpush1.bf16.msra.mxu1 %v5767_v12  ;;  %4067 = vmatprep.subr.bf16.mxu0 %v5772_v13 }
 0x134   : > { %4108 = vmatprep.subr.bf16.mxu1 %v5775_v14  ;;  %v5830_v14 = vld [vmem:[%s6648_s0 + $0x10c0] ss:$16 sps:$4 sm:$0xff]  }
 0x136   : > { %4068 = vmatpush1.bf16.msra.mxu0 %v5770_v15  ;;  %v5833_v15 = vld [vmem:[%s6648_s0 + $0xc8] ss:$16 sps:$4 sm:$0xff]  }
 0x137   : > { %4109 = vmatpush1.bf16.msra.mxu1 %v5773_v16  ;;  %4069 = vmatprep.subr.bf16.mxu0 %v5778_v17 }
 0x138   : > { %4110 = vmatprep.subr.bf16.mxu1 %v5781_v18  ;;  %v5838_v18 = vld [vmem:[%s6648_s0 + $0x10a4] ss:$16 sps:$4 sm:$0xff]  }
 0x13a   : > { %4070 = vmatpush2.bf16.msra.mxu0 %v5776_v19  ;;  %v5841_v19 = vld [vmem:[%s6648_s0 + $0xac] ss:$16 sps:$4 sm:$0xff]  }
 0x13b   : > { %4111 = vmatpush2.bf16.msra.mxu1 %v5779_v20  ;;  %4071 = vmatprep.subr.bf16.mxu0 %v5784_v23 }
 0x13c   : > { %4112 = vmatprep.subr.bf16.mxu1 %v5787_v24 }
 0x13e   : > { %4072 = vmatpush2.bf16.msra.mxu0 %v5782_v25  ;;  %v5836_v25 = vld [vmem:[%s6648_s0 + $0x10a0] ss:$16 sps:$4 sm:$0xff]  }
 0x13f   : > { %4113 = vmatpush2.bf16.msra.mxu1 %v5785_v26  ;;  %4073 = vmatprep.subr.bf16.mxu0 %v5790_v27  ;;  %v5839_v26 = vld [vmem:[%s6648_s0 + $0xa8] ss:$16 sps:$4 sm:$0xff]  }
 0x140   : > { %4114 = vmatprep.subr.bf16.mxu1 %v5793_v28 }
 0x142   : > { %4074 = vmatpush2.bf16.msra.mxu0 %v5788_v29  ;;  %v5844_v29 = vld [vmem:[%s6648_s0 + $0x1084] ss:$16 sps:$4 sm:$0xff]  }
 0x143   : > { %4115 = vmatpush2.bf16.msra.mxu1 %v5791_v31  ;;  %4075 = vmatprep.subr.bf16.mxu0 %v5796_v32  ;;  %v5847_v31 = vld [vmem:[%s6648_s0 + $0x8c] ss:$16 sps:$4 sm:$0xff]   ;;  %v5845_v32 = vld [vmem:[%s6648_s0 + $0x88] ss:$16 sps:$4 sm:$0xff]  }
 0x144   : > { %4116 = vmatprep.subr.bf16.mxu1 %v5799_v34  ;;  %v5850_v34 = vld [vmem:[%s6648_s0 + $0x1064] ss:$16 sps:$4 sm:$0xff]  }
 0x146   : > { %4076 = vmatpush2.bf16.msra.mxu0 %v5794_v35  ;;  %v5853_v35 = vld [vmem:[%s6648_s0 + $0x6c] ss:$16 sps:$4 sm:$0xff]  }
 0x147   : > { %4117 = vmatpush2.bf16.msra.mxu1 %v5797_v36  ;;  %4077 = vmatprep.subr.bf16.mxu0 %v5802_v37  ;;  %v5848_v36 = vld [vmem:[%s6648_s0 + $0x1060] ss:$16 sps:$4 sm:$0xff]   ;;  %v5851_v37 = vld [vmem:[%s6648_s0 + $0x68] ss:$16 sps:$4 sm:$0xff]  }
 0x148   : > { %4118 = vmatprep.subr.bf16.mxu1 %v5805_v39  ;;  %v5856_v39 = vld [vmem:[%s6648_s0 + $0x1044] ss:$16 sps:$4 sm:$0xff]  }
 0x14a   : > { %4078 = vmatpush2.bf16.msra.mxu0 %v5800_v40  ;;  %v5859_v40 = vld [vmem:[%s6648_s0 + $0x4c] ss:$16 sps:$4 sm:$0xff]  }
 0x14b   : > { %4119 = vmatpush2.bf16.msra.mxu1 %v5803_v42  ;;  %4079 = vmatprep.subr.bf16.mxu0 %v5808_v45  ;;  %v5854_v42 = vld [vmem:[%s6648_s0 + $0x1040] ss:$16 sps:$4 sm:$0xff]   ;;  %v5857_v45 = vld [vmem:[%s6648_s0 + $0x48] ss:$16 sps:$4 sm:$0xff]  }
 0x14c   : > { %4120 = vmatprep.subr.bf16.mxu1 %v5811_v46  ;;  %v5862_v46 = vld [vmem:[%s6648_s0 + $0x1024] ss:$16 sps:$4 sm:$0xff]  }
 0x14e   : > { %4080 = vmatpush2.bf16.msra.mxu0 %v5806_v47  ;;  %v5865_v47 = vld [vmem:[%s6648_s0 + $0x2c] ss:$16 sps:$4 sm:$0xff]  }
 0x14f   : > { %4121 = vmatpush2.bf16.msra.mxu1 %v5809_v48  ;;  %4081 = vmatprep.subr.bf16.mxu0 %v5814_v52  ;;  %v5860_v48 = vld [vmem:[%s6648_s0 + $0x1020] ss:$16 sps:$4 sm:$0xff]   ;;  %v5863_v52 = vld [vmem:[%s6648_s0 + $0x28] ss:$16 sps:$4 sm:$0xff]  }
 0x150   : > { %4122 = vmatprep.subr.bf16.mxu1 %v5817_v54  ;;  %v5868_v54 = vld [vmem:[%s6648_s0 + $0x1004] ss:$16 sps:$4 sm:$0xff]  }
 0x152   : > { %4082 = vmatpush2.bf16.msra.mxu0 %v5812_v55  ;;  %v5871_v55 = vld [vmem:[%s6648_s0 + $0xc] ss:$16 sps:$4 sm:$0xff]  }
 0x153   : > { %4123 = vmatpush2.bf16.msra.mxu1 %v5815_v56  ;;  %4083 = vmatprep.subr.bf16.mxu0 %v5820_v57  ;;  %v5866_v56 = vld [vmem:[%s6648_s0 + $0x1000] ss:$16 sps:$4 sm:$0xff]   ;;  %v5869_v57 = vld [vmem:[%s6648_s0 + $0x8] ss:$16 sps:$4 sm:$0xff]  }
 0x154   : > { %4124 = vmatprep.subr.bf16.mxu1 %v5823_v58  ;;  %v5874_v58 = vld [vmem:[%s6648_s0 + $0x11e4] ss:$16 sps:$4 sm:$0xff]  }
 0x156   : > { %4084 = vmatpush2.bf16.msra.mxu0 %v5818_v59  ;;  %v5877_v59 = vld [vmem:[%s6648_s0 + $0x1ec] ss:$16 sps:$4 sm:$0xff]  }
 0x157   : > { %4125 = vmatpush2.bf16.msra.mxu1 %v5821_v60  ;;  %4135 = vmatprep.subr.bf16.mxu0 %v5826_v63  ;;  %v5872_v60 = vld [vmem:[%s6648_s0 + $0x11e0] ss:$16 sps:$4 sm:$0xff]   ;;  %v5883_v63 = vld [vmem:[%s6648_s0 + $0x1cc] ss:$16 sps:$4 sm:$0xff]  }
 0x158   : > { %4176 = vmatprep.subr.bf16.mxu1 %v5829_v0  ;;  %v5878_v0 = vld [vmem:[%s6648_s0 + $0x11c0] ss:$16 sps:$4 sm:$0xff]  }
 0x159   : > { %v3841_v11 = vpop.f32.mrf.mxu0  ;;  %4086 = vmatmul.mubr.bf16.vlgmr.msra.gmra.mxu0 %v6991_v1 }
 0x15a   : > { %v3882_v12 = vpop.f32.mrf.mxu1  ;;  %4127 = vmatmul.mubr.bf16.vlgmr.msra.gmra.mxu1 %v6993_v2  ;;  %4136 = vmatpush1.bf16.msra.mxu0 %v5824_v4  ;;  %v5886_v4 = vld [vmem:[%s6648_s0 + $0x11a4] ss:$16 sps:$4 sm:$0xff]  }
 0x15b   : > { %v7004_v13 = vadd.f32 %v3882_v12, %v3841_v11  ;;  %4177 = vmatpush1.bf16.msra.mxu1 %v5827_v5  ;;  %v3843_v16 = vpop.f32.mrf.mxu0  ;;  %4137 = vmatprep.subr.bf16.mxu0 %v5832_v6  ;;  %v5889_v5 = vld [vmem:[%s6648_s0 + $0x1ac] ss:$16 sps:$4 sm:$0xff]   ;;  %v5884_v6 = vld [vmem:[%s6648_s0 + $0x11a0] ss:$16 sps:$4 sm:$0xff]   ;;  %v5892_v11 = vld [vmem:[%s6648_s0 + $0x1184] ss:$16 sps:$4 sm:$0xff]  }
 0x15c   : > { %v3884_v17 = vpop.f32.mrf.mxu1  ;;  %4178 = vmatprep.subr.bf16.mxu1 %v5835_v7  ;;  %4167 = vmatprep.mubr.bf16.mxu0 %v7000_v8  ;;  %v5887_v7 = vld [vmem:[%s6648_s0 + $0x1a8] ss:$16 sps:$4 sm:$0xff]   ;;  %v5895_v12 = vld [vmem:[%s6648_s0 + $0x18c] ss:$16 sps:$4 sm:$0xff]  }
 0x15d   : > { %v7010_v20 = vadd.f32 %v3884_v17, %v3843_v16  ;;  %4208 = vmatprep.mubr.bf16.mxu1 %v6724_v50  ;;  %v3845_v23 = vpop.f32.mrf.mxu0  ;;  %v5842_v50 = vld [vmem:[%s6648_s0 + $0x1080] ss:$16 sps:$4 sm:$0xff]   ;;  %v5898_v16 = vld [vmem:[%s6648_s0 + $0x1164] ss:$16 sps:$4 sm:$0xff]   ;;  %v5901_v17 = vld [vmem:[%s6648_s0 + $0x16c] ss:$16 sps:$4 sm:$0xff]  }
 0x15e   : > { %v3886_v24 = vpop.f32.mrf.mxu1  ;;  %4138 = vmatpush1.bf16.msra.mxu0 %v5830_v14  ;;  %v5890_v14 = vld [vmem:[%s6648_s0 + $0x1180] ss:$16 sps:$4 sm:$0xff]   ;;  %v5904_v23 = vld [vmem:[%s6648_s0 + $0x1144] ss:$16 sps:$4 sm:$0xff]  }
 0x15f   : > { %4179 = vmatpush1.bf16.msra.mxu1 %v5833_v15  ;;  %v3846_v27 = vpop.f32.mrf.mxu0  ;;  %4139 = vmatprep.subr.bf16.mxu0 %v5838_v18  ;;  %v5893_v15 = vld [vmem:[%s6648_s0 + $0x188] ss:$16 sps:$4 sm:$0xff]   ;;  %v5896_v18 = vld [vmem:[%s6648_s0 + $0x1160] ss:$16 sps:$4 sm:$0xff]   ;;  %v5907_v24 = vld [vmem:[%s6648_s0 + $0x14c] ss:$16 sps:$4 sm:$0xff]  }
 0x160   : > { %v3887_v28 = vpop.f32.mrf.mxu1  ;;  %4180 = vmatprep.subr.bf16.mxu1 %v5841_v19  ;;  %v5899_v19 = vld [vmem:[%s6648_s0 + $0x168] ss:$16 sps:$4 sm:$0xff]   ;;  %v5910_v27 = vld [vmem:[%s6648_s0 + $0x1124] ss:$16 sps:$4 sm:$0xff]  }
 0x161   : > { %v5913_v28 = vld [vmem:[%s6648_s0 + $0x12c] ss:$16 sps:$4 sm:$0xff]  }
 0x162   : > { %4140 = vmatpush1.bf16.msra.mxu0 %v5836_v25  ;;  %v5902_v25 = vld [vmem:[%s6648_s0 + $0x1140] ss:$16 sps:$4 sm:$0xff]  }
 0x163   : > { %4181 = vmatpush1.bf16.msra.mxu1 %v5839_v26  ;;  %4141 = vmatprep.subr.bf16.mxu0 %v5844_v29  ;;  %v5905_v26 = vld [vmem:[%s6648_s0 + $0x148] ss:$16 sps:$4 sm:$0xff]   ;;  %v5908_v29 = vld [vmem:[%s6648_s0 + $0x1120] ss:$16 sps:$4 sm:$0xff]  }
 0x164   : > { %4182 = vmatprep.subr.bf16.mxu1 %v5847_v31  ;;  %v5911_v31 = vld [vmem:[%s6648_s0 + $0x128] ss:$16 sps:$4 sm:$0xff]  }
 0x166   : > { %4142 = vmatpush1.bf16.msra.mxu0 %v5842_v50  ;;  %v5916_v50 = vld [vmem:[%s6648_s0 + $0x1104] ss:$16 sps:$4 sm:$0xff]  }
 0x167   : > { %4183 = vmatpush1.bf16.msra.mxu1 %v5845_v32  ;;  %4143 = vmatprep.subr.bf16.mxu0 %v5850_v34  ;;  %v5919_v32 = vld [vmem:[%s6648_s0 + $0x10c] ss:$16 sps:$4 sm:$0xff]   ;;  %v5914_v34 = vld [vmem:[%s6648_s0 + $0x1100] ss:$16 sps:$4 sm:$0xff]  }
 0x168   : > { %4184 = vmatprep.subr.bf16.mxu1 %v5853_v35  ;;  %v5917_v35 = vld [vmem:[%s6648_s0 + $0x108] ss:$16 sps:$4 sm:$0xff]  }
 0x16a   : > { %4144 = vmatpush1.bf16.msra.mxu0 %v5848_v36  ;;  %v331_v36 = vld [vmem:[%s6672_s9 + $0x80] sm:$0xff] }
 0x16b   : > { %4185 = vmatpush1.bf16.msra.mxu1 %v5851_v37  ;;  %4145 = vmatprep.subr.bf16.mxu0 %v5856_v39  ;;  %v5922_v37 = vld [vmem:[%s6648_s0 + $0x2ec] ss:$16 sps:$4 sm:$0xff]  }
 0x16c   : > { %4186 = vmatprep.subr.bf16.mxu1 %v5859_v40  ;;  %v5925_v39 = vld [vmem:[%s6648_s0 + $0x4ec] ss:$16 sps:$4 sm:$0xff]   ;;  %v5920_v40 = vld [vmem:[%s6648_s0 + $0x2e8] ss:$16 sps:$4 sm:$0xff]  }
 0x16e   : > { %4146 = vmatpush1.bf16.msra.mxu0 %v5854_v42  ;;  %v5923_v42 = vld [vmem:[%s6648_s0 + $0x4e8] ss:$16 sps:$4 sm:$0xff]  }
 0x16f   : > { %4187 = vmatpush1.bf16.msra.mxu1 %v5857_v45  ;;  %4147 = vmatprep.subr.bf16.mxu0 %v5862_v46  ;;  %v7073_v45 = vpack.c.bf16 %v331_v36, %v331_v36  ;;  %v5928_v46 = vld [vmem:[%s6648_s0 + $0x2cc] ss:$16 sps:$4 sm:$0xff]  }
 0x170   : > { %4188 = vmatprep.subr.bf16.mxu1 %v5865_v47  ;;  %v5931_v47 = vld [vmem:[%s6648_s0 + $0x4cc] ss:$16 sps:$4 sm:$0xff]  }
 0x171   : > { %v5979_v36 = vld [vmem:[%s6648_s0 + $0x5cc] ss:$16 sps:$4 sm:$0xff]  }
 0x172   : > { %4148 = vmatpush1.bf16.msra.mxu0 %v5860_v48  ;;  %v5926_v48 = vld [vmem:[%s6648_s0 + $0x2c8] ss:$16 sps:$4 sm:$0xff]  }
 0x173   : > { %4189 = vmatpush1.bf16.msra.mxu1 %v5863_v52  ;;  %4149 = vmatprep.subr.bf16.mxu0 %v5868_v54  ;;  %v5929_v52 = vld [vmem:[%s6648_s0 + $0x4c8] ss:$16 sps:$4 sm:$0xff]  }
 0x174   : > { %4190 = vmatprep.subr.bf16.mxu1 %v5871_v55 }
 0x176   : > { %4150 = vmatpush1.bf16.msra.mxu0 %v5866_v56 }
 0x177   : > { %4191 = vmatpush1.bf16.msra.mxu1 %v5869_v57  ;;  %4151 = vmatprep.subr.bf16.mxu0 %v5874_v58 }
 0x178   : > { %4192 = vmatprep.subr.bf16.mxu1 %v5877_v59  ;;  %v5934_v59 = vld [vmem:[%s6648_s0 + $0x2ac] ss:$16 sps:$4 sm:$0xff]  }
 0x17a   : > { %4152 = vmatpush2.bf16.msra.mxu0 %v5872_v60  ;;  %v5937_v60 = vld [vmem:[%s6648_s0 + $0x4ac] ss:$16 sps:$4 sm:$0xff]  }
 0x17b   : > { %4193 = vmatpush2.bf16.msra.mxu1 %v5875_v61  ;;  %4153 = vmatprep.subr.bf16.mxu0 %v5880_v62 }
 0x17c   : > { %4194 = vmatprep.subr.bf16.mxu1 %v5883_v63  ;;  %v5932_v63 = vld [vmem:[%s6648_s0 + $0x2a8] ss:$16 sps:$4 sm:$0xff]  }
 0x17e   : > { %4154 = vmatpush2.bf16.msra.mxu0 %v5878_v0  ;;  %v5935_v0 = vld [vmem:[%s6648_s0 + $0x4a8] ss:$16 sps:$4 sm:$0xff]  }
 0x17f   : > { %4195 = vmatpush2.bf16.msra.mxu1 %v5881_v3  ;;  %4155 = vmatprep.subr.bf16.mxu0 %v5886_v4 }
 0x180   : > { %4196 = vmatprep.subr.bf16.mxu1 %v5889_v5 }
 0x182   : > { %4156 = vmatpush2.bf16.msra.mxu0 %v5884_v6  ;;  %v5941_v6 = vld [vmem:[%s6648_s0 + $0x488] ss:$16 sps:$4 sm:$0xff]  }
 0x183   : > { %4197 = vmatpush2.bf16.msra.mxu1 %v5887_v7  ;;  %4157 = vmatprep.subr.bf16.mxu0 %v5892_v11  ;;  %v5946_v7 = vld [vmem:[%s6648_s0 + $0x26c] ss:$16 sps:$4 sm:$0xff]  }
 0x184   : > { %4198 = vmatprep.subr.bf16.mxu1 %v5895_v12  ;;  %v5949_v11 = vld [vmem:[%s6648_s0 + $0x46c] ss:$16 sps:$4 sm:$0xff]   ;;  %v5944_v12 = vld [vmem:[%s6648_s0 + $0x268] ss:$16 sps:$4 sm:$0xff]  }
 0x186   : > { %4158 = vmatpush2.bf16.msra.mxu0 %v5890_v14  ;;  %v5947_v14 = vld [vmem:[%s6648_s0 + $0x468] ss:$16 sps:$4 sm:$0xff]  }
 0x187   : > { %4199 = vmatpush2.bf16.msra.mxu1 %v5893_v15  ;;  %4159 = vmatprep.subr.bf16.mxu0 %v5898_v16  ;;  %v5952_v15 = vld [vmem:[%s6648_s0 + $0x24c] ss:$16 sps:$4 sm:$0xff]  }
 0x188   : > { %4200 = vmatprep.subr.bf16.mxu1 %v5901_v17  ;;  %v5955_v16 = vld [vmem:[%s6648_s0 + $0x44c] ss:$16 sps:$4 sm:$0xff]   ;;  %v5950_v17 = vld [vmem:[%s6648_s0 + $0x248] ss:$16 sps:$4 sm:$0xff]  }
 0x18a   : > { %4160 = vmatpush2.bf16.msra.mxu0 %v5896_v18  ;;  %v5953_v18 = vld [vmem:[%s6648_s0 + $0x448] ss:$16 sps:$4 sm:$0xff]  }
 0x18b   : > { %4201 = vmatpush2.bf16.msra.mxu1 %v5899_v19  ;;  %4161 = vmatprep.subr.bf16.mxu0 %v5904_v23  ;;  %v5958_v19 = vld [vmem:[%s6648_s0 + $0x22c] ss:$16 sps:$4 sm:$0xff]  }
 0x18c   : > { %4202 = vmatprep.subr.bf16.mxu1 %v5907_v24  ;;  %v5961_v23 = vld [vmem:[%s6648_s0 + $0x42c] ss:$16 sps:$4 sm:$0xff]   ;;  %v5956_v24 = vld [vmem:[%s6648_s0 + $0x228] ss:$16 sps:$4 sm:$0xff]  }
 0x18e   : > { %4162 = vmatpush2.bf16.msra.mxu0 %v5902_v25  ;;  %v5959_v25 = vld [vmem:[%s6648_s0 + $0x428] ss:$16 sps:$4 sm:$0xff]  }
 0x18f   : > { %4203 = vmatpush2.bf16.msra.mxu1 %v5905_v26  ;;  %4163 = vmatprep.subr.bf16.mxu0 %v5910_v27  ;;  %v5964_v26 = vld [vmem:[%s6648_s0 + $0x20c] ss:$16 sps:$4 sm:$0xff]  }
 0x190   : > { %4204 = vmatprep.subr.bf16.mxu1 %v5913_v28  ;;  %v5967_v27 = vld [vmem:[%s6648_s0 + $0x40c] ss:$16 sps:$4 sm:$0xff]   ;;  %v5962_v28 = vld [vmem:[%s6648_s0 + $0x208] ss:$16 sps:$4 sm:$0xff]  }
 0x192   : > { %4164 = vmatpush2.bf16.msra.mxu0 %v5908_v29  ;;  %v5965_v29 = vld [vmem:[%s6648_s0 + $0x408] ss:$16 sps:$4 sm:$0xff]  }
 0x193   : > { %4205 = vmatpush2.bf16.msra.mxu1 %v5911_v31  ;;  %4165 = vmatprep.subr.bf16.mxu0 %v5916_v50  ;;  %v5970_v31 = vld [vmem:[%s6648_s0 + $0x3ec] ss:$16 sps:$4 sm:$0xff]  }
 0x194   : > { %4206 = vmatprep.subr.bf16.mxu1 %v5919_v32  ;;  %v5973_v50 = vld [vmem:[%s6648_s0 + $0x5ec] ss:$16 sps:$4 sm:$0xff]   ;;  %v5968_v32 = vld [vmem:[%s6648_s0 + $0x3e8] ss:$16 sps:$4 sm:$0xff]  }
 0x196   : > { %4166 = vmatpush2.bf16.msra.mxu0 %v5914_v34  ;;  %v5971_v34 = vld [vmem:[%s6648_s0 + $0x5e8] ss:$16 sps:$4 sm:$0xff]  }
 0x197   : > { %4207 = vmatpush2.bf16.msra.mxu1 %v5917_v35  ;;  %4217 = vmatprep.subr.bf16.mxu0 %v5922_v37  ;;  %v5976_v35 = vld [vmem:[%s6648_s0 + $0x3cc] ss:$16 sps:$4 sm:$0xff]   ;;  %v5974_v37 = vld [vmem:[%s6648_s0 + $0x3c8] ss:$16 sps:$4 sm:$0xff]  }
 0x198   : > { %4258 = vmatprep.subr.bf16.mxu1 %v5925_v39  ;;  %v5977_v39 = vld [vmem:[%s6648_s0 + $0x5c8] ss:$16 sps:$4 sm:$0xff]  }
 0x199   : > { %v3923_v54 = vpop.f32.mrf.mxu0  ;;  %4168 = vmatmul.mubr.bf16.vlgmr.msra.gmra.mxu0 %v7073_v45 }
 0x19a   : > { %v3964_v55 = vpop.f32.mrf.mxu1  ;;  %4209 = vmatmul.mubr.bf16.vlgmr.msra.gmra.mxu1 %v6751_v9  ;;  %v3924_v56 = vadd.f32 %v3923_v54, %v7004_v13  ;;  %4218 = vmatpush1.bf16.msra.mxu0 %v5920_v40  ;;  %v5982_v40 = vld [vmem:[%s6648_s0 + $0x3ac] ss:$16 sps:$4 sm:$0xff]   ;;  %v5986_v54 = vld [vmem:[%s6648_s0 + $0x388] ss:$16 sps:$4 sm:$0xff]  }
 0x19b   : > { %4259 = vmatpush1.bf16.msra.mxu1 %v5923_v42  ;;  %v3925_v57 = vpop.f32.mrf.mxu0  ;;  %4219 = vmatprep.subr.bf16.mxu0 %v5928_v46  ;;  %v5985_v42 = vld [vmem:[%s6648_s0 + $0x5ac] ss:$16 sps:$4 sm:$0xff]   ;;  %v5980_v46 = vld [vmem:[%s6648_s0 + $0x3a8] ss:$16 sps:$4 sm:$0xff]  }
 0x19c   : > { %v3966_v58 = vpop.f32.mrf.mxu1  ;;  %4260 = vmatprep.subr.bf16.mxu1 %v5931_v47  ;;  %v7084_v61 = vadd.f32 %v3964_v55, %v3924_v56  ;;  %v3926_v62 = vadd.f32 %v3925_v57, %v7010_v20  ;;  %4249 = vmatprep.mubr.bf16.mxu0 %v6728_v53  ;;  %v5940_v20 = vld [vmem:[%s6648_s0 + $0x28c] ss:$16 sps:$4 sm:$0xff]   ;;  %v5983_v47 = vld [vmem:[%s6648_s0 + $0x5a8] ss:$16 sps:$4 sm:$0xff]  }
 0x19d   : > { %4290 = vmatprep.mubr.bf16.mxu1 %v6784_v38  ;;  %v3927_v9 = vpop.f32.mrf.mxu0  ;;  %v5943_v53 = vld [vmem:[%s6648_s0 + $0x48c] ss:$16 sps:$4 sm:$0xff]   ;;  %v5938_v38 = vld [vmem:[%s6648_s0 + $0x288] ss:$16 sps:$4 sm:$0xff]  }
 0x19e   : > { %v3968_v13 = vpop.f32.mrf.mxu1  ;;  %v7091_v3 = vadd.f32 %v3966_v58, %v3926_v62  ;;  %4220 = vmatpush1.bf16.msra.mxu0 %v5926_v48  ;;  %v5988_v48 = vld [vmem:[%s6648_s0 + $0x38c] ss:$16 sps:$4 sm:$0xff]   ;;  %v5989_v55 = vld [vmem:[%s6648_s0 + $0x588] ss:$16 sps:$4 sm:$0xff]  }
 0x19f   : > { %4261 = vmatpush1.bf16.msra.mxu1 %v5929_v52  ;;  %v3928_v4 = vpop.f32.mrf.mxu0  ;;  %4221 = vmatprep.subr.bf16.mxu0 %v5934_v59  ;;  %v5991_v52 = vld [vmem:[%s6648_s0 + $0x58c] ss:$16 sps:$4 sm:$0xff]   ;;  %v5992_v58 = vld [vmem:[%s6648_s0 + $0x368] ss:$16 sps:$4 sm:$0xff]  }
 0x1a0   : > { %v3969_v5 = vpop.f32.mrf.mxu1  ;;  %4262 = vmatprep.subr.bf16.mxu1 %v5937_v60  ;;  %v5994_v56 = vld [vmem:[%s6648_s0 + $0x36c] ss:$16 sps:$4 sm:$0xff]   ;;  %v5995_v59 = vld [vmem:[%s6648_s0 + $0x568] ss:$16 sps:$4 sm:$0xff]  }
 0x1a1   : > { %v5997_v57 = vld [vmem:[%s6648_s0 + $0x56c] ss:$16 sps:$4 sm:$0xff]   ;;  %v6004_v4 = vld [vmem:[%s6648_s0 + $0x328] ss:$16 sps:$4 sm:$0xff]  }
 0x1a2   : > { %4222 = vmatpush1.bf16.msra.mxu0 %v5932_v63  ;;  %v6000_v60 = vld [vmem:[%s6648_s0 + $0x34c] ss:$16 sps:$4 sm:$0xff]   ;;  %v5998_v63 = vld [vmem:[%s6648_s0 + $0x348] ss:$16 sps:$4 sm:$0xff]  }
 0x1a3   : > { %4263 = vmatpush1.bf16.msra.mxu1 %v5935_v0  ;;  %4223 = vmatprep.subr.bf16.mxu0 %v5940_v20  ;;  %v6003_v62 = vld [vmem:[%s6648_s0 + $0x54c] ss:$16 sps:$4 sm:$0xff]   ;;  %v6001_v0 = vld [vmem:[%s6648_s0 + $0x548] ss:$16 sps:$4 sm:$0xff]  }
 0x1a4   : > { %4264 = vmatprep.subr.bf16.mxu1 %v5943_v53  ;;  %v6006_v9 = vld [vmem:[%s6648_s0 + $0x32c] ss:$16 sps:$4 sm:$0xff]   ;;  %v6007_v5 = vld [vmem:[%s6648_s0 + $0x528] ss:$16 sps:$4 sm:$0xff]  }
 0x1a5   : > { %v6009_v13 = vld [vmem:[%s6648_s0 + $0x52c] ss:$16 sps:$4 sm:$0xff]  }
 0x1a6   : > { %4224 = vmatpush1.bf16.msra.mxu0 %v5938_v38  ;;  %v6012_v20 = vld [vmem:[%s6648_s0 + $0x30c] ss:$16 sps:$4 sm:$0xff]   ;;  %v6010_v38 = vld [vmem:[%s6648_s0 + $0x308] ss:$16 sps:$4 sm:$0xff]  }
 0x1a7   : > { %4265 = vmatpush1.bf16.msra.mxu1 %v5941_v6  ;;  %4225 = vmatprep.subr.bf16.mxu0 %v5946_v7  ;;  %v6015_v53 = vld [vmem:[%s6648_s0 + $0x50c] ss:$16 sps:$4 sm:$0xff]   ;;  %v6013_v6 = vld [vmem:[%s6648_s0 + $0x508] ss:$16 sps:$4 sm:$0xff]  }
 0x1a8   : > { %4266 = vmatprep.subr.bf16.mxu1 %v5949_v11  ;;  %v6018_v7 = vld [vmem:[%s6648_s0 + $0x6ec] ss:$16 sps:$4 sm:$0xff]  }
 0x1a9   : > { %v6021_v11 = vld [vmem:[%s6648_s0 + $0x8ec] ss:$16 sps:$4 sm:$0xff]  }
 0x1aa   : > { %4226 = vmatpush1.bf16.msra.mxu0 %v5944_v12  ;;  %v6016_v12 = vld [vmem:[%s6648_s0 + $0x6e8] ss:$16 sps:$4 sm:$0xff]  }
 0x1ab   : > { %4267 = vmatpush1.bf16.msra.mxu1 %v5947_v14  ;;  %4227 = vmatprep.subr.bf16.mxu0 %v5952_v15  ;;  %v6019_v14 = vld [vmem:[%s6648_s0 + $0x8e8] ss:$16 sps:$4 sm:$0xff]   ;;  %v6024_v15 = vld [vmem:[%s6648_s0 + $0x6cc] ss:$16 sps:$4 sm:$0xff]  }
 0x1ac   : > { %4268 = vmatprep.subr.bf16.mxu1 %v5955_v16  ;;  %v6027_v16 = vld [vmem:[%s6648_s0 + $0x8cc] ss:$16 sps:$4 sm:$0xff]  }
 0x1ae   : > { %4228 = vmatpush1.bf16.msra.mxu0 %v5950_v17 }
 0x1af   : > { %4269 = vmatpush1.bf16.msra.mxu1 %v5953_v18  ;;  %4229 = vmatprep.subr.bf16.mxu0 %v5958_v19 }
 0x1b0   : > { %4270 = vmatprep.subr.bf16.mxu1 %v5961_v23  ;;  %v6022_v23 = vld [vmem:[%s6648_s0 + $0x6c8] ss:$16 sps:$4 sm:$0xff]  }
 0x1b2   : > { %4230 = vmatpush1.bf16.msra.mxu0 %v5956_v24  ;;  %v6025_v24 = vld [vmem:[%s6648_s0 + $0x8c8] ss:$16 sps:$4 sm:$0xff]  }
 0x1b3   : > { %4271 = vmatpush1.bf16.msra.mxu1 %v5959_v25  ;;  %4231 = vmatprep.subr.bf16.mxu0 %v5964_v26 }
 0x1b4   : > { %4272 = vmatprep.subr.bf16.mxu1 %v5967_v27  ;;  %v6030_v27 = vld [vmem:[%s6648_s0 + $0x6ac] ss:$16 sps:$4 sm:$0xff]  }
 0x1b6   : > { %4232 = vmatpush1.bf16.msra.mxu0 %v5962_v28  ;;  %v6033_v28 = vld [vmem:[%s6648_s0 + $0x8ac] ss:$16 sps:$4 sm:$0xff]  }
 0x1b7   : > { %4273 = vmatpush1.bf16.msra.mxu1 %v5965_v29  ;;  %4233 = vmatprep.subr.bf16.mxu0 %v5970_v31 }
 0x1b8   : > { %4274 = vmatprep.subr.bf16.mxu1 %v5973_v50  ;;  %v6028_v50 = vld [vmem:[%s6648_s0 + $0x6a8] ss:$16 sps:$4 sm:$0xff]  }
 0x1ba   : > { %4234 = vmatpush2.bf16.msra.mxu0 %v5968_v32  ;;  %v6031_v32 = vld [vmem:[%s6648_s0 + $0x8a8] ss:$16 sps:$4 sm:$0xff]  }
 0x1bb   : > { %4275 = vmatpush2.bf16.msra.mxu1 %v5971_v34  ;;  %4235 = vmatprep.subr.bf16.mxu0 %v5976_v35 }
 0x1bc   : > { %4276 = vmatprep.subr.bf16.mxu1 %v5979_v36  ;;  %v6037_v36 = vld [vmem:[%s6648_s0 + $0x888] ss:$16 sps:$4 sm:$0xff]  }
 0x1be   : > { %4236 = vmatpush2.bf16.msra.mxu0 %v5974_v37  ;;  %v6042_v37 = vld [vmem:[%s6648_s0 + $0x66c] ss:$16 sps:$4 sm:$0xff]  }
 0x1bf   : > { %4277 = vmatpush2.bf16.msra.mxu1 %v5977_v39  ;;  %4237 = vmatprep.subr.bf16.mxu0 %v5982_v40  ;;  %v6045_v39 = vld [vmem:[%s6648_s0 + $0x86c] ss:$16 sps:$4 sm:$0xff]   ;;  %v6040_v40 = vld [vmem:[%s6648_s0 + $0x668] ss:$16 sps:$4 sm:$0xff]  }
 0x1c0   : > { %4278 = vmatprep.subr.bf16.mxu1 %v5985_v42  ;;  %v6043_v42 = vld [vmem:[%s6648_s0 + $0x868] ss:$16 sps:$4 sm:$0xff]  }
 0x1c2   : > { %4238 = vmatpush2.bf16.msra.mxu0 %v5980_v46  ;;  %v6048_v46 = vld [vmem:[%s6648_s0 + $0x64c] ss:$16 sps:$4 sm:$0xff]  }
 0x1c3   : > { %4279 = vmatpush2.bf16.msra.mxu1 %v5983_v47  ;;  %4239 = vmatprep.subr.bf16.mxu0 %v5988_v48  ;;  %v6051_v47 = vld [vmem:[%s6648_s0 + $0x84c] ss:$16 sps:$4 sm:$0xff]   ;;  %v6046_v48 = vld [vmem:[%s6648_s0 + $0x648] ss:$16 sps:$4 sm:$0xff]  }
 0x1c4   : > { %4280 = vmatprep.subr.bf16.mxu1 %v5991_v52  ;;  %v6049_v52 = vld [vmem:[%s6648_s0 + $0x848] ss:$16 sps:$4 sm:$0xff]  }
 0x1c6   : > { %4240 = vmatpush2.bf16.msra.mxu0 %v5986_v54  ;;  %v6054_v54 = vld [vmem:[%s6648_s0 + $0x62c] ss:$16 sps:$4 sm:$0xff]  }
 0x1c7   : > { %4281 = vmatpush2.bf16.msra.mxu1 %v5989_v55  ;;  %4241 = vmatprep.subr.bf16.mxu0 %v5994_v56  ;;  %v6057_v55 = vld [vmem:[%s6648_s0 + $0x82c] ss:$16 sps:$4 sm:$0xff]   ;;  %v6052_v56 = vld [vmem:[%s6648_s0 + $0x628] ss:$16 sps:$4 sm:$0xff]  }
 0x1c8   : > { %4282 = vmatprep.subr.bf16.mxu1 %v5997_v57  ;;  %v6055_v57 = vld [vmem:[%s6648_s0 + $0x828] ss:$16 sps:$4 sm:$0xff]  }
 0x1ca   : > { %4242 = vmatpush2.bf16.msra.mxu0 %v5992_v58  ;;  %v6060_v58 = vld [vmem:[%s6648_s0 + $0x60c] ss:$16 sps:$4 sm:$0xff]  }
 0x1cb   : > { %4283 = vmatpush2.bf16.msra.mxu1 %v5995_v59  ;;  %4243 = vmatprep.subr.bf16.mxu0 %v6000_v60  ;;  %v6063_v59 = vld [vmem:[%s6648_s0 + $0x80c] ss:$16 sps:$4 sm:$0xff]   ;;  %v6058_v60 = vld [vmem:[%s6648_s0 + $0x608] ss:$16 sps:$4 sm:$0xff]  }
 0x1cc   : > { %4284 = vmatprep.subr.bf16.mxu1 %v6003_v62  ;;  %v6061_v62 = vld [vmem:[%s6648_s0 + $0x808] ss:$16 sps:$4 sm:$0xff]  }
 0x1ce   : > { %4244 = vmatpush2.bf16.msra.mxu0 %v5998_v63  ;;  %v6066_v63 = vld [vmem:[%s6648_s0 + $0x7ec] ss:$16 sps:$4 sm:$0xff]  }
 0x1cf   : > { %4285 = vmatpush2.bf16.msra.mxu1 %v6001_v0  ;;  %4245 = vmatprep.subr.bf16.mxu0 %v6006_v9  ;;  %v6069_v0 = vld [vmem:[%s6648_s0 + $0x9ec] ss:$16 sps:$4 sm:$0xff]   ;;  %v6064_v9 = vld [vmem:[%s6648_s0 + $0x7e8] ss:$16 sps:$4 sm:$0xff]  }
 0x1d0   : > { %4286 = vmatprep.subr.bf16.mxu1 %v6009_v13  ;;  %v6067_v13 = vld [vmem:[%s6648_s0 + $0x9e8] ss:$16 sps:$4 sm:$0xff]  }
 0x1d2   : > { %4246 = vmatpush2.bf16.msra.mxu0 %v6004_v4  ;;  %v6072_v4 = vld [vmem:[%s6648_s0 + $0x7cc] ss:$16 sps:$4 sm:$0xff]  }
 0x1d3   : > { %4287 = vmatpush2.bf16.msra.mxu1 %v6007_v5  ;;  %4247 = vmatprep.subr.bf16.mxu0 %v6012_v20  ;;  %v6075_v5 = vld [vmem:[%s6648_s0 + $0x9cc] ss:$16 sps:$4 sm:$0xff]   ;;  %v6070_v20 = vld [vmem:[%s6648_s0 + $0x7c8] ss:$16 sps:$4 sm:$0xff]  }
 0x1d4   : > { %4288 = vmatprep.subr.bf16.mxu1 %v6015_v53  ;;  %v6073_v53 = vld [vmem:[%s6648_s0 + $0x9c8] ss:$16 sps:$4 sm:$0xff]  }
 0x1d6   : > { %4248 = vmatpush2.bf16.msra.mxu0 %v6010_v38  ;;  %v6078_v38 = vld [vmem:[%s6648_s0 + $0x7ac] ss:$16 sps:$4 sm:$0xff]  }
 0x1d7   : > { %4289 = vmatpush2.bf16.msra.mxu1 %v6013_v6  ;;  %4299 = vmatprep.subr.bf16.mxu0 %v6018_v7  ;;  %v6081_v6 = vld [vmem:[%s6648_s0 + $0x9ac] ss:$16 sps:$4 sm:$0xff]   ;;  %v6076_v7 = vld [vmem:[%s6648_s0 + $0x7a8] ss:$16 sps:$4 sm:$0xff]  }
 0x1d8   : > { %4340 = vmatprep.subr.bf16.mxu1 %v6021_v11  ;;  %v6079_v11 = vld [vmem:[%s6648_s0 + $0x9a8] ss:$16 sps:$4 sm:$0xff]  }
 0x1d9   : > { %v4005_v17 = vpop.f32.mrf.mxu0  ;;  %4250 = vmatmul.mubr.bf16.vlgmr.msra.gmra.mxu0 %v6753_v10 }
 0x1da   : > { %v4046_v18 = vpop.f32.mrf.mxu1  ;;  %4291 = vmatmul.mubr.bf16.vlgmr.msra.gmra.mxu1 %v6831_v21  ;;  %v4006_v19 = vadd.f32 %v4005_v17, %v7084_v61  ;;  %4300 = vmatpush1.bf16.msra.mxu0 %v6016_v12  ;;  %v6084_v12 = vld [vmem:[%s6648_s0 + $0x78c] ss:$16 sps:$4 sm:$0xff]  }
 0x1db   : > { %4341 = vmatpush1.bf16.msra.mxu1 %v6019_v14  ;;  %v4007_v25 = vpop.f32.mrf.mxu0  ;;  %4301 = vmatprep.subr.bf16.mxu0 %v6024_v15  ;;  %v6087_v14 = vld [vmem:[%s6648_s0 + $0x98c] ss:$16 sps:$4 sm:$0xff]   ;;  %v6082_v15 = vld [vmem:[%s6648_s0 + $0x788] ss:$16 sps:$4 sm:$0xff]  }
 0x1dc   : > { %v4048_v26 = vpop.f32.mrf.mxu1  ;;  %4342 = vmatprep.subr.bf16.mxu1 %v6027_v16  ;;  %v7158_v29 = vadd.f32 %v4046_v18, %v4006_v19  ;;  %v4008_v10 = vadd.f32 %v4007_v25, %v7091_v3  ;;  %4331 = vmatprep.mubr.bf16.mxu0 %v6788_v41  ;;  %v6036_v41 = vld [vmem:[%s6648_s0 + $0x68c] ss:$16 sps:$4 sm:$0xff]   ;;  %v6034_v3 = vld [vmem:[%s6648_s0 + $0x688] ss:$16 sps:$4 sm:$0xff]  }
 0x1dd   : > { %4372 = vmatprep.mubr.bf16.mxu1 %v6844_v30  ;;  %v4009_v21 = vpop.f32.mrf.mxu0  ;;  %v6039_v30 = vld [vmem:[%s6648_s0 + $0x88c] ss:$16 sps:$4 sm:$0xff]   ;;  %v6085_v16 = vld [vmem:[%s6648_s0 + $0x988] ss:$16 sps:$4 sm:$0xff]  }
 0x1de   : > { %v4050_v61 = vpop.f32.mrf.mxu1  ;;  %v7163_v31 = vadd.f32 %v4048_v26, %v4008_v10  ;;  %4302 = vmatpush1.bf16.msra.mxu0 %v6022_v23  ;;  %v6090_v17 = vld [vmem:[%s6648_s0 + $0x76c] ss:$16 sps:$4 sm:$0xff]   ;;  %v6088_v19 = vld [vmem:[%s6648_s0 + $0x768] ss:$16 sps:$4 sm:$0xff]  }
 0x1df   : > { %4343 = vmatpush1.bf16.msra.mxu1 %v6025_v24  ;;  %v4010_v34 = vpop.f32.mrf.mxu0  ;;  %4303 = vmatprep.subr.bf16.mxu0 %v6030_v27  ;;  %v6093_v18 = vld [vmem:[%s6648_s0 + $0x96c] ss:$16 sps:$4 sm:$0xff]   ;;  %v6091_v23 = vld [vmem:[%s6648_s0 + $0x968] ss:$16 sps:$4 sm:$0xff]  }
 0x1e0   : > { %v4051_v35 = vpop.f32.mrf.mxu1  ;;  %4344 = vmatprep.subr.bf16.mxu1 %v6033_v28  ;;  %v6096_v24 = vld [vmem:[%s6648_s0 + $0x74c] ss:$16 sps:$4 sm:$0xff]   ;;  %v6094_v26 = vld [vmem:[%s6648_s0 + $0x748] ss:$16 sps:$4 sm:$0xff]  }
 0x1e1   : > { %v6099_v25 = vld [vmem:[%s6648_s0 + $0x94c] ss:$16 sps:$4 sm:$0xff]   ;;  %v6097_v27 = vld [vmem:[%s6648_s0 + $0x948] ss:$16 sps:$4 sm:$0xff]  }
 0x1e2   : > { %4304 = vmatpush1.bf16.msra.mxu0 %v6028_v50  ;;  %v6102_v28 = vld [vmem:[%s6648_s0 + $0x72c] ss:$16 sps:$4 sm:$0xff]   ;;  %v6100_v21 = vld [vmem:[%s6648_s0 + $0x728] ss:$16 sps:$4 sm:$0xff]  }
 0x1e3   : > { %4345 = vmatpush1.bf16.msra.mxu1 %v6031_v32  ;;  %4305 = vmatprep.subr.bf16.mxu0 %v6036_v41  ;;  %v6105_v10 = vld [vmem:[%s6648_s0 + $0x92c] ss:$16 sps:$4 sm:$0xff]   ;;  %v6103_v61 = vld [vmem:[%s6648_s0 + $0x928] ss:$16 sps:$4 sm:$0xff]  }
 0x1e4   : > { %4346 = vmatprep.subr.bf16.mxu1 %v6039_v30  ;;  %v6108_v50 = vld [vmem:[%s6648_s0 + $0x70c] ss:$16 sps:$4 sm:$0xff]   ;;  %v6106_v34 = vld [vmem:[%s6648_s0 + $0x708] ss:$16 sps:$4 sm:$0xff]  }
 0x1e5   : > { %v6111_v32 = vld [vmem:[%s6648_s0 + $0x90c] ss:$16 sps:$4 sm:$0xff]   ;;  %v6109_v35 = vld [vmem:[%s6648_s0 + $0x908] ss:$16 sps:$4 sm:$0xff]  }
 0x1e6   : > { %4306 = vmatpush1.bf16.msra.mxu0 %v6034_v3  ;;  %v6114_v41 = vld [vmem:[%s6648_s0 + $0xaec] ss:$16 sps:$4 sm:$0xff]   ;;  %v6112_v3 = vld [vmem:[%s6648_s0 + $0xae8] ss:$16 sps:$4 sm:$0xff]  }
 0x1e7   : > { %4347 = vmatpush1.bf16.msra.mxu1 %v6037_v36  ;;  %4307 = vmatprep.subr.bf16.mxu0 %v6042_v37  ;;  %v6117_v30 = vld [vmem:[%s6648_s0 + $0xcec] ss:$16 sps:$4 sm:$0xff]   ;;  %v6115_v36 = vld [vmem:[%s6648_s0 + $0xce8] ss:$16 sps:$4 sm:$0xff]  }
 0x1e8   : > { %4348 = vmatprep.subr.bf16.mxu1 %v6045_v39  ;;  %v6120_v37 = vld [vmem:[%s6648_s0 + $0xacc] ss:$16 sps:$4 sm:$0xff]  }
 0x1e9   : > { %v6123_v39 = vld [vmem:[%s6648_s0 + $0xccc] ss:$16 sps:$4 sm:$0xff]  }
 0x1ea   : > { %4308 = vmatpush1.bf16.msra.mxu0 %v6040_v40 }
 0x1eb   : > { %4349 = vmatpush1.bf16.msra.mxu1 %v6043_v42  ;;  %4309 = vmatprep.subr.bf16.mxu0 %v6048_v46  ;;  %v6118_v46 = vld [vmem:[%s6648_s0 + $0xac8] ss:$16 sps:$4 sm:$0xff]  }
 0x1ec   : > { %4350 = vmatprep.subr.bf16.mxu1 %v6051_v47  ;;  %v6121_v47 = vld [vmem:[%s6648_s0 + $0xcc8] ss:$16 sps:$4 sm:$0xff]  }
 0x1ee   : > { %4310 = vmatpush1.bf16.msra.mxu0 %v6046_v48 }
 0x1ef   : > { %4351 = vmatpush1.bf16.msra.mxu1 %v6049_v52  ;;  %4311 = vmatprep.subr.bf16.mxu0 %v6054_v54  ;;  %v6126_v54 = vld [vmem:[%s6648_s0 + $0xaac] ss:$16 sps:$4 sm:$0xff]  }
 0x1f0   : > { %4352 = vmatprep.subr.bf16.mxu1 %v6057_v55  ;;  %v6129_v55 = vld [vmem:[%s6648_s0 + $0xcac] ss:$16 sps:$4 sm:$0xff]  }
 0x1f2   : > { %4312 = vmatpush1.bf16.msra.mxu0 %v6052_v56  ;;  %v6124_v56 = vld [vmem:[%s6648_s0 + $0xaa8] ss:$16 sps:$4 sm:$0xff]  }
 0x1f3   : > { %4353 = vmatpush1.bf16.msra.mxu1 %v6055_v57  ;;  %4313 = vmatprep.subr.bf16.mxu0 %v6060_v58  ;;  %v6127_v57 = vld [vmem:[%s6648_s0 + $0xca8] ss:$16 sps:$4 sm:$0xff]  }
 0x1f4   : > { %4354 = vmatprep.subr.bf16.mxu1 %v6063_v59 }
 0x1f6   : > { %4314 = vmatpush1.bf16.msra.mxu0 %v6058_v60  ;;  %v6132_v60 = vld [vmem:[%s6648_s0 + $0xa8c] ss:$16 sps:$4 sm:$0xff]  }
 0x1f7   : > { %4355 = vmatpush1.bf16.msra.mxu1 %v6061_v62  ;;  %4315 = vmatprep.subr.bf16.mxu0 %v6066_v63  ;;  %v6133_v62 = vld [vmem:[%s6648_s0 + $0xc88] ss:$16 sps:$4 sm:$0xff]   ;;  %v6138_v63 = vld [vmem:[%s6648_s0 + $0xa6c] ss:$16 sps:$4 sm:$0xff]  }
 0x1f8   : > { %4356 = vmatprep.subr.bf16.mxu1 %v6069_v0  ;;  %v6141_v0 = vld [vmem:[%s6648_s0 + $0xc6c] ss:$16 sps:$4 sm:$0xff]  }
 0x1fa   : > { %4316 = vmatpush2.bf16.msra.mxu0 %v6064_v9  ;;  %v6136_v9 = vld [vmem:[%s6648_s0 + $0xa68] ss:$16 sps:$4 sm:$0xff]  }
 0x1fb   : > { %4357 = vmatpush2.bf16.msra.mxu1 %v6067_v13  ;;  %4317 = vmatprep.subr.bf16.mxu0 %v6072_v4  ;;  %v6139_v13 = vld [vmem:[%s6648_s0 + $0xc68] ss:$16 sps:$4 sm:$0xff]   ;;  %v6144_v4 = vld [vmem:[%s6648_s0 + $0xa4c] ss:$16 sps:$4 sm:$0xff]  }
 0x1fc   : > { %4358 = vmatprep.subr.bf16.mxu1 %v6075_v5  ;;  %v6147_v5 = vld [vmem:[%s6648_s0 + $0xc4c] ss:$16 sps:$4 sm:$0xff]  }
 0x1fe   : > { %4318 = vmatpush2.bf16.msra.mxu0 %v6070_v20  ;;  %v6142_v20 = vld [vmem:[%s6648_s0 + $0xa48] ss:$16 sps:$4 sm:$0xff]  }
 0x1ff   : > { %4359 = vmatpush2.bf16.msra.mxu1 %v6073_v53  ;;  %4319 = vmatprep.subr.bf16.mxu0 %v6078_v38  ;;  %v6145_v53 = vld [vmem:[%s6648_s0 + $0xc48] ss:$16 sps:$4 sm:$0xff]   ;;  %v6150_v38 = vld [vmem:[%s6648_s0 + $0xa2c] ss:$16 sps:$4 sm:$0xff]  }
 0x200   : > { %4360 = vmatprep.subr.bf16.mxu1 %v6081_v6  ;;  %v6153_v6 = vld [vmem:[%s6648_s0 + $0xc2c] ss:$16 sps:$4 sm:$0xff]  }
 0x202   : > { %4320 = vmatpush2.bf16.msra.mxu0 %v6076_v7  ;;  %v6148_v7 = vld [vmem:[%s6648_s0 + $0xa28] ss:$16 sps:$4 sm:$0xff]  }
 0x203   : > { %4361 = vmatpush2.bf16.msra.mxu1 %v6079_v11  ;;  %4321 = vmatprep.subr.bf16.mxu0 %v6084_v12  ;;  %v6151_v11 = vld [vmem:[%s6648_s0 + $0xc28] ss:$16 sps:$4 sm:$0xff]   ;;  %v6156_v12 = vld [vmem:[%s6648_s0 + $0xa0c] ss:$16 sps:$4 sm:$0xff]  }
 0x204   : > { %4362 = vmatprep.subr.bf16.mxu1 %v6087_v14  ;;  %v6159_v14 = vld [vmem:[%s6648_s0 + $0xc0c] ss:$16 sps:$4 sm:$0xff]  }
 0x206   : > { %4322 = vmatpush2.bf16.msra.mxu0 %v6082_v15  ;;  %v6154_v15 = vld [vmem:[%s6648_s0 + $0xa08] ss:$16 sps:$4 sm:$0xff]  }
 0x207   : > { %4363 = vmatpush2.bf16.msra.mxu1 %v6085_v16  ;;  %4323 = vmatprep.subr.bf16.mxu0 %v6090_v17  ;;  %v6157_v16 = vld [vmem:[%s6648_s0 + $0xc08] ss:$16 sps:$4 sm:$0xff]   ;;  %v6162_v17 = vld [vmem:[%s6648_s0 + $0xbec] ss:$16 sps:$4 sm:$0xff]  }
 0x208   : > { %4364 = vmatprep.subr.bf16.mxu1 %v6093_v18  ;;  %v6165_v18 = vld [vmem:[%s6648_s0 + $0xdec] ss:$16 sps:$4 sm:$0xff]  }
 0x20a   : > { %4324 = vmatpush2.bf16.msra.mxu0 %v6088_v19  ;;  %v6160_v19 = vld [vmem:[%s6648_s0 + $0xbe8] ss:$16 sps:$4 sm:$0xff]  }
 0x20b   : > { %4365 = vmatpush2.bf16.msra.mxu1 %v6091_v23  ;;  %4325 = vmatprep.subr.bf16.mxu0 %v6096_v24  ;;  %v6163_v23 = vld [vmem:[%s6648_s0 + $0xde8] ss:$16 sps:$4 sm:$0xff]   ;;  %v6168_v24 = vld [vmem:[%s6648_s0 + $0xbcc] ss:$16 sps:$4 sm:$0xff]  }
 0x20c   : > { %4366 = vmatprep.subr.bf16.mxu1 %v6099_v25  ;;  %v6171_v25 = vld [vmem:[%s6648_s0 + $0xdcc] ss:$16 sps:$4 sm:$0xff]  }
 0x20e   : > { %4326 = vmatpush2.bf16.msra.mxu0 %v6094_v26  ;;  %v6166_v26 = vld [vmem:[%s6648_s0 + $0xbc8] ss:$16 sps:$4 sm:$0xff]  }
 0x20f   : > { %4367 = vmatpush2.bf16.msra.mxu1 %v6097_v27  ;;  %4327 = vmatprep.subr.bf16.mxu0 %v6102_v28  ;;  %v6169_v27 = vld [vmem:[%s6648_s0 + $0xdc8] ss:$16 sps:$4 sm:$0xff]   ;;  %v6174_v28 = vld [vmem:[%s6648_s0 + $0xbac] ss:$16 sps:$4 sm:$0xff]  }
 0x210   : > { %4368 = vmatprep.subr.bf16.mxu1 %v6105_v10  ;;  %v6177_v10 = vld [vmem:[%s6648_s0 + $0xdac] ss:$16 sps:$4 sm:$0xff]  }
 0x212   : > { %4328 = vmatpush2.bf16.msra.mxu0 %v6100_v21  ;;  %v6172_v21 = vld [vmem:[%s6648_s0 + $0xba8] ss:$16 sps:$4 sm:$0xff]  }
 0x213   : > { %4369 = vmatpush2.bf16.msra.mxu1 %v6103_v61  ;;  %4329 = vmatprep.subr.bf16.mxu0 %v6108_v50  ;;  %v6175_v61 = vld [vmem:[%s6648_s0 + $0xda8] ss:$16 sps:$4 sm:$0xff]   ;;  %v6180_v50 = vld [vmem:[%s6648_s0 + $0xb8c] ss:$16 sps:$4 sm:$0xff]  }
 0x214   : > { %4370 = vmatprep.subr.bf16.mxu1 %v6111_v32  ;;  %v6183_v32 = vld [vmem:[%s6648_s0 + $0xd8c] ss:$16 sps:$4 sm:$0xff]  }
 0x216   : > { %4330 = vmatpush2.bf16.msra.mxu0 %v6106_v34  ;;  %v6178_v34 = vld [vmem:[%s6648_s0 + $0xb88] ss:$16 sps:$4 sm:$0xff]  }
 0x217   : > { %4371 = vmatpush2.bf16.msra.mxu1 %v6109_v35  ;;  %4381 = vmatprep.subr.bf16.mxu0 %v6114_v41  ;;  %v6181_v35 = vld [vmem:[%s6648_s0 + $0xd88] ss:$16 sps:$4 sm:$0xff]   ;;  %v6186_v41 = vld [vmem:[%s6648_s0 + $0xb6c] ss:$16 sps:$4 sm:$0xff]  }
 0x218   : > { %4422 = vmatprep.subr.bf16.mxu1 %v6117_v30  ;;  %v6189_v30 = vld [vmem:[%s6648_s0 + $0xd6c] ss:$16 sps:$4 sm:$0xff]  }
 0x219   : > { %v7225_v40 = vpop.f32.mrf.mxu0  ;;  %4332 = vmatmul.mubr.bf16.vlgmr.msra.gmra.mxu0 %v6833_v22 }
 0x21a   : > { %v7227_v42 = vpop.f32.mrf.mxu1  ;;  %4373 = vmatmul.mubr.bf16.vlgmr.msra.gmra.mxu1 %v6913_v43  ;;  %4382 = vmatpush1.bf16.msra.mxu0 %v6112_v3  ;;  %v6184_v3 = vld [vmem:[%s6648_s0 + $0xb68] ss:$16 sps:$4 sm:$0xff]  }
 0x21b   : > { %4423 = vmatpush1.bf16.msra.mxu1 %v6115_v36  ;;  %v7233_v48 = vpop.f32.mrf.mxu0  ;;  %4383 = vmatprep.subr.bf16.mxu0 %v6120_v37  ;;  %v6187_v36 = vld [vmem:[%s6648_s0 + $0xd68] ss:$16 sps:$4 sm:$0xff]   ;;  %v6192_v37 = vld [vmem:[%s6648_s0 + $0xb4c] ss:$16 sps:$4 sm:$0xff]  }
 0x21c   : > { %v7235_v52 = vpop.f32.mrf.mxu1  ;;  %4424 = vmatprep.subr.bf16.mxu1 %v6123_v39  ;;  %4413 = vmatprep.mubr.bf16.mxu0 %v6848_v33  ;;  %v6135_v33 = vld [vmem:[%s6648_s0 + $0xc8c] ss:$16 sps:$4 sm:$0xff]  }
 0x21d   : > { %4454 = vmatprep.mubr.bf16.mxu1 %v6921_v49  ;;  %v4091_v22 = vpop.f32.mrf.mxu0  ;;  %v6130_v49 = vld [vmem:[%s6648_s0 + $0xa88] ss:$16 sps:$4 sm:$0xff]   ;;  %v6195_v39 = vld [vmem:[%s6648_s0 + $0xd4c] ss:$16 sps:$4 sm:$0xff]  }
 0x21e   : > { %v4132_v43 = vpop.f32.mrf.mxu1  ;;  %4384 = vmatpush1.bf16.msra.mxu0 %v6118_v46  ;;  %v6190_v46 = vld [vmem:[%s6648_s0 + $0xb48] ss:$16 sps:$4 sm:$0xff]  }
 0x21f   : > { %4425 = vmatpush1.bf16.msra.mxu1 %v6121_v47  ;;  %v4092_v58 = vpop.f32.mrf.mxu0  ;;  %4385 = vmatprep.subr.bf16.mxu0 %v6126_v54  ;;  %v6193_v47 = vld [vmem:[%s6648_s0 + $0xd48] ss:$16 sps:$4 sm:$0xff]   ;;  %v6198_v54 = vld [vmem:[%s6648_s0 + $0xb2c] ss:$16 sps:$4 sm:$0xff]  }
 0x220   : > { %v4133_v59 = vpop.f32.mrf.mxu1  ;;  %4426 = vmatprep.subr.bf16.mxu1 %v6129_v55  ;;  %v6201_v55 = vld [vmem:[%s6648_s0 + $0xd2c] ss:$16 sps:$4 sm:$0xff]   ;;  %v6196_v22 = vld [vmem:[%s6648_s0 + $0xb28] ss:$16 sps:$4 sm:$0xff]  }
 0x221   : > { %v6199_v43 = vld [vmem:[%s6648_s0 + $0xd28] ss:$16 sps:$4 sm:$0xff]  }
 0x222   : > { %4386 = vmatpush1.bf16.msra.mxu0 %v6124_v56  ;;  %v6204_v56 = vld [vmem:[%s6648_s0 + $0xb0c] ss:$16 sps:$4 sm:$0xff]   ;;  %v6202_v58 = vld [vmem:[%s6648_s0 + $0xb08] ss:$16 sps:$4 sm:$0xff]  }
 0x223   : > { %4427 = vmatpush1.bf16.msra.mxu1 %v6127_v57  ;;  %4387 = vmatprep.subr.bf16.mxu0 %v6132_v60  ;;  %v6207_v57 = vld [vmem:[%s6648_s0 + $0xd0c] ss:$16 sps:$4 sm:$0xff]   ;;  %v6205_v59 = vld [vmem:[%s6648_s0 + $0xd08] ss:$16 sps:$4 sm:$0xff]  }
 0x224   : > { %4428 = vmatprep.subr.bf16.mxu1 %v6135_v33  ;;  %v6210_v60 = vld [vmem:[%s6648_s0 + $0xeec] ss:$16 sps:$4 sm:$0xff]  }
 0x225   : > { %v6213_v33 = vld [vmem:[%s6648_s0 + $0x10ec] ss:$16 sps:$4 sm:$0xff]  }
 0x226   : > { %4388 = vmatpush1.bf16.msra.mxu0 %v6130_v49  ;;  %v4088_v49 = vadd.f32 %v7225_v40, %v7158_v29 }
 0x227   : > { %4429 = vmatpush1.bf16.msra.mxu1 %v6133_v62  ;;  %4389 = vmatprep.subr.bf16.mxu0 %v6138_v63  ;;  %v4090_v62 = vadd.f32 %v7233_v48, %v7163_v31  ;;  %v6208_v63 = vld [vmem:[%s6648_s0 + $0xee8] ss:$16 sps:$4 sm:$0xff]  }
 0x228   : > { %4430 = vmatprep.subr.bf16.mxu1 %v6141_v0  ;;  %v6211_v0 = vld [vmem:[%s6648_s0 + $0x10e8] ss:$16 sps:$4 sm:$0xff]  }
 0x229   : > { %v4131_v31 = vadd.f32 %v7235_v52, %v4090_v62  ;;  %v6214_v48 = vld [vmem:[%s6648_s0 + $0xec8] ss:$16 sps:$4 sm:$0xff]  }
 0x22a   : > { %4390 = vmatpush1.bf16.msra.mxu0 %v6136_v9  ;;  %v6216_v9 = vld [vmem:[%s6648_s0 + $0xecc] ss:$16 sps:$4 sm:$0xff]   ;;  %v6277_v62 = vld [vmem:[%s6648_s0 + $0x1188] ss:$16 sps:$4 sm:$0xff]  }
 0x22b   : > { %4431 = vmatpush1.bf16.msra.mxu1 %v6139_v13  ;;  %4391 = vmatprep.subr.bf16.mxu0 %v6144_v4  ;;  %v6219_v13 = vld [vmem:[%s6648_s0 + $0x10cc] ss:$16 sps:$4 sm:$0xff]   ;;  %v4129_v4 = vadd.f32 %v7227_v42, %v4088_v49  ;;  %v6274_v49 = vld [vmem:[%s6648_s0 + $0xf88] ss:$16 sps:$4 sm:$0xff]  }
 0x22c   : > { %4432 = vmatprep.subr.bf16.mxu1 %v6147_v5  ;;  %v311_v5 = vld [vmem:[#allocation2 + $0x10] sm:$0xff] }
 0x22e   : > { %4392 = vmatpush1.bf16.msra.mxu0 %v6142_v20 }
 0x22f   : > { %4433 = vmatpush1.bf16.msra.mxu1 %v6145_v53  ;;  %4393 = vmatprep.subr.bf16.mxu0 %v6150_v38  ;;  %v6217_v53 = vld [vmem:[%s6648_s0 + $0x10c8] ss:$16 sps:$4 sm:$0xff]   ;;  %v312_v38 = vld [vmem:[#allocation2] sm:$0xff] }
 0x230   : > { %4434 = vmatprep.subr.bf16.mxu1 %v6153_v6 }
 0x232   : > { %4394 = vmatpush1.bf16.msra.mxu0 %v6148_v7  ;;  %v6222_v7 = vld [vmem:[%s6648_s0 + $0xeac] ss:$16 sps:$4 sm:$0xff]  }
 0x233   : > { %4435 = vmatpush1.bf16.msra.mxu1 %v6151_v11  ;;  %4395 = vmatprep.subr.bf16.mxu0 %v6156_v12  ;;  %v6225_v11 = vld [vmem:[%s6648_s0 + $0x10ac] ss:$16 sps:$4 sm:$0xff]  }
 0x234   : > { %4436 = vmatprep.subr.bf16.mxu1 %v6159_v14 }
 0x236   : > { %4396 = vmatpush1.bf16.msra.mxu0 %v6154_v15  ;;  %v6220_v15 = vld [vmem:[%s6648_s0 + $0xea8] ss:$16 sps:$4 sm:$0xff]  }
 0x237   : > { %4437 = vmatpush1.bf16.msra.mxu1 %v6157_v16  ;;  %4397 = vmatprep.subr.bf16.mxu0 %v6162_v17  ;;  %v6223_v16 = vld [vmem:[%s6648_s0 + $0x10a8] ss:$16 sps:$4 sm:$0xff]  }
 0x238   : > { %4438 = vmatprep.subr.bf16.mxu1 %v6165_v18 }
 0x23a   : > { %4398 = vmatpush2.bf16.msra.mxu0 %v6160_v19  ;;  %v6226_v19 = vld [vmem:[%s6648_s0 + $0xe88] ss:$16 sps:$4 sm:$0xff]  }
 0x23b   : > { %4439 = vmatpush2.bf16.msra.mxu1 %v6163_v23  ;;  %4399 = vmatprep.subr.bf16.mxu0 %v6168_v24  ;;  %v6229_v23 = vld [vmem:[%s6648_s0 + $0x1088] ss:$16 sps:$4 sm:$0xff]   ;;  %v6234_v24 = vld [vmem:[%s6648_s0 + $0xe6c] ss:$16 sps:$4 sm:$0xff]  }
 0x23c   : > { %4440 = vmatprep.subr.bf16.mxu1 %v6171_v25  ;;  %v6237_v25 = vld [vmem:[%s6648_s0 + $0x106c] ss:$16 sps:$4 sm:$0xff]  }
 0x23e   : > { %4400 = vmatpush2.bf16.msra.mxu0 %v6166_v26  ;;  %v6232_v26 = vld [vmem:[%s6648_s0 + $0xe68] ss:$16 sps:$4 sm:$0xff]  }
 0x23f   : > { %4441 = vmatpush2.bf16.msra.mxu1 %v6169_v27  ;;  %4401 = vmatprep.subr.bf16.mxu0 %v6174_v28  ;;  %v6235_v27 = vld [vmem:[%s6648_s0 + $0x1068] ss:$16 sps:$4 sm:$0xff]   ;;  %v6240_v28 = vld [vmem:[%s6648_s0 + $0xe4c] ss:$16 sps:$4 sm:$0xff]  }
 0x240   : > { %4442 = vmatprep.subr.bf16.mxu1 %v6177_v10  ;;  %v6243_v10 = vld [vmem:[%s6648_s0 + $0x104c] ss:$16 sps:$4 sm:$0xff]  }
 0x242   : > { %4402 = vmatpush2.bf16.msra.mxu0 %v6172_v21  ;;  %v6238_v21 = vld [vmem:[%s6648_s0 + $0xe48] ss:$16 sps:$4 sm:$0xff]  }
 0x243   : > { %4443 = vmatpush2.bf16.msra.mxu1 %v6175_v61  ;;  %4403 = vmatprep.subr.bf16.mxu0 %v6180_v50  ;;  %v6241_v61 = vld [vmem:[%s6648_s0 + $0x1048] ss:$16 sps:$4 sm:$0xff]   ;;  %v6246_v50 = vld [vmem:[%s6648_s0 + $0xe2c] ss:$16 sps:$4 sm:$0xff]  }
 0x244   : > { %4444 = vmatprep.subr.bf16.mxu1 %v6183_v32  ;;  %v6249_v32 = vld [vmem:[%s6648_s0 + $0x102c] ss:$16 sps:$4 sm:$0xff]  }
 0x246   : > { %4404 = vmatpush2.bf16.msra.mxu0 %v6178_v34  ;;  %v6244_v34 = vld [vmem:[%s6648_s0 + $0xe28] ss:$16 sps:$4 sm:$0xff]  }
 0x247   : > { %4445 = vmatpush2.bf16.msra.mxu1 %v6181_v35  ;;  %4405 = vmatprep.subr.bf16.mxu0 %v6186_v41  ;;  %v6247_v35 = vld [vmem:[%s6648_s0 + $0x1028] ss:$16 sps:$4 sm:$0xff]   ;;  %v6252_v41 = vld [vmem:[%s6648_s0 + $0xe0c] ss:$16 sps:$4 sm:$0xff]  }
 0x248   : > { %4446 = vmatprep.subr.bf16.mxu1 %v6189_v30  ;;  %v6255_v30 = vld [vmem:[%s6648_s0 + $0x100c] ss:$16 sps:$4 sm:$0xff]  }
 0x24a   : > { %4406 = vmatpush2.bf16.msra.mxu0 %v6184_v3  ;;  %v6250_v3 = vld [vmem:[%s6648_s0 + $0xe08] ss:$16 sps:$4 sm:$0xff]  }
 0x24b   : > { %4447 = vmatpush2.bf16.msra.mxu1 %v6187_v36  ;;  %4407 = vmatprep.subr.bf16.mxu0 %v6192_v37  ;;  %v6253_v36 = vld [vmem:[%s6648_s0 + $0x1008] ss:$16 sps:$4 sm:$0xff]   ;;  %v6258_v37 = vld [vmem:[%s6648_s0 + $0xfec] ss:$16 sps:$4 sm:$0xff]  }
 0x24c   : > { %4448 = vmatprep.subr.bf16.mxu1 %v6195_v39  ;;  %v6261_v39 = vld [vmem:[%s6648_s0 + $0x11ec] ss:$16 sps:$4 sm:$0xff]  }
 0x24e   : > { %4408 = vmatpush2.bf16.msra.mxu0 %v6190_v46  ;;  %v6256_v46 = vld [vmem:[%s6648_s0 + $0xfe8] ss:$16 sps:$4 sm:$0xff]  }
 0x24f   : > { %4449 = vmatpush2.bf16.msra.mxu1 %v6193_v47  ;;  %4409 = vmatprep.subr.bf16.mxu0 %v6198_v54  ;;  %v6259_v47 = vld [vmem:[%s6648_s0 + $0x11e8] ss:$16 sps:$4 sm:$0xff]   ;;  %v6264_v54 = vld [vmem:[%s6648_s0 + $0xfcc] ss:$16 sps:$4 sm:$0xff]  }
 0x250   : > { %4450 = vmatprep.subr.bf16.mxu1 %v6201_v55  ;;  %v6267_v55 = vld [vmem:[%s6648_s0 + $0x11cc] ss:$16 sps:$4 sm:$0xff]  }
 0x252   : > { %4410 = vmatpush2.bf16.msra.mxu0 %v6196_v22  ;;  %v6262_v22 = vld [vmem:[%s6648_s0 + $0xfc8] ss:$16 sps:$4 sm:$0xff]  }
 0x253   : > { %4451 = vmatpush2.bf16.msra.mxu1 %v6199_v43  ;;  %4411 = vmatprep.subr.bf16.mxu0 %v6204_v56  ;;  %v6265_v43 = vld [vmem:[%s6648_s0 + $0x11c8] ss:$16 sps:$4 sm:$0xff]   ;;  %v6270_v56 = vld [vmem:[%s6648_s0 + $0xfac] ss:$16 sps:$4 sm:$0xff]  }
 0x254   : > { %4452 = vmatprep.subr.bf16.mxu1 %v6207_v57  ;;  %v6273_v57 = vld [vmem:[%s6648_s0 + $0x11ac] ss:$16 sps:$4 sm:$0xff]  }
 0x256   : > { %4412 = vmatpush2.bf16.msra.mxu0 %v6202_v58  ;;  %v6268_v58 = vld [vmem:[%s6648_s0 + $0xfa8] ss:$16 sps:$4 sm:$0xff]  }
 0x257   : > { %4453 = vmatpush2.bf16.msra.mxu1 %v6205_v59  ;;  %4463 = vmatprep.subr.bf16.mxu0 %v6210_v60  ;;  %v6271_v59 = vld [vmem:[%s6648_s0 + $0x11a8] ss:$16 sps:$4 sm:$0xff]   ;;  %v6276_v60 = vld [vmem:[%s6648_s0 + $0xf8c] ss:$16 sps:$4 sm:$0xff]  }
 0x258   : > { %4504 = vmatprep.subr.bf16.mxu1 %v6213_v33  ;;  %v6279_v33 = vld [vmem:[%s6648_s0 + $0x118c] ss:$16 sps:$4 sm:$0xff]  }
 0x259   : > { %v4169_v20 = vpop.f32.mrf.mxu0  ;;  %4414 = vmatmul.mubr.bf16.vlgmr.msra.gmra.mxu0 %v6915_v44 }
 0x25a   : > { %v7306_v29 = vpop.f32.mrf.mxu1  ;;  %4455 = vmatmul.mubr.bf16.vlgmr.msra.gmra.mxu1 %v6991_v1  ;;  %v4170_v40 = vadd.f32 %v4169_v20, %v4129_v4  ;;  %4464 = vmatpush1.bf16.msra.mxu0 %v6208_v63  ;;  %v6282_v63 = vld [vmem:[%s6648_s0 + $0xf6c] ss:$16 sps:$4 sm:$0xff]   ;;  %v6286_v20 = vld [vmem:[%s6648_s0 + $0xf48] ss:$16 sps:$4 sm:$0xff]  }
 0x25b   : > { %4505 = vmatpush1.bf16.msra.mxu1 %v6211_v0  ;;  %v4171_v6 = vpop.f32.mrf.mxu0  ;;  %4465 = vmatprep.subr.bf16.mxu0 %v6216_v9  ;;  %v6285_v0 = vld [vmem:[%s6648_s0 + $0x116c] ss:$16 sps:$4 sm:$0xff]   ;;  %v6280_v9 = vld [vmem:[%s6648_s0 + $0xf68] ss:$16 sps:$4 sm:$0xff]  }
 0x25c   : > { %v7313_v42 = vpop.f32.mrf.mxu1  ;;  %4506 = vmatprep.subr.bf16.mxu1 %v6219_v13  ;;  %v4545_v44 = vadd.f32 %v4170_v40, %v311_v5  ;;  %v4172_v1 = vadd.f32 %v4171_v6, %v4131_v31  ;;  %4495 = vmatprep.mubr.bf16.mxu0 %v6923_v51  ;;  %v6228_v51 = vld [vmem:[%s6648_s0 + $0xe8c] ss:$16 sps:$4 sm:$0xff]   ;;  %v6283_v13 = vld [vmem:[%s6648_s0 + $0x1168] ss:$16 sps:$4 sm:$0xff]  }
 0x25d   : > { %4536 = vmatprep.mubr.bf16.mxu1 %v7000_v8  ;;  %v4173_v52 = vpop.f32.mrf.mxu0  ;;  %v6231_v8 = vld [vmem:[%s6648_s0 + $0x108c] ss:$16 sps:$4 sm:$0xff]   ;;  %v6289_v31 = vld [vmem:[%s6648_s0 + $0x1148] ss:$16 sps:$4 sm:$0xff]  }
 0x25e   : > { %v4214_v12 = vpop.f32.mrf.mxu1  ;;  %4549 = vst [vmem:[#allocation2 + $0x10] sm:$0xff] %v4545_v44  ;;  %v4546_v14 = vadd.f32 %v4172_v1, %v312_v38  ;;  %4466 = vmatpush1.bf16.msra.mxu0 %v6214_v48  ;;  %v6288_v4 = vld [vmem:[%s6648_s0 + $0xf4c] ss:$16 sps:$4 sm:$0xff]   ;;  %v6295_v38 = vld [vmem:[%s6648_s0 + $0x1128] ss:$16 sps:$4 sm:$0xff]  }
 0x25f   : > { %4507 = vmatpush1.bf16.msra.mxu1 %v6217_v53  ;;  %v4174_v17 = vpop.f32.mrf.mxu0  ;;  %4467 = vmatprep.subr.bf16.mxu0 %v6222_v7  ;;  %v6291_v5 = vld [vmem:[%s6648_s0 + $0x114c] ss:$16 sps:$4 sm:$0xff]   ;;  %v6292_v53 = vld [vmem:[%s6648_s0 + $0xf28] ss:$16 sps:$4 sm:$0xff]  }
 0x260   : > { %v4215_v18 = vpop.f32.mrf.mxu1  ;;  %4508 = vmatprep.subr.bf16.mxu1 %v6225_v11  ;;  %4550 = vst [vmem:[#allocation2] sm:$0xff] %v4546_v14  ;;  %v6294_v40 = vld [vmem:[%s6648_s0 + $0xf2c] ss:$16 sps:$4 sm:$0xff]   ;;  %v6298_v11 = vld [vmem:[%s6648_s0 + $0xf08] ss:$16 sps:$4 sm:$0xff]  }
 0x261   : > { %v6297_v48 = vld [vmem:[%s6648_s0 + $0x112c] ss:$16 sps:$4 sm:$0xff]   ;;  %v6301_v44 = vld [vmem:[%s6648_s0 + $0x1108] ss:$16 sps:$4 sm:$0xff]  }
 0x262   : > { %4468 = vmatpush1.bf16.msra.mxu0 %v6220_v15  ;;  %v6300_v6 = vld [vmem:[%s6648_s0 + $0xf0c] ss:$16 sps:$4 sm:$0xff]  }
 0x263   : > { %4509 = vmatpush1.bf16.msra.mxu1 %v6223_v16  ;;  %4469 = vmatprep.subr.bf16.mxu0 %v6228_v51  ;;  %v6303_v7 = vld [vmem:[%s6648_s0 + $0x110c] ss:$16 sps:$4 sm:$0xff]  }
 0x264   : > { %4510 = vmatprep.subr.bf16.mxu1 %v6231_v8 }
 0x266   : > { %4470 = vmatpush1.bf16.msra.mxu0 %v6226_v19 }
 0x267   : > { %4511 = vmatpush1.bf16.msra.mxu1 %v6229_v23  ;;  %4471 = vmatprep.subr.bf16.mxu0 %v6234_v24 }
 0x268   : > { %4512 = vmatprep.subr.bf16.mxu1 %v6237_v25 }
 0x26a   : > { %4472 = vmatpush1.bf16.msra.mxu0 %v6232_v26 }
 0x26b   : > { %4513 = vmatpush1.bf16.msra.mxu1 %v6235_v27  ;;  %4473 = vmatprep.subr.bf16.mxu0 %v6240_v28 }
 0x26c   : > { %4514 = vmatprep.subr.bf16.mxu1 %v6243_v10 }
 0x26e   : > { %4474 = vmatpush1.bf16.msra.mxu0 %v6238_v21 }
 0x26f   : > { %4515 = vmatpush1.bf16.msra.mxu1 %v6241_v61  ;;  %4475 = vmatprep.subr.bf16.mxu0 %v6246_v50 }
 0x270   : > { %4516 = vmatprep.subr.bf16.mxu1 %v6249_v32 }
 0x272   : > { %4476 = vmatpush1.bf16.msra.mxu0 %v6244_v34 }
 0x273   : > { %4517 = vmatpush1.bf16.msra.mxu1 %v6247_v35  ;;  %4477 = vmatprep.subr.bf16.mxu0 %v6252_v41 }
 0x274   : > { %4518 = vmatprep.subr.bf16.mxu1 %v6255_v30 }
 0x276   : > { %4478 = vmatpush1.bf16.msra.mxu0 %v6250_v3 }
 0x277   : > { %4519 = vmatpush1.bf16.msra.mxu1 %v6253_v36  ;;  %4479 = vmatprep.subr.bf16.mxu0 %v6258_v37 }
 0x278   : > { %4520 = vmatprep.subr.bf16.mxu1 %v6261_v39 }
 0x27a   : > { %4480 = vmatpush2.bf16.msra.mxu0 %v6256_v46 }
 0x27b   : > { %4521 = vmatpush2.bf16.msra.mxu1 %v6259_v47  ;;  %4481 = vmatprep.subr.bf16.mxu0 %v6264_v54 }
 0x27c   : > { %4522 = vmatprep.subr.bf16.mxu1 %v6267_v55 }
 0x27e   : > { %4482 = vmatpush2.bf16.msra.mxu0 %v6262_v22 }
 0x27f   : > { %4523 = vmatpush2.bf16.msra.mxu1 %v6265_v43  ;;  %4483 = vmatprep.subr.bf16.mxu0 %v6270_v56  ;;  %v313_v43 = vld [vmem:[#allocation2 + $0x18] sm:$0xff] }
 0x280   : > { %4524 = vmatprep.subr.bf16.mxu1 %v6273_v57 }
 0x282   : > { %4484 = vmatpush2.bf16.msra.mxu0 %v6268_v58 }
 0x283   : > { %4525 = vmatpush2.bf16.msra.mxu1 %v6271_v59  ;;  %4485 = vmatprep.subr.bf16.mxu0 %v6276_v60  ;;  %v314_v60 = vld [vmem:[#allocation2 + $0x8] sm:$0xff] }
 0x284   : > { %4526 = vmatprep.subr.bf16.mxu1 %v6279_v33 }
 0x286   : > { %4486 = vmatpush2.bf16.msra.mxu0 %v6274_v49 }
 0x287   : > { %4527 = vmatpush2.bf16.msra.mxu1 %v6277_v62  ;;  %4487 = vmatprep.subr.bf16.mxu0 %v6282_v63 }
 0x288   : > { %4528 = vmatprep.subr.bf16.mxu1 %v6285_v0 }
 0x28a   : > { %4488 = vmatpush2.bf16.msra.mxu0 %v6280_v9 }
 0x28b   : > { %4529 = vmatpush2.bf16.msra.mxu1 %v6283_v13  ;;  %4489 = vmatprep.subr.bf16.mxu0 %v6288_v4 }
 0x28c   : > { %4530 = vmatprep.subr.bf16.mxu1 %v6291_v5 }
 0x28e   : > { %4490 = vmatpush2.bf16.msra.mxu0 %v6286_v20 }
 0x28f   : > { %4531 = vmatpush2.bf16.msra.mxu1 %v6289_v31  ;;  %4491 = vmatprep.subr.bf16.mxu0 %v6294_v40 }
 0x290   : > { %4532 = vmatprep.subr.bf16.mxu1 %v6297_v48 }
 0x292   : > { %4492 = vmatpush2.bf16.msra.mxu0 %v6292_v53 }
 0x293   : > { %4533 = vmatpush2.bf16.msra.mxu1 %v6295_v38  ;;  %4493 = vmatprep.subr.bf16.mxu0 %v6300_v6 }
 0x294   : > { %4534 = vmatprep.subr.bf16.mxu1 %v6303_v7 }
 0x296   : > { %4494 = vmatpush2.bf16.msra.mxu0 %v6298_v11 }
 0x297   : > { %4535 = vmatpush2.bf16.msra.mxu1 %v6301_v44 }
 0x299   : > { %v4251_v1 = vpop.f32.mrf.mxu0  ;;  %4496 = vmatmul.mubr.bf16.vlgmr.msra.gmra.mxu0 %v6993_v2 }
 0x29a   : > { %v4292_v52 = vpop.f32.mrf.mxu1  ;;  %4537 = vmatmul.mubr.bf16.vlgmr.msra.gmra.mxu1 %v7073_v45  ;;  %v4252_v12 = vadd.f32 %v4251_v1, %v7306_v29 }
 0x29b   : > { %v4253_v14 = vpop.f32.mrf.mxu0 }
 0x29c   : > { %v4294_v15 = vpop.f32.mrf.mxu1  ;;  %v4293_v16 = vadd.f32 %v4292_v52, %v4252_v12  ;;  %v4254_v17 = vadd.f32 %v4253_v14, %v7313_v42 }
 0x29d   : > { %v4255_v18 = vpop.f32.mrf.mxu0 }
 0x29e   : > { %v4296_v51 = vpop.f32.mrf.mxu1  ;;  %v4295_v8 = vadd.f32 %v4294_v15, %v4254_v17 }
 0x29f   : > { %v4256_v19 = vpop.f32.mrf.mxu0 }
 0x2a0   : > { %v4297_v23 = vpop.f32.mrf.mxu1 }
 0x2d9   : > { %v4333_v24 = vpop.f32.mrf.mxu0 }
 0x2da   : > { %v4374_v25 = vpop.f32.mrf.mxu1  ;;  %v4334_v26 = vadd.f32 %v4333_v24, %v4293_v16 }
 0x2db   : > { %v4335_v27 = vpop.f32.mrf.mxu0 }
 0x2dc   : > { %v4376_v28 = vpop.f32.mrf.mxu1  ;;  %v4375_v2 = vadd.f32 %v4374_v25, %v4334_v26  ;;  %v4336_v10 = vadd.f32 %v4335_v27, %v4295_v8 }
 0x2dd   : > { %v4337_v45 = vpop.f32.mrf.mxu0 }
 0x2de   : > { %v4378_v21 = vpop.f32.mrf.mxu1  ;;  %v4377_v29 = vadd.f32 %v4376_v28, %v4336_v10 }
 0x2df   : > { %v4338_v61 = vpop.f32.mrf.mxu0 }
 0x2e0   : > { %v4379_v50 = vpop.f32.mrf.mxu1 }
 0x319   : > { %v4415_v32 = vpop.f32.mrf.mxu0 }
 0x31a   : > { %v4456_v34 = vpop.f32.mrf.mxu1  ;;  %v4416_v37 = vadd.f32 %v4415_v32, %v4375_v2 }
 0x31b   : > { %v4417_v42 = vpop.f32.mrf.mxu0 }
 0x31c   : > { %v4458_v35 = vpop.f32.mrf.mxu1  ;;  %v4418_v39 = vadd.f32 %v4417_v42, %v4377_v29  ;;  %v4457_v46 = vadd.f32 %v4456_v34, %v4416_v37 }
 0x31d   : > { %v4419_v41 = vpop.f32.mrf.mxu0 }
 0x31e   : > { %v4460_v30 = vpop.f32.mrf.mxu1  ;;  %v4459_v55 = vadd.f32 %v4458_v35, %v4418_v39 }
 0x31f   : > { %v4420_v3 = vpop.f32.mrf.mxu0 }
 0x320   : > { %v4461_v36 = vpop.f32.mrf.mxu1 }
 0x359   : > { %v4497_v47 = vpop.f32.mrf.mxu0 }
 0x35a   : > { %v4538_v54 = vpop.f32.mrf.mxu1  ;;  %v4498_v22 = vadd.f32 %v4497_v47, %v4457_v46 }
 0x35b   : > { %v4499_v56 = vpop.f32.mrf.mxu0 }
 0x35c   : > { %v4540_v57 = vpop.f32.mrf.mxu1  ;;  %v4539_v58 = vadd.f32 %v4538_v54, %v4498_v22  ;;  %v4500_v59 = vadd.f32 %v4499_v56, %v4459_v55 }
 0x35d   : > { %v4501_v33 = vpop.f32.mrf.mxu0 }
 0x35e   : > { %v4542_v49 = vpop.f32.mrf.mxu1  ;;  %v4547_v62 = vadd.f32 %v4539_v58, %v313_v43  ;;  %v4541_v63 = vadd.f32 %v4540_v57, %v4500_v59  ;;  %4556 = sbr.rel (%p5329_p0) target bundleno = 881 (0x371), region = 48 }
 0x35f   : > { %v4502_v0 = vpop.f32.mrf.mxu0 }
 0x360   : > { %v4543_v9 = vpop.f32.mrf.mxu1  ;;  %4551 = vst [vmem:[#allocation2 + $0x18] sm:$0xff] %v4547_v62  ;;  %v4548_v13 = vadd.f32 %v4541_v63, %v314_v60 }
 0x362   : > { %4552 = vst [vmem:[#allocation2 + $0x8] sm:$0xff] %v4548_v13 }
 0x363   : > { %v4563_v4 = vlaneseq  ;;  %v4561_v20 = vld [vmem:[%s239_s27] sm:$0xf]  ;;  %v4557_v31 = vld [vmem:[#allocation2 + $0x10] sm:$0xff] }
 0x364   : > { %v4558_v6 = vld [vmem:[#allocation2] sm:$0xff] }
 0x365   : > { %v4564_v5 = vshrl.u32 %v4563_v4, 7 }
 0x367   : > { %v4565_v40 = vsub.s32 0, %v4564_v5  ;;  %v4569_v48 = vsub.s32 1, %v4564_v5  ;;  %v4573_v53 = vsub.s32 2, %v4564_v5  ;;  %v4577_v38 = vsub.s32 3, %v4564_v5  ;;  %v4559_v7 = vld [vmem:[#allocation2 + $0x18] sm:$0xff] }
 0x369   : > { %v4560_v11 = vld [vmem:[#allocation2 + $0x8] sm:$0xff]  ;;  %v4566_v44 = vrot.slane %v4561_v20, %v4565_v40  ;;  %v4570_v1 = vrot.slane %v4561_v20, %v4569_v48  ;;  %v4574_v52 = vrot.slane %v4561_v20, %v4573_v53  ;;  %v4578_v12 = vrot.slane %v4561_v20, %v4577_v38 }
 0x36b   : > { %v4583_v14 = vadd.f32 %v4566_v44, %v4557_v31  ;;  %v4584_v15 = vadd.f32 %v4570_v1, %v4558_v6  ;;  %v4585_v16 = vadd.f32 %v4574_v52, %v4559_v7  ;;  %v4586_v17 = vadd.f32 %v4578_v12, %v4560_v11 }
 0x36d   : > { %v4587_v18 = vmax.f32 %v4583_v14, 0.0  ;;  %v4588_v51 = vmax.f32 %v4584_v15, 0.0  ;;  %v4589_v8 = vmax.f32 %v4585_v16, 0.0  ;;  %v4590_v19 = vmax.f32 %v4586_v17, 0.0 }
 0x36f   : > { %4591 = vst [vmem:[%s6667_s28] sm:$0xff] %v4587_v18  ;;  %4592 = vst [vmem:[%s6667_s28 + $0x8] sm:$0xff] %v4588_v51 }
 0x370   : > { %4593 = vst [vmem:[%s6667_s28 + $0x10] sm:$0xff] %v4589_v8  ;;  %4594 = vst [vmem:[%s6667_s28 + $0x18] sm:$0xff] %v4590_v19 }
 0x371 PF: > { %s19_s22 = sadd.s32 1, %s6454_s22   ;;  %s7437_s12 = smov %s6418_s13 }
 0x372   : > { %p16_p1 = scmp.ge.s32.totalorder %s19_s22, 6   ;;  %s7438_s13 = smov %s6422_s14 }
 0x373   : > { %s7439_s14 = smov %s6622_s10  ;;  %s7440_s15 = smov %s6430_s16 }
 0x374   : > { %s7441_s16 = smov %s6434_s17  ;;  %s7442_s17 = smov %s6627_s29 }
 0x375   : > { %s7443_s18 = smov %s6446_s20  ;;  %s7444_s19 = smov %s6450_s21 }
 0x376   : > { %s7445_s20 = smov %s7448_s23  ;;  %s7446_s21 = smov %s7452_s30 }
 0x377   :  { %18 = sbr.rel (!%p16_p1) target bundleno = 13 (0xd), region = 96 }
 0x37c   :  { %4625 = vsyncpa [#allocation4], 1 }
 0x37d   :  { %4627 = vsyncpa [#allocation4 + $0x1], 1 }
 0x37e   :  { %4628 = vsyncpa [#allocation6], 1 }
 0x37f   :  { %4630 = vsyncpa [#allocation6 + $0x1], 1 }

</bundles_post_ra>
